<compile_context>
chip_gen: v7x
topology: tpu7x:2x2x1
jax: 0.10.0
libtpu: 0.0.40
codegen_flags: <defaults>
</compile_context>

<pallas_src>
import jax
import jax.numpy as jnp
from jax import lax
from jax.experimental import pallas as pl
from jax.experimental.pallas import tpu as pltpu

# ---------------- shape configuration (small, consistent with the module) ----
B = 2                      # batch
HID = 32                   # hidden_size (== action_hidden_size)
CTX_H = 64                 # ctx_hidden_size
FEAT_BASE = 64             # feature_size constructor arg
FEAT = FEAT_BASE + 128     # self.feature_size (panoramic adds 128)
LSTM_IN = 2 * FEAT         # action_space != 6  ->  LSTM_n_in = self.feature_size * 2
V_NUM = 8                  # number of panoramic views in feature_all
SEQ = 8                    # instruction context length
A_NUM = 8                  # number of candidate actions (u_features rows)
DOT = 256                  # dot_dim in VisualSoftDotAttention / EltwiseProdScoring
T_STEPS = 4                # decode steps for the rollout demo

PACK = 2 * HID + SEQ + A_NUM   # 80 useful lanes per step (h_tilde|c1|alpha|logit)
PACK_PAD = 128                 # lane-dense packed width (pad 80 -> 128)
NEG_INF = -1e30                # finite "minus infinity" for masked_fill
# TODO(synk): a fully-masked row would give uniform alpha here instead of
# PyTorch's -inf/NaN softmax behaviour (benign for the lengths used below).


def _softmax(x):
    m = jnp.max(x, axis=-1, keepdims=True)
    e = jnp.exp(x - m)
    return e * pl.reciprocal(jnp.sum(e, axis=-1, keepdims=True), approx=True)


# ----------------------------------------------------------------------------
# Kernel: whole rollout in one invocation.  All refs are full arrays in VMEM.
# ----------------------------------------------------------------------------
def r2r_decoder_rollout_kernel(
    # per-step / static data
    u_prev_ref, u_feat_ref, feat_all_ref, h0_ref, c0_ref, ctx_ref, mask_ref,
    # fused / prepared parameters
    whprev_ref,                 # [wvh | whh]            (HID, DOT + 4*HID) bf16
    bvh_ref,                    # (1, DOT)
    wvv_ref, bvv_ref,           # (FEAT, DOT) bf16, (1, DOT)
    wihu_ref, wihf_ref,         # wih split at FEAT      (FEAT, 4*HID) bf16 each
    blstm_ref,                  # bih + bhh              (1, 4*HID)
    wh1_ref,                    # [wain | waout_h | 0]   (HID, 128) bf16
    waoutc_ref,                 # waout[:CTX_H]          (CTX_H, HID) bf16
    weh_ref, beh_ref,           # (HID, DOT) bf16, (1, DOT)
    wea_ref, bea_ref,           # (FEAT, DOT) bf16, (1, DOT)
    weo_ref, beo_ref,           # (1, DOT) f32, (1, 1) f32
    # lane-dense packed output, VMEM-resident, written back once
    out_ref,                    # (T, B, PACK_PAD) f32
):
    f32 = jnp.float32
    bf16 = jnp.bfloat16
    T = u_prev_ref.shape[0]

    # constants across steps: hoist loads out of the loop
    ctx = ctx_ref[...]                       # (B, SEQ, CTX_H) f32
    mask = mask_ref[...]                     # (B, SEQ) f32, 1.0 == masked
    pad_zeros = jnp.zeros((B, PACK_PAD - PACK), f32)

    def step(t, carry):
        h_prev, c_prev = carry               # (B, HID) f32 each
        h_prev_b = h_prev.astype(bf16)

        u_prev = u_prev_ref[t]               # (B, FEAT)
        u_feat = u_feat_ref[t]               # (B, A_NUM, FEAT)
        feat_all = feat_all_ref[t]           # (B, V_NUM, FEAT)

        # ---- fused h_prev matmul: [linear_in_h(visual) | whh(LSTM)] ----
        h_mm = jnp.dot(h_prev_b, whprev_ref[...],
                       preferred_element_type=f32)        # (B, DOT + 4*HID)
        tgt_v = h_mm[:, :DOT] + bvh_ref[...]              # (B, DOT)
        gate_h = h_mm[:, DOT:DOT + 4 * HID]               # (B, 4*HID)

        # ---- VisualSoftDotAttention(h_prev, feature_all) -> feature2 ----
        feat_flat = feat_all.reshape(B * V_NUM, FEAT).astype(bf16)
        ctx_v = (jnp.dot(feat_flat, wvv_ref[...], preferred_element_type=f32)
                 + bvv_ref[...]).reshape(B, V_NUM, DOT)
        attn_v = _softmax(jnp.sum(ctx_v * tgt_v[:, None, :], axis=-1))   # (B, V)
        feature2 = jnp.sum(attn_v[:, :, None] * feat_all, axis=1)        # (B, FEAT)

        # ---- LSTMCell on [u_prev, feature2] (concat removed via split weights;
        #      adjacent accumulating dots -> MRB accumulation on v7x) ----
        gates = jnp.dot(u_prev.astype(bf16), wihu_ref[...],
                        preferred_element_type=f32)
        gates = gates + jnp.dot(feature2.astype(bf16), wihf_ref[...],
                                preferred_element_type=f32)
        gates = gates + gate_h + blstm_ref[...]
        # PyTorch LSTMCell gate order: input, forget, cell, output
        i = jax.nn.sigmoid(gates[:, 0 * HID:1 * HID])
        f = jax.nn.sigmoid(gates[:, 1 * HID:2 * HID])
        g = jnp.tanh(gates[:, 2 * HID:3 * HID])
        o = jax.nn.sigmoid(gates[:, 3 * HID:4 * HID])
        c1 = f * c_prev + i * g
        h1 = o * jnp.tanh(c1)

        # ---- fused h1 matmul: [attention linear_in | linear_out(h part)] ----
        h1_b = h1.astype(bf16)
        h1_mm = jnp.dot(h1_b, wh1_ref[...], preferred_element_type=f32)   # (B, 128)
        tgt = h1_mm[:, :CTX_H]                                            # (B, CTX_H)
        waouth_term = h1_mm[:, CTX_H:CTX_H + HID]                         # (B, HID)

        # ---- R2RSoftDotAttention(h1, ctx, ctx_mask) -> h_tilde, alpha ----
        attn = jnp.sum(ctx * tgt[:, None, :], axis=-1)                    # (B, SEQ)
        attn = jnp.where(mask > 0.5, NEG_INF, attn)                       # masked_fill_
        alpha = _softmax(attn)
        wctx = jnp.sum(alpha[:, :, None] * ctx, axis=1)                   # (B, CTX_H)
        h_tilde = jnp.tanh(
            jnp.dot(wctx.astype(bf16), waoutc_ref[...],
                    preferred_element_type=f32) + waouth_term)

        # ---- EltwiseProdScoring(h_tilde, u_features); weo applied in f32 ----
        tgt_e = (jnp.dot(h_tilde.astype(bf16), weh_ref[...],
                         preferred_element_type=f32)
                 + beh_ref[...]) * weo_ref[...]                           # (B, DOT)
        ufeat_flat = u_feat.reshape(B * A_NUM, FEAT).astype(bf16)
        ctx_e = (jnp.dot(ufeat_flat, wea_ref[...], preferred_element_type=f32)
                 + bea_ref[...]).reshape(B, A_NUM, DOT)
        logit = jnp.sum(tgt_e[:, None, :] * ctx_e, axis=-1) + beo_ref[...]  # (B, A)

        # ---- one lane-dense store per step: [h_tilde | c1 | alpha | logit | 0] ----
        packed = jnp.concatenate([h_tilde, c1, alpha, logit, pad_zeros], axis=-1)
        out_ref[t] = packed

        # dec_h_type == 'vc': h_tilde is fed back as h_0
        return (h_tilde, c1)

    lax.fori_loop(0, T, step, (h0_ref[...], c0_ref[...]), unroll=True)


# ----------------------------------------------------------------------------
# Parameter preparation (done ONCE): bf16 casts, weight splits for the removed
# concats, same-LHS RHS fusions, LSTM-bias fold.
# ----------------------------------------------------------------------------
def prepare_params(params):
    bf16 = jnp.bfloat16
    wih_t = params['wih_t']          # (LSTM_IN, 4*HID)
    waout_t = params['waout_t']      # (CTX_H + HID, HID)
    # fused RHS for the h_prev matmul: [wvh | whh]  (lane-aligned split at 256)
    w_hprev = jnp.concatenate([params['wvh_t'], params['whh_t']], axis=1)
    # fused RHS for the h1 matmul: [wain | waout_h | 0-pad] -> lane-dense 128
    w_h1 = jnp.concatenate(
        [params['wain_t'], waout_t[CTX_H:],
         jnp.zeros((HID, PACK_PAD - CTX_H - HID), jnp.float32)], axis=1)
    return dict(
        w_hprev=w_hprev.astype(bf16),
        bvh=params['bvh'],
        wvv=params['wvv_t'].astype(bf16), bvv=params['bvv'],
        wih_u=wih_t[:FEAT].astype(bf16), wih_f=wih_t[FEAT:].astype(bf16),
        b_lstm=params['bih'] + params['bhh'],
        w_h1=w_h1.astype(bf16),
        waout_c=waout_t[:CTX_H].astype(bf16),
        weh=params['weh_t'].astype(bf16), beh=params['beh'],
        wea=params['wea_t'].astype(bf16), bea=params['bea'],
        weo=params['weo_row'], beo=params['beo'],
    )


# ----------------------------------------------------------------------------
# Wrapper: full rollout of T decoder steps in one pallas_call (no grid).
# ----------------------------------------------------------------------------
def r2r_attn_decoder_rollout(prepped, u_prev_seq, u_features_seq, feature_all_seq,
                             h_0, c_0, ctx, ctx_mask):
    T = u_prev_seq.shape[0]
    mask_f = ctx_mask.astype(jnp.float32)

    weight_order = ['w_hprev', 'bvh', 'wvv', 'bvv',
                    'wih_u', 'wih_f', 'b_lstm',
                    'w_h1', 'waout_c',
                    'weh', 'beh', 'wea', 'bea', 'weo', 'beo']
    weights = [prepped[k] for k in weight_order]

    vmem_spec = pl.BlockSpec(memory_space=pltpu.MemorySpace.VMEM)
    n_in = 7 + len(weights)

    packed = pl.pallas_call(
        r2r_decoder_rollout_kernel,
        in_specs=[vmem_spec] * n_in,
        out_specs=vmem_spec,
        out_shape=jax.ShapeDtypeStruct((T, B, PACK_PAD), jnp.float32),
    )(u_prev_seq, u_features_seq, feature_all_seq, h_0, c_0, ctx, mask_f, *weights)

    h_tilde_seq = packed[:, :, 0:HID]
    c1_seq = packed[:, :, HID:2 * HID]
    alpha_seq = packed[:, :, 2 * HID:2 * HID + SEQ]
    logit_seq = packed[:, :, 2 * HID + SEQ:PACK]
    return h_tilde_seq, c1_seq, alpha_seq, logit_seq


def r2r_attn_decoder_step(prepped, u_prev, u_features, feature_all,
                          h_0, c_0, ctx, ctx_mask):
    """Single-step fallback == the original module forward (T=1 rollout)."""
    h, c, a, l = r2r_attn_decoder_rollout(
        prepped, u_prev[None], u_features[None], feature_all[None],
        h_0, c_0, ctx, ctx_mask)
    # TODO(synk): pred_f is always None in this config (decoder2feature unused).
    return h[0], c[0], a[0], l[0], None


# ----------------------------------------------------------------------------
# Plain-JAX reference mirroring the PyTorch forward (same bf16 operand casts,
# f32 accumulation; original non-split / non-fused structure).
# ----------------------------------------------------------------------------
def reference_step(params, u_prev, u_features, feature_all, h_0, c_0, ctx, ctx_mask):
    P = jax.lax.Precision.HIGHEST
    f32, bf16 = jnp.float32, jnp.bfloat16
    b = lambda x: x.astype(bf16)
    dot = lambda x, w: jnp.dot(b(x), b(w), preferred_element_type=f32)
    sm = lambda x: jax.nn.softmax(x, axis=-1)

    tgt_v = dot(h_0, params['wvh_t']) + params['bvh']
    ctx_v = jnp.einsum('bvf,fd->bvd', b(feature_all), b(params['wvv_t']),
                       preferred_element_type=f32) + params['bvv'][None]
    attn_v = sm(jnp.einsum('bvd,bd->bv', ctx_v, tgt_v, precision=P))
    feature2 = jnp.einsum('bv,bvf->bf', attn_v, feature_all, precision=P)

    x = jnp.concatenate([u_prev, feature2], axis=1)
    gates = (dot(x, params['wih_t']) + params['bih']
             + dot(h_0, params['whh_t']) + params['bhh'])
    i = jax.nn.sigmoid(gates[:, :HID]); f = jax.nn.sigmoid(gates[:, HID:2 * HID])
    g = jnp.tanh(gates[:, 2 * HID:3 * HID]); o = jax.nn.sigmoid(gates[:, 3 * HID:])
    c1 = f * c_0 + i * g
    h1 = o * jnp.tanh(c1)

    tgt = dot(h1, params['wain_t'])
    attn = jnp.einsum('bsc,bc->bs', ctx, tgt, precision=P)
    attn = jnp.where(ctx_mask, NEG_INF, attn)
    alpha = sm(attn)
    wctx = jnp.einsum('bs,bsc->bc', alpha, ctx, precision=P)
    h_tilde = jnp.tanh(dot(jnp.concatenate([wctx, h1], axis=1), params['waout_t']))

    tgt_e = dot(h_tilde, params['weh_t']) + params['beh']
    ctx_e = jnp.einsum('baf,fd->bad', b(u_features), b(params['wea_t']),
                       preferred_element_type=f32) + params['bea'][None]
    elt = tgt_e[:, None, :] * ctx_e
    logit = jnp.sum(elt * params['weo_row'][None], axis=-1) + params['beo']
    return h_tilde, c1, alpha, logit


def reference_rollout(params, u_prev_seq, u_features_seq, feature_all_seq,
                      h_0, c_0, ctx, ctx_mask):
    hs, cs, als, lgs = [], [], [], []
    h, c = h_0, c_0
    for t in range(u_prev_seq.shape[0]):
        ht, c1, al, lg = reference_step(params, u_prev_seq[t], u_features_seq[t],
                                        feature_all_seq[t], h, c, ctx, ctx_mask)
        hs.append(ht); cs.append(c1); als.append(al); lgs.append(lg)
        h, c = ht, c1        # dec_h_type == 'vc': h_tilde is fed back as h_0
    return jnp.stack(hs), jnp.stack(cs), jnp.stack(als), jnp.stack(lgs)


if __name__ == "__main__":
    key = jax.random.PRNGKey(0)
    keys = jax.random.split(key, 26)

    def w(k, shape, scale=0.05):
        return (scale * jax.random.normal(k, shape)).astype(jnp.float32)

    # deterministic synthetic parameters (shapes from the module __init__),
    # pre-transposed to (in_features, out_features); biases as (1, out).
    params = {
        # VisualSoftDotAttention(hidden_size, self.feature_size, dot_dim=256)
        'wvh_t': w(keys[0], (HID, DOT)),   'bvh': w(keys[1], (1, DOT)),
        'wvv_t': w(keys[2], (FEAT, DOT)),  'bvv': w(keys[3], (1, DOT)),
        # nn.LSTMCell(LSTM_n_in, hidden_size)
        'wih_t': w(keys[4], (LSTM_IN, 4 * HID)), 'bih': w(keys[5], (1, 4 * HID)),
        'whh_t': w(keys[6], (HID, 4 * HID)),     'bhh': w(keys[7], (1, 4 * HID)),
        # R2RSoftDotAttention(ctx_hidden_size, hidden_size)   (no biases)
        'wain_t': w(keys[8], (HID, CTX_H)),
        'waout_t': w(keys[9], (CTX_H + HID, HID)),
        # EltwiseProdScoring(hidden_size, self.feature_size, dot_dim=256)
        'weh_t': w(keys[10], (HID, DOT)),  'beh': w(keys[11], (1, DOT)),
        'wea_t': w(keys[12], (FEAT, DOT)), 'bea': w(keys[13], (1, DOT)),
        'weo_row': w(keys[14], (1, DOT)),  'beo': w(keys[15], (1, 1)),
    }
    prepped = prepare_params(params)

    # deterministic synthetic inputs (T_STEPS decode steps)
    u_prev_seq = jax.random.normal(keys[16], (T_STEPS, B, FEAT), jnp.float32)
    u_features_seq = jax.random.normal(keys[17], (T_STEPS, B, A_NUM, FEAT), jnp.float32)
    feature_all_seq = jax.random.normal(keys[18], (T_STEPS, B, V_NUM, FEAT), jnp.float32)
    h_0 = jax.random.normal(keys[19], (B, HID), jnp.float32)
    c_0 = jax.random.normal(keys[20], (B, HID), jnp.float32)
    ctx = jax.random.normal(keys[21], (B, SEQ, CTX_H), jnp.float32)
    lens = jnp.array([SEQ, SEQ - 3])
    ctx_mask = jnp.arange(SEQ)[None, :] >= lens[:, None]   # True = masked

    rollout = jax.jit(r2r_attn_decoder_rollout)
    h_seq, c_seq, a_seq, l_seq = rollout(prepped, u_prev_seq, u_features_seq,
                                         feature_all_seq, h_0, c_0, ctx, ctx_mask)
    jax.block_until_ready((h_seq, c_seq, a_seq, l_seq))

    # correctness vs plain-JAX reference (original structure, same bf16 casts)
    rh, rc, ra, rl = reference_rollout(params, u_prev_seq, u_features_seq,
                                       feature_all_seq, h_0, c_0, ctx, ctx_mask)
    for got, exp, name in ((h_seq, rh, 'h_tilde'), (c_seq, rc, 'c_1'),
                           (a_seq, ra, 'alpha'), (l_seq, rl, 'logit')):
        assert jnp.allclose(got, exp, atol=2e-2, rtol=2e-2), f"mismatch: {name}"

    # single-step fallback (== original module forward) matches rollout step 0
    h1s, c1s, a1s, l1s, pred_f = r2r_attn_decoder_step(
        prepped, u_prev_seq[0], u_features_seq[0], feature_all_seq[0],
        h_0, c_0, ctx, ctx_mask)
    assert pred_f is None
    for got, exp in ((h1s, h_seq[0]), (c1s, c_seq[0]), (a1s, a_seq[0]), (l1s, l_seq[0])):
        assert jnp.allclose(got, exp, atol=1e-4, rtol=1e-4), "single-step mismatch"

    print("KERNEL_OK")
</pallas_src>

<mosaic_0001>
module attributes {stable_mosaic.version = 11 : i64} {
  func.func @r2r_decoder_rollout_kernel(%arg0: memref<4x2x192xf32, #tpu.memory_space<vmem>>, %arg1: memref<4x2x8x192xf32, #tpu.memory_space<vmem>>, %arg2: memref<4x2x8x192xf32, #tpu.memory_space<vmem>>, %arg3: memref<2x32xf32, #tpu.memory_space<vmem>>, %arg4: memref<2x32xf32, #tpu.memory_space<vmem>>, %arg5: memref<2x8x64xf32, #tpu.memory_space<vmem>>, %arg6: memref<2x8xf32, #tpu.memory_space<vmem>>, %arg7: memref<32x384xbf16, #tpu.memory_space<vmem>>, %arg8: memref<1x256xf32, #tpu.memory_space<vmem>>, %arg9: memref<192x256xbf16, #tpu.memory_space<vmem>>, %arg10: memref<1x256xf32, #tpu.memory_space<vmem>>, %arg11: memref<192x128xbf16, #tpu.memory_space<vmem>>, %arg12: memref<192x128xbf16, #tpu.memory_space<vmem>>, %arg13: memref<1x128xf32, #tpu.memory_space<vmem>>, %arg14: memref<32x128xbf16, #tpu.memory_space<vmem>>, %arg15: memref<64x32xbf16, #tpu.memory_space<vmem>>, %arg16: memref<32x256xbf16, #tpu.memory_space<vmem>>, %arg17: memref<1x256xf32, #tpu.memory_space<vmem>>, %arg18: memref<192x256xbf16, #tpu.memory_space<vmem>>, %arg19: memref<1x256xf32, #tpu.memory_space<vmem>>, %arg20: memref<1x256xf32, #tpu.memory_space<vmem>>, %arg21: memref<1x1xf32, #tpu.memory_space<vmem>>, %arg22: memref<4x2x128xf32, #tpu.memory_space<vmem>>) attributes {dimension_semantics = [], scalar_prefetch = 0 : i64, scratch_operands = 0 : i64, tpu.core_type = #tpu.core_type<tc>} {
    %c0 = arith.constant 0 : index
    %c0_0 = arith.constant 0 : index
    %c0_1 = arith.constant 0 : index
    %0 = vector.load %arg5[%c0, %c0_0, %c0_1] : memref<2x8x64xf32, #tpu.memory_space<vmem>>, vector<2x8x64xf32>
    %c0_2 = arith.constant 0 : index
    %c0_3 = arith.constant 0 : index
    %1 = vector.load %arg6[%c0_2, %c0_3] : memref<2x8xf32, #tpu.memory_space<vmem>>, vector<2x8xf32>
    %cst = arith.constant 0.000000e+00 : f32
    %2 = vector.broadcast %cst : f32 to vector<2x48xf32>
    %c0_4 = arith.constant 0 : index
    %c0_5 = arith.constant 0 : index
    %3 = vector.load %arg3[%c0_4, %c0_5] : memref<2x32xf32, #tpu.memory_space<vmem>>, vector<2x32xf32>
    %c0_6 = arith.constant 0 : index
    %c0_7 = arith.constant 0 : index
    %4 = vector.load %arg4[%c0_6, %c0_7] : memref<2x32xf32, #tpu.memory_space<vmem>>, vector<2x32xf32>
    %c0_i32 = arith.constant 0 : i32
    %5 = arith.truncf %3 : vector<2x32xf32> to vector<2x32xbf16>
    %6 = arith.index_cast %c0_i32 : i32 to index
    %c0_8 = arith.constant 0 : index
    %c0_9 = arith.constant 0 : index
    %7 = vector.load %arg0[%6, %c0_8, %c0_9] : memref<4x2x192xf32, #tpu.memory_space<vmem>>, vector<1x2x192xf32>
    %8 = vector.shape_cast %7 : vector<1x2x192xf32> to vector<2x192xf32>
    %9 = arith.index_cast %c0_i32 : i32 to index
    %c0_10 = arith.constant 0 : index
    %c0_11 = arith.constant 0 : index
    %c0_12 = arith.constant 0 : index
    %10 = vector.load %arg1[%9, %c0_10, %c0_11, %c0_12] : memref<4x2x8x192xf32, #tpu.memory_space<vmem>>, vector<1x2x8x192xf32>
    %11 = vector.shape_cast %10 : vector<1x2x8x192xf32> to vector<2x8x192xf32>
    %12 = arith.index_cast %c0_i32 : i32 to index
    %c0_13 = arith.constant 0 : index
    %c0_14 = arith.constant 0 : index
    %c0_15 = arith.constant 0 : index
    %13 = vector.load %arg2[%12, %c0_13, %c0_14, %c0_15] : memref<4x2x8x192xf32, #tpu.memory_space<vmem>>, vector<1x2x8x192xf32>
    %14 = vector.shape_cast %13 : vector<1x2x8x192xf32> to vector<2x8x192xf32>
    %c0_16 = arith.constant 0 : index
    %c0_17 = arith.constant 0 : index
    %15 = vector.load %arg7[%c0_16, %c0_17] : memref<32x384xbf16, #tpu.memory_space<vmem>>, vector<32x384xbf16>
    %cst_18 = arith.constant dense<0.000000e+00> : vector<2x384xf32>
    %16 = tpu.matmul %5, %15, %cst_18 {dimension_numbers = #tpu.dot_dimension_numbers<[1], [0], [0], [1], [0, 0, 1, 1], [], []>} : vector<2x32xbf16>, vector<32x384xbf16>, vector<2x384xf32> -> vector<2x384xf32>
    %17 = vector.extract_strided_slice %16 {offsets = [0, 0], sizes = [2, 256], strides = [1, 1]} : vector<2x384xf32> to vector<2x256xf32>
    %c0_19 = arith.constant 0 : index
    %c0_20 = arith.constant 0 : index
    %18 = vector.load %arg8[%c0_19, %c0_20] : memref<1x256xf32, #tpu.memory_space<vmem>>, vector<1x256xf32>
    %19 = vector.broadcast %18 : vector<1x256xf32> to vector<2x256xf32>
    %20 = arith.addf %17, %19 : vector<2x256xf32>
    %21 = vector.extract_strided_slice %16 {offsets = [0, 256], sizes = [2, 128], strides = [1, 1]} : vector<2x384xf32> to vector<2x128xf32>
    %22 = vector.shape_cast %14 : vector<2x8x192xf32> to vector<16x192xf32>
    %23 = arith.truncf %22 : vector<16x192xf32> to vector<16x192xbf16>
    %c0_21 = arith.constant 0 : index
    %c0_22 = arith.constant 0 : index
    %24 = vector.load %arg9[%c0_21, %c0_22] : memref<192x256xbf16, #tpu.memory_space<vmem>>, vector<192x256xbf16>
    %cst_23 = arith.constant dense<0.000000e+00> : vector<16x256xf32>
    %25 = tpu.matmul %23, %24, %cst_23 {dimension_numbers = #tpu.dot_dimension_numbers<[1], [0], [0], [1], [0, 0, 1, 1], [], []>} : vector<16x192xbf16>, vector<192x256xbf16>, vector<16x256xf32> -> vector<16x256xf32>
    %c0_24 = arith.constant 0 : index
    %c0_25 = arith.constant 0 : index
    %26 = vector.load %arg10[%c0_24, %c0_25] : memref<1x256xf32, #tpu.memory_space<vmem>>, vector<1x256xf32>
    %27 = vector.broadcast %26 : vector<1x256xf32> to vector<16x256xf32>
    %28 = arith.addf %25, %27 : vector<16x256xf32>
    %29 = vector.shape_cast %28 : vector<16x256xf32> to vector<2x8x256xf32>
    %30 = vector.shape_cast %20 : vector<2x256xf32> to vector<2x1x256xf32>
    %31 = vector.broadcast %30 : vector<2x1x256xf32> to vector<2x8x256xf32>
    %32 = arith.mulf %29, %31 : vector<2x8x256xf32>
    %cst_26 = arith.constant dense<0.000000e+00> : vector<2x8xf32>
    %33 = vector.multi_reduction <add>, %32, %cst_26 [2] : vector<2x8x256xf32> to vector<2x8xf32>
    %cst_27 = arith.constant dense<0xFF800000> : vector<2xf32>
    %34 = vector.multi_reduction <maximumf>, %33, %cst_27 [1] : vector<2x8xf32> to vector<2xf32>
    %35 = vector.shape_cast %34 : vector<2xf32> to vector<2x1xf32>
    %36 = vector.broadcast %35 : vector<2x1xf32> to vector<2x8xf32>
    %37 = arith.subf %33, %36 : vector<2x8xf32>
    %38 = math.exp %37 : vector<2x8xf32>
    %cst_28 = arith.constant dense<0.000000e+00> : vector<2xf32>
    %39 = vector.multi_reduction <add>, %38, %cst_28 [1] : vector<2x8xf32> to vector<2xf32>
    %40 = vector.shape_cast %39 : vector<2xf32> to vector<2x1xf32>
    %41 = tpu.reciprocal %40 {approx = true} : vector<2x1xf32> -> vector<2x1xf32>
    %42 = vector.broadcast %41 : vector<2x1xf32> to vector<2x8xf32>
    %43 = arith.mulf %38, %42 : vector<2x8xf32>
    %44 = vector.shape_cast %43 : vector<2x8xf32> to vector<2x8x1xf32>
    %45 = vector.broadcast %44 : vector<2x8x1xf32> to vector<2x8x192xf32>
    %46 = arith.mulf %45, %14 : vector<2x8x192xf32>
    %cst_29 = arith.constant dense<0.000000e+00> : vector<2x192xf32>
    %47 = vector.multi_reduction <add>, %46, %cst_29 [1] : vector<2x8x192xf32> to vector<2x192xf32>
    %48 = arith.truncf %8 : vector<2x192xf32> to vector<2x192xbf16>
    %c0_30 = arith.constant 0 : index
    %c0_31 = arith.constant 0 : index
    %49 = vector.load %arg11[%c0_30, %c0_31] : memref<192x128xbf16, #tpu.memory_space<vmem>>, vector<192x128xbf16>
    %cst_32 = arith.constant dense<0.000000e+00> : vector<2x128xf32>
    %50 = tpu.matmul %48, %49, %cst_32 {dimension_numbers = #tpu.dot_dimension_numbers<[1], [0], [0], [1], [0, 0, 1, 1], [], []>} : vector<2x192xbf16>, vector<192x128xbf16>, vector<2x128xf32> -> vector<2x128xf32>
    %51 = arith.truncf %47 : vector<2x192xf32> to vector<2x192xbf16>
    %c0_33 = arith.constant 0 : index
    %c0_34 = arith.constant 0 : index
    %52 = vector.load %arg12[%c0_33, %c0_34] : memref<192x128xbf16, #tpu.memory_space<vmem>>, vector<192x128xbf16>
    %cst_35 = arith.constant dense<0.000000e+00> : vector<2x128xf32>
    %53 = tpu.matmul %51, %52, %cst_35 {dimension_numbers = #tpu.dot_dimension_numbers<[1], [0], [0], [1], [0, 0, 1, 1], [], []>} : vector<2x192xbf16>, vector<192x128xbf16>, vector<2x128xf32> -> vector<2x128xf32>
    %54 = arith.addf %50, %53 : vector<2x128xf32>
    %55 = arith.addf %54, %21 : vector<2x128xf32>
    %c0_36 = arith.constant 0 : index
    %c0_37 = arith.constant 0 : index
    %56 = vector.load %arg13[%c0_36, %c0_37] : memref<1x128xf32, #tpu.memory_space<vmem>>, vector<1x128xf32>
    %57 = vector.broadcast %56 : vector<1x128xf32> to vector<2x128xf32>
    %58 = arith.addf %55, %57 : vector<2x128xf32>
    %59 = vector.extract_strided_slice %58 {offsets = [0, 0], sizes = [2, 32], strides = [1, 1]} : vector<2x128xf32> to vector<2x32xf32>
    %60 = arith.negf %59 : vector<2x32xf32>
    %61 = math.exp %60 : vector<2x32xf32>
    %cst_38 = arith.constant 1.000000e+00 : f32
    %62 = vector.broadcast %cst_38 : f32 to vector<2x32xf32>
    %63 = arith.addf %62, %61 : vector<2x32xf32>
    %64 = arith.divf %62, %63 : vector<2x32xf32>
    %65 = vector.extract_strided_slice %58 {offsets = [0, 32], sizes = [2, 32], strides = [1, 1]} : vector<2x128xf32> to vector<2x32xf32>
    %66 = arith.negf %65 : vector<2x32xf32>
    %67 = math.exp %66 : vector<2x32xf32>
    %cst_39 = arith.constant 1.000000e+00 : f32
    %68 = vector.broadcast %cst_39 : f32 to vector<2x32xf32>
    %69 = arith.addf %68, %67 : vector<2x32xf32>
    %70 = arith.divf %68, %69 : vector<2x32xf32>
    %71 = vector.extract_strided_slice %58 {offsets = [0, 64], sizes = [2, 32], strides = [1, 1]} : vector<2x128xf32> to vector<2x32xf32>
    %72 = math.tanh %71 : vector<2x32xf32>
    %73 = vector.extract_strided_slice %58 {offsets = [0, 96], sizes = [2, 32], strides = [1, 1]} : vector<2x128xf32> to vector<2x32xf32>
    %74 = arith.negf %73 : vector<2x32xf32>
    %75 = math.exp %74 : vector<2x32xf32>
    %cst_40 = arith.constant 1.000000e+00 : f32
    %76 = vector.broadcast %cst_40 : f32 to vector<2x32xf32>
    %77 = arith.addf %76, %75 : vector<2x32xf32>
    %78 = arith.divf %76, %77 : vector<2x32xf32>
    %79 = arith.mulf %70, %4 : vector<2x32xf32>
    %80 = arith.mulf %64, %72 : vector<2x32xf32>
    %81 = arith.addf %79, %80 : vector<2x32xf32>
    %82 = math.tanh %81 : vector<2x32xf32>
    %83 = arith.mulf %78, %82 : vector<2x32xf32>
    %84 = arith.truncf %83 : vector<2x32xf32> to vector<2x32xbf16>
    %c0_41 = arith.constant 0 : index
    %c0_42 = arith.constant 0 : index
    %85 = vector.load %arg14[%c0_41, %c0_42] : memref<32x128xbf16, #tpu.memory_space<vmem>>, vector<32x128xbf16>
    %cst_43 = arith.constant dense<0.000000e+00> : vector<2x128xf32>
    %86 = tpu.matmul %84, %85, %cst_43 {dimension_numbers = #tpu.dot_dimension_numbers<[1], [0], [0], [1], [0, 0, 1, 1], [], []>} : vector<2x32xbf16>, vector<32x128xbf16>, vector<2x128xf32> -> vector<2x128xf32>
    %87 = vector.extract_strided_slice %86 {offsets = [0, 0], sizes = [2, 64], strides = [1, 1]} : vector<2x128xf32> to vector<2x64xf32>
    %88 = vector.extract_strided_slice %86 {offsets = [0, 64], sizes = [2, 32], strides = [1, 1]} : vector<2x128xf32> to vector<2x32xf32>
    %89 = vector.shape_cast %87 : vector<2x64xf32> to vector<2x1x64xf32>
    %90 = vector.broadcast %89 : vector<2x1x64xf32> to vector<2x8x64xf32>
    %91 = arith.mulf %0, %90 : vector<2x8x64xf32>
    %cst_44 = arith.constant dense<0.000000e+00> : vector<2x8xf32>
    %92 = vector.multi_reduction <add>, %91, %cst_44 [2] : vector<2x8x64xf32> to vector<2x8xf32>
    %cst_45 = arith.constant 5.000000e-01 : f32
    %93 = vector.broadcast %cst_45 : f32 to vector<2x8xf32>
    %94 = arith.cmpf ogt, %1, %93 : vector<2x8xf32>
    %cst_46 = arith.constant -1.000000e+30 : f32
    %95 = vector.broadcast %cst_46 : f32 to vector<2x8xf32>
    %96 = arith.select %94, %95, %92 : vector<2x8xi1>, vector<2x8xf32>
    %cst_47 = arith.constant dense<0xFF800000> : vector<2xf32>
    %97 = vector.multi_reduction <maximumf>, %96, %cst_47 [1] : vector<2x8xf32> to vector<2xf32>
    %98 = vector.shape_cast %97 : vector<2xf32> to vector<2x1xf32>
    %99 = vector.broadcast %98 : vector<2x1xf32> to vector<2x8xf32>
    %100 = arith.subf %96, %99 : vector<2x8xf32>
    %101 = math.exp %100 : vector<2x8xf32>
    %cst_48 = arith.constant dense<0.000000e+00> : vector<2xf32>
    %102 = vector.multi_reduction <add>, %101, %cst_48 [1] : vector<2x8xf32> to vector<2xf32>
    %103 = vector.shape_cast %102 : vector<2xf32> to vector<2x1xf32>
    %104 = tpu.reciprocal %103 {approx = true} : vector<2x1xf32> -> vector<2x1xf32>
    %105 = vector.broadcast %104 : vector<2x1xf32> to vector<2x8xf32>
    %106 = arith.mulf %101, %105 : vector<2x8xf32>
    %107 = vector.shape_cast %106 : vector<2x8xf32> to vector<2x8x1xf32>
    %108 = vector.broadcast %107 : vector<2x8x1xf32> to vector<2x8x64xf32>
    %109 = arith.mulf %108, %0 : vector<2x8x64xf32>
    %cst_49 = arith.constant dense<0.000000e+00> : vector<2x64xf32>
    %110 = vector.multi_reduction <add>, %109, %cst_49 [1] : vector<2x8x64xf32> to vector<2x64xf32>
    %111 = arith.truncf %110 : vector<2x64xf32> to vector<2x64xbf16>
    %c0_50 = arith.constant 0 : index
    %c0_51 = arith.constant 0 : index
    %112 = vector.load %arg15[%c0_50, %c0_51] : memref<64x32xbf16, #tpu.memory_space<vmem>>, vector<64x32xbf16>
    %cst_52 = arith.constant dense<0.000000e+00> : vector<2x32xf32>
    %113 = tpu.matmul %111, %112, %cst_52 {dimension_numbers = #tpu.dot_dimension_numbers<[1], [0], [0], [1], [0, 0, 1, 1], [], []>} : vector<2x64xbf16>, vector<64x32xbf16>, vector<2x32xf32> -> vector<2x32xf32>
    %114 = arith.addf %113, %88 : vector<2x32xf32>
    %115 = math.tanh %114 : vector<2x32xf32>
    %116 = arith.truncf %115 : vector<2x32xf32> to vector<2x32xbf16>
    %c0_53 = arith.constant 0 : index
    %c0_54 = arith.constant 0 : index
    %117 = vector.load %arg16[%c0_53, %c0_54] : memref<32x256xbf16, #tpu.memory_space<vmem>>, vector<32x256xbf16>
    %cst_55 = arith.constant dense<0.000000e+00> : vector<2x256xf32>
    %118 = tpu.matmul %116, %117, %cst_55 {dimension_numbers = #tpu.dot_dimension_numbers<[1], [0], [0], [1], [0, 0, 1, 1], [], []>} : vector<2x32xbf16>, vector<32x256xbf16>, vector<2x256xf32> -> vector<2x256xf32>
    %c0_56 = arith.constant 0 : index
    %c0_57 = arith.constant 0 : index
    %119 = vector.load %arg17[%c0_56, %c0_57] : memref<1x256xf32, #tpu.memory_space<vmem>>, vector<1x256xf32>
    %120 = vector.broadcast %119 : vector<1x256xf32> to vector<2x256xf32>
    %121 = arith.addf %118, %120 : vector<2x256xf32>
    %c0_58 = arith.constant 0 : index
    %c0_59 = arith.constant 0 : index
    %122 = vector.load %arg20[%c0_58, %c0_59] : memref<1x256xf32, #tpu.memory_space<vmem>>, vector<1x256xf32>
    %123 = vector.broadcast %122 : vector<1x256xf32> to vector<2x256xf32>
    %124 = arith.mulf %121, %123 : vector<2x256xf32>
    %125 = vector.shape_cast %11 : vector<2x8x192xf32> to vector<16x192xf32>
    %126 = arith.truncf %125 : vector<16x192xf32> to vector<16x192xbf16>
    %c0_60 = arith.constant 0 : index
    %c0_61 = arith.constant 0 : index
    %127 = vector.load %arg18[%c0_60, %c0_61] : memref<192x256xbf16, #tpu.memory_space<vmem>>, vector<192x256xbf16>
    %cst_62 = arith.constant dense<0.000000e+00> : vector<16x256xf32>
    %128 = tpu.matmul %126, %127, %cst_62 {dimension_numbers = #tpu.dot_dimension_numbers<[1], [0], [0], [1], [0, 0, 1, 1], [], []>} : vector<16x192xbf16>, vector<192x256xbf16>, vector<16x256xf32> -> vector<16x256xf32>
    %c0_63 = arith.constant 0 : index
    %c0_64 = arith.constant 0 : index
    %129 = vector.load %arg19[%c0_63, %c0_64] : memref<1x256xf32, #tpu.memory_space<vmem>>, vector<1x256xf32>
    %130 = vector.broadcast %129 : vector<1x256xf32> to vector<16x256xf32>
    %131 = arith.addf %128, %130 : vector<16x256xf32>
    %132 = vector.shape_cast %131 : vector<16x256xf32> to vector<2x8x256xf32>
    %133 = vector.shape_cast %124 : vector<2x256xf32> to vector<2x1x256xf32>
    %134 = vector.broadcast %133 : vector<2x1x256xf32> to vector<2x8x256xf32>
    %135 = arith.mulf %134, %132 : vector<2x8x256xf32>
    %cst_65 = arith.constant dense<0.000000e+00> : vector<2x8xf32>
    %136 = vector.multi_reduction <add>, %135, %cst_65 [2] : vector<2x8x256xf32> to vector<2x8xf32>
    %c0_66 = arith.constant 0 : index
    %c0_67 = arith.constant 0 : index
    %137 = vector.load %arg21[%c0_66, %c0_67] : memref<1x1xf32, #tpu.memory_space<vmem>>, vector<1x1xf32>
    %138 = vector.broadcast %137 : vector<1x1xf32> to vector<2x8xf32>
    %139 = arith.addf %136, %138 : vector<2x8xf32>
    %140 = tpu.concatenate %115, %81, %106, %139, %2 in 1 : vector<2x32xf32>, vector<2x32xf32>, vector<2x8xf32>, vector<2x8xf32>, vector<2x48xf32> -> vector<2x128xf32>
    %141 = arith.index_cast %c0_i32 : i32 to index
    %c0_68 = arith.constant 0 : index
    %c0_69 = arith.constant 0 : index
    %142 = vector.load %arg22[%141, %c0_68, %c0_69] : memref<4x2x128xf32, #tpu.memory_space<vmem>>, vector<1x2x128xf32>
    %143 = vector.shape_cast %142 : vector<1x2x128xf32> to vector<2x128xf32>
    %144 = vector.shape_cast %140 : vector<2x128xf32> to vector<1x2x128xf32>
    tpu.vector_store %arg22[%141, %c0_68, %c0_69], %144 {strides = array<i32>} : memref<4x2x128xf32, #tpu.memory_space<vmem>>, vector<1x2x128xf32>,
    %c1_i32 = arith.constant 1 : i32
    %145 = arith.truncf %115 : vector<2x32xf32> to vector<2x32xbf16>
    %146 = arith.index_cast %c1_i32 : i32 to index
    %c0_70 = arith.constant 0 : index
    %c0_71 = arith.constant 0 : index
    %147 = vector.load %arg0[%146, %c0_70, %c0_71] : memref<4x2x192xf32, #tpu.memory_space<vmem>>, vector<1x2x192xf32>
    %148 = vector.shape_cast %147 : vector<1x2x192xf32> to vector<2x192xf32>
    %149 = arith.index_cast %c1_i32 : i32 to index
    %c0_72 = arith.constant 0 : index
    %c0_73 = arith.constant 0 : index
    %c0_74 = arith.constant 0 : index
    %150 = vector.load %arg1[%149, %c0_72, %c0_73, %c0_74] : memref<4x2x8x192xf32, #tpu.memory_space<vmem>>, vector<1x2x8x192xf32>
    %151 = vector.shape_cast %150 : vector<1x2x8x192xf32> to vector<2x8x192xf32>
    %152 = arith.index_cast %c1_i32 : i32 to index
    %c0_75 = arith.constant 0 : index
    %c0_76 = arith.constant 0 : index
    %c0_77 = arith.constant 0 : index
    %153 = vector.load %arg2[%152, %c0_75, %c0_76, %c0_77] : memref<4x2x8x192xf32, #tpu.memory_space<vmem>>, vector<1x2x8x192xf32>
    %154 = vector.shape_cast %153 : vector<1x2x8x192xf32> to vector<2x8x192xf32>
    %c0_78 = arith.constant 0 : index
    %c0_79 = arith.constant 0 : index
    %155 = vector.load %arg7[%c0_78, %c0_79] : memref<32x384xbf16, #tpu.memory_space<vmem>>, vector<32x384xbf16>
    %cst_80 = arith.constant dense<0.000000e+00> : vector<2x384xf32>
    %156 = tpu.matmul %145, %155, %cst_80 {dimension_numbers = #tpu.dot_dimension_numbers<[1], [0], [0], [1], [0, 0, 1, 1], [], []>} : vector<2x32xbf16>, vector<32x384xbf16>, vector<2x384xf32> -> vector<2x384xf32>
    %157 = vector.extract_strided_slice %156 {offsets = [0, 0], sizes = [2, 256], strides = [1, 1]} : vector<2x384xf32> to vector<2x256xf32>
    %c0_81 = arith.constant 0 : index
    %c0_82 = arith.constant 0 : index
    %158 = vector.load %arg8[%c0_81, %c0_82] : memref<1x256xf32, #tpu.memory_space<vmem>>, vector<1x256xf32>
    %159 = vector.broadcast %158 : vector<1x256xf32> to vector<2x256xf32>
    %160 = arith.addf %157, %159 : vector<2x256xf32>
    %161 = vector.extract_strided_slice %156 {offsets = [0, 256], sizes = [2, 128], strides = [1, 1]} : vector<2x384xf32> to vector<2x128xf32>
    %162 = vector.shape_cast %154 : vector<2x8x192xf32> to vector<16x192xf32>
    %163 = arith.truncf %162 : vector<16x192xf32> to vector<16x192xbf16>
    %c0_83 = arith.constant 0 : index
    %c0_84 = arith.constant 0 : index
    %164 = vector.load %arg9[%c0_83, %c0_84] : memref<192x256xbf16, #tpu.memory_space<vmem>>, vector<192x256xbf16>
    %cst_85 = arith.constant dense<0.000000e+00> : vector<16x256xf32>
    %165 = tpu.matmul %163, %164, %cst_85 {dimension_numbers = #tpu.dot_dimension_numbers<[1], [0], [0], [1], [0, 0, 1, 1], [], []>} : vector<16x192xbf16>, vector<192x256xbf16>, vector<16x256xf32> -> vector<16x256xf32>
    %c0_86 = arith.constant 0 : index
    %c0_87 = arith.constant 0 : index
    %166 = vector.load %arg10[%c0_86, %c0_87] : memref<1x256xf32, #tpu.memory_space<vmem>>, vector<1x256xf32>
    %167 = vector.broadcast %166 : vector<1x256xf32> to vector<16x256xf32>
    %168 = arith.addf %165, %167 : vector<16x256xf32>
    %169 = vector.shape_cast %168 : vector<16x256xf32> to vector<2x8x256xf32>
    %170 = vector.shape_cast %160 : vector<2x256xf32> to vector<2x1x256xf32>
    %171 = vector.broadcast %170 : vector<2x1x256xf32> to vector<2x8x256xf32>
    %172 = arith.mulf %169, %171 : vector<2x8x256xf32>
    %cst_88 = arith.constant dense<0.000000e+00> : vector<2x8xf32>
    %173 = vector.multi_reduction <add>, %172, %cst_88 [2] : vector<2x8x256xf32> to vector<2x8xf32>
    %cst_89 = arith.constant dense<0xFF800000> : vector<2xf32>
    %174 = vector.multi_reduction <maximumf>, %173, %cst_89 [1] : vector<2x8xf32> to vector<2xf32>
    %175 = vector.shape_cast %174 : vector<2xf32> to vector<2x1xf32>
    %176 = vector.broadcast %175 : vector<2x1xf32> to vector<2x8xf32>
    %177 = arith.subf %173, %176 : vector<2x8xf32>
    %178 = math.exp %177 : vector<2x8xf32>
    %cst_90 = arith.constant dense<0.000000e+00> : vector<2xf32>
    %179 = vector.multi_reduction <add>, %178, %cst_90 [1] : vector<2x8xf32> to vector<2xf32>
    %180 = vector.shape_cast %179 : vector<2xf32> to vector<2x1xf32>
    %181 = tpu.reciprocal %180 {approx = true} : vector<2x1xf32> -> vector<2x1xf32>
    %182 = vector.broadcast %181 : vector<2x1xf32> to vector<2x8xf32>
    %183 = arith.mulf %178, %182 : vector<2x8xf32>
    %184 = vector.shape_cast %183 : vector<2x8xf32> to vector<2x8x1xf32>
    %185 = vector.broadcast %184 : vector<2x8x1xf32> to vector<2x8x192xf32>
    %186 = arith.mulf %185, %154 : vector<2x8x192xf32>
    %cst_91 = arith.constant dense<0.000000e+00> : vector<2x192xf32>
    %187 = vector.multi_reduction <add>, %186, %cst_91 [1] : vector<2x8x192xf32> to vector<2x192xf32>
    %188 = arith.truncf %148 : vector<2x192xf32> to vector<2x192xbf16>
    %c0_92 = arith.constant 0 : index
    %c0_93 = arith.constant 0 : index
    %189 = vector.load %arg11[%c0_92, %c0_93] : memref<192x128xbf16, #tpu.memory_space<vmem>>, vector<192x128xbf16>
    %cst_94 = arith.constant dense<0.000000e+00> : vector<2x128xf32>
    %190 = tpu.matmul %188, %189, %cst_94 {dimension_numbers = #tpu.dot_dimension_numbers<[1], [0], [0], [1], [0, 0, 1, 1], [], []>} : vector<2x192xbf16>, vector<192x128xbf16>, vector<2x128xf32> -> vector<2x128xf32>
    %191 = arith.truncf %187 : vector<2x192xf32> to vector<2x192xbf16>
    %c0_95 = arith.constant 0 : index
    %c0_96 = arith.constant 0 : index
    %192 = vector.load %arg12[%c0_95, %c0_96] : memref<192x128xbf16, #tpu.memory_space<vmem>>, vector<192x128xbf16>
    %cst_97 = arith.constant dense<0.000000e+00> : vector<2x128xf32>
    %193 = tpu.matmul %191, %192, %cst_97 {dimension_numbers = #tpu.dot_dimension_numbers<[1], [0], [0], [1], [0, 0, 1, 1], [], []>} : vector<2x192xbf16>, vector<192x128xbf16>, vector<2x128xf32> -> vector<2x128xf32>
    %194 = arith.addf %190, %193 : vector<2x128xf32>
    %195 = arith.addf %194, %161 : vector<2x128xf32>
    %c0_98 = arith.constant 0 : index
    %c0_99 = arith.constant 0 : index
    %196 = vector.load %arg13[%c0_98, %c0_99] : memref<1x128xf32, #tpu.memory_space<vmem>>, vector<1x128xf32>
    %197 = vector.broadcast %196 : vector<1x128xf32> to vector<2x128xf32>
    %198 = arith.addf %195, %197 : vector<2x128xf32>
    %199 = vector.extract_strided_slice %198 {offsets = [0, 0], sizes = [2, 32], strides = [1, 1]} : vector<2x128xf32> to vector<2x32xf32>
    %200 = arith.negf %199 : vector<2x32xf32>
    %201 = math.exp %200 : vector<2x32xf32>
    %cst_100 = arith.constant 1.000000e+00 : f32
    %202 = vector.broadcast %cst_100 : f32 to vector<2x32xf32>
    %203 = arith.addf %202, %201 : vector<2x32xf32>
    %204 = arith.divf %202, %203 : vector<2x32xf32>
    %205 = vector.extract_strided_slice %198 {offsets = [0, 32], sizes = [2, 32], strides = [1, 1]} : vector<2x128xf32> to vector<2x32xf32>
    %206 = arith.negf %205 : vector<2x32xf32>
    %207 = math.exp %206 : vector<2x32xf32>
    %cst_101 = arith.constant 1.000000e+00 : f32
    %208 = vector.broadcast %cst_101 : f32 to vector<2x32xf32>
    %209 = arith.addf %208, %207 : vector<2x32xf32>
    %210 = arith.divf %208, %209 : vector<2x32xf32>
    %211 = vector.extract_strided_slice %198 {offsets = [0, 64], sizes = [2, 32], strides = [1, 1]} : vector<2x128xf32> to vector<2x32xf32>
    %212 = math.tanh %211 : vector<2x32xf32>
    %213 = vector.extract_strided_slice %198 {offsets = [0, 96], sizes = [2, 32], strides = [1, 1]} : vector<2x128xf32> to vector<2x32xf32>
    %214 = arith.negf %213 : vector<2x32xf32>
    %215 = math.exp %214 : vector<2x32xf32>
    %cst_102 = arith.constant 1.000000e+00 : f32
    %216 = vector.broadcast %cst_102 : f32 to vector<2x32xf32>
    %217 = arith.addf %216, %215 : vector<2x32xf32>
    %218 = arith.divf %216, %217 : vector<2x32xf32>
    %219 = arith.mulf %210, %81 : vector<2x32xf32>
    %220 = arith.mulf %204, %212 : vector<2x32xf32>
    %221 = arith.addf %219, %220 : vector<2x32xf32>
    %222 = math.tanh %221 : vector<2x32xf32>
    %223 = arith.mulf %218, %222 : vector<2x32xf32>
    %224 = arith.truncf %223 : vector<2x32xf32> to vector<2x32xbf16>
    %c0_103 = arith.constant 0 : index
    %c0_104 = arith.constant 0 : index
    %225 = vector.load %arg14[%c0_103, %c0_104] : memref<32x128xbf16, #tpu.memory_space<vmem>>, vector<32x128xbf16>
    %cst_105 = arith.constant dense<0.000000e+00> : vector<2x128xf32>
    %226 = tpu.matmul %224, %225, %cst_105 {dimension_numbers = #tpu.dot_dimension_numbers<[1], [0], [0], [1], [0, 0, 1, 1], [], []>} : vector<2x32xbf16>, vector<32x128xbf16>, vector<2x128xf32> -> vector<2x128xf32>
    %227 = vector.extract_strided_slice %226 {offsets = [0, 0], sizes = [2, 64], strides = [1, 1]} : vector<2x128xf32> to vector<2x64xf32>
    %228 = vector.extract_strided_slice %226 {offsets = [0, 64], sizes = [2, 32], strides = [1, 1]} : vector<2x128xf32> to vector<2x32xf32>
    %229 = vector.shape_cast %227 : vector<2x64xf32> to vector<2x1x64xf32>
    %230 = vector.broadcast %229 : vector<2x1x64xf32> to vector<2x8x64xf32>
    %231 = arith.mulf %0, %230 : vector<2x8x64xf32>
    %cst_106 = arith.constant dense<0.000000e+00> : vector<2x8xf32>
    %232 = vector.multi_reduction <add>, %231, %cst_106 [2] : vector<2x8x64xf32> to vector<2x8xf32>
    %cst_107 = arith.constant 5.000000e-01 : f32
    %233 = vector.broadcast %cst_107 : f32 to vector<2x8xf32>
    %234 = arith.cmpf ogt, %1, %233 : vector<2x8xf32>
    %cst_108 = arith.constant -1.000000e+30 : f32
    %235 = vector.broadcast %cst_108 : f32 to vector<2x8xf32>
    %236 = arith.select %234, %235, %232 : vector<2x8xi1>, vector<2x8xf32>
    %cst_109 = arith.constant dense<0xFF800000> : vector<2xf32>
    %237 = vector.multi_reduction <maximumf>, %236, %cst_109 [1] : vector<2x8xf32> to vector<2xf32>
    %238 = vector.shape_cast %237 : vector<2xf32> to vector<2x1xf32>
    %239 = vector.broadcast %238 : vector<2x1xf32> to vector<2x8xf32>
    %240 = arith.subf %236, %239 : vector<2x8xf32>
    %241 = math.exp %240 : vector<2x8xf32>
    %cst_110 = arith.constant dense<0.000000e+00> : vector<2xf32>
    %242 = vector.multi_reduction <add>, %241, %cst_110 [1] : vector<2x8xf32> to vector<2xf32>
    %243 = vector.shape_cast %242 : vector<2xf32> to vector<2x1xf32>
    %244 = tpu.reciprocal %243 {approx = true} : vector<2x1xf32> -> vector<2x1xf32>
    %245 = vector.broadcast %244 : vector<2x1xf32> to vector<2x8xf32>
    %246 = arith.mulf %241, %245 : vector<2x8xf32>
    %247 = vector.shape_cast %246 : vector<2x8xf32> to vector<2x8x1xf32>
    %248 = vector.broadcast %247 : vector<2x8x1xf32> to vector<2x8x64xf32>
    %249 = arith.mulf %248, %0 : vector<2x8x64xf32>
    %cst_111 = arith.constant dense<0.000000e+00> : vector<2x64xf32>
    %250 = vector.multi_reduction <add>, %249, %cst_111 [1] : vector<2x8x64xf32> to vector<2x64xf32>
    %251 = arith.truncf %250 : vector<2x64xf32> to vector<2x64xbf16>
    %c0_112 = arith.constant 0 : index
    %c0_113 = arith.constant 0 : index
    %252 = vector.load %arg15[%c0_112, %c0_113] : memref<64x32xbf16, #tpu.memory_space<vmem>>, vector<64x32xbf16>
    %cst_114 = arith.constant dense<0.000000e+00> : vector<2x32xf32>
    %253 = tpu.matmul %251, %252, %cst_114 {dimension_numbers = #tpu.dot_dimension_numbers<[1], [0], [0], [1], [0, 0, 1, 1], [], []>} : vector<2x64xbf16>, vector<64x32xbf16>, vector<2x32xf32> -> vector<2x32xf32>
    %254 = arith.addf %253, %228 : vector<2x32xf32>
    %255 = math.tanh %254 : vector<2x32xf32>
    %256 = arith.truncf %255 : vector<2x32xf32> to vector<2x32xbf16>
    %c0_115 = arith.constant 0 : index
    %c0_116 = arith.constant 0 : index
    %257 = vector.load %arg16[%c0_115, %c0_116] : memref<32x256xbf16, #tpu.memory_space<vmem>>, vector<32x256xbf16>
    %cst_117 = arith.constant dense<0.000000e+00> : vector<2x256xf32>
    %258 = tpu.matmul %256, %257, %cst_117 {dimension_numbers = #tpu.dot_dimension_numbers<[1], [0], [0], [1], [0, 0, 1, 1], [], []>} : vector<2x32xbf16>, vector<32x256xbf16>, vector<2x256xf32> -> vector<2x256xf32>
    %c0_118 = arith.constant 0 : index
    %c0_119 = arith.constant 0 : index
    %259 = vector.load %arg17[%c0_118, %c0_119] : memref<1x256xf32, #tpu.memory_space<vmem>>, vector<1x256xf32>
    %260 = vector.broadcast %259 : vector<1x256xf32> to vector<2x256xf32>
    %261 = arith.addf %258, %260 : vector<2x256xf32>
    %c0_120 = arith.constant 0 : index
    %c0_121 = arith.constant 0 : index
    %262 = vector.load %arg20[%c0_120, %c0_121] : memref<1x256xf32, #tpu.memory_space<vmem>>, vector<1x256xf32>
    %263 = vector.broadcast %262 : vector<1x256xf32> to vector<2x256xf32>
    %264 = arith.mulf %261, %263 : vector<2x256xf32>
    %265 = vector.shape_cast %151 : vector<2x8x192xf32> to vector<16x192xf32>
    %266 = arith.truncf %265 : vector<16x192xf32> to vector<16x192xbf16>
    %c0_122 = arith.constant 0 : index
    %c0_123 = arith.constant 0 : index
    %267 = vector.load %arg18[%c0_122, %c0_123] : memref<192x256xbf16, #tpu.memory_space<vmem>>, vector<192x256xbf16>
    %cst_124 = arith.constant dense<0.000000e+00> : vector<16x256xf32>
    %268 = tpu.matmul %266, %267, %cst_124 {dimension_numbers = #tpu.dot_dimension_numbers<[1], [0], [0], [1], [0, 0, 1, 1], [], []>} : vector<16x192xbf16>, vector<192x256xbf16>, vector<16x256xf32> -> vector<16x256xf32>
    %c0_125 = arith.constant 0 : index
    %c0_126 = arith.constant 0 : index
    %269 = vector.load %arg19[%c0_125, %c0_126] : memref<1x256xf32, #tpu.memory_space<vmem>>, vector<1x256xf32>
    %270 = vector.broadcast %269 : vector<1x256xf32> to vector<16x256xf32>
    %271 = arith.addf %268, %270 : vector<16x256xf32>
    %272 = vector.shape_cast %271 : vector<16x256xf32> to vector<2x8x256xf32>
    %273 = vector.shape_cast %264 : vector<2x256xf32> to vector<2x1x256xf32>
    %274 = vector.broadcast %273 : vector<2x1x256xf32> to vector<2x8x256xf32>
    %275 = arith.mulf %274, %272 : vector<2x8x256xf32>
    %cst_127 = arith.constant dense<0.000000e+00> : vector<2x8xf32>
    %276 = vector.multi_reduction <add>, %275, %cst_127 [2] : vector<2x8x256xf32> to vector<2x8xf32>
    %c0_128 = arith.constant 0 : index
    %c0_129 = arith.constant 0 : index
    %277 = vector.load %arg21[%c0_128, %c0_129] : memref<1x1xf32, #tpu.memory_space<vmem>>, vector<1x1xf32>
    %278 = vector.broadcast %277 : vector<1x1xf32> to vector<2x8xf32>
    %279 = arith.addf %276, %278 : vector<2x8xf32>
    %280 = tpu.concatenate %255, %221, %246, %279, %2 in 1 : vector<2x32xf32>, vector<2x32xf32>, vector<2x8xf32>, vector<2x8xf32>, vector<2x48xf32> -> vector<2x128xf32>
    %281 = arith.index_cast %c1_i32 : i32 to index
    %c0_130 = arith.constant 0 : index
    %c0_131 = arith.constant 0 : index
    %282 = vector.load %arg22[%281, %c0_130, %c0_131] : memref<4x2x128xf32, #tpu.memory_space<vmem>>, vector<1x2x128xf32>
    %283 = vector.shape_cast %282 : vector<1x2x128xf32> to vector<2x128xf32>
    %284 = vector.shape_cast %280 : vector<2x128xf32> to vector<1x2x128xf32>
    tpu.vector_store %arg22[%281, %c0_130, %c0_131], %284 {strides = array<i32>} : memref<4x2x128xf32, #tpu.memory_space<vmem>>, vector<1x2x128xf32>,
    %c2_i32 = arith.constant 2 : i32
    %285 = arith.truncf %255 : vector<2x32xf32> to vector<2x32xbf16>
    %286 = arith.index_cast %c2_i32 : i32 to index
    %c0_132 = arith.constant 0 : index
    %c0_133 = arith.constant 0 : index
    %287 = vector.load %arg0[%286, %c0_132, %c0_133] : memref<4x2x192xf32, #tpu.memory_space<vmem>>, vector<1x2x192xf32>
    %288 = vector.shape_cast %287 : vector<1x2x192xf32> to vector<2x192xf32>
    %289 = arith.index_cast %c2_i32 : i32 to index
    %c0_134 = arith.constant 0 : index
    %c0_135 = arith.constant 0 : index
    %c0_136 = arith.constant 0 : index
    %290 = vector.load %arg1[%289, %c0_134, %c0_135, %c0_136] : memref<4x2x8x192xf32, #tpu.memory_space<vmem>>, vector<1x2x8x192xf32>
    %291 = vector.shape_cast %290 : vector<1x2x8x192xf32> to vector<2x8x192xf32>
    %292 = arith.index_cast %c2_i32 : i32 to index
    %c0_137 = arith.constant 0 : index
    %c0_138 = arith.constant 0 : index
    %c0_139 = arith.constant 0 : index
    %293 = vector.load %arg2[%292, %c0_137, %c0_138, %c0_139] : memref<4x2x8x192xf32, #tpu.memory_space<vmem>>, vector<1x2x8x192xf32>
    %294 = vector.shape_cast %293 : vector<1x2x8x192xf32> to vector<2x8x192xf32>
    %c0_140 = arith.constant 0 : index
    %c0_141 = arith.constant 0 : index
    %295 = vector.load %arg7[%c0_140, %c0_141] : memref<32x384xbf16, #tpu.memory_space<vmem>>, vector<32x384xbf16>
    %cst_142 = arith.constant dense<0.000000e+00> : vector<2x384xf32>
    %296 = tpu.matmul %285, %295, %cst_142 {dimension_numbers = #tpu.dot_dimension_numbers<[1], [0], [0], [1], [0, 0, 1, 1], [], []>} : vector<2x32xbf16>, vector<32x384xbf16>, vector<2x384xf32> -> vector<2x384xf32>
    %297 = vector.extract_strided_slice %296 {offsets = [0, 0], sizes = [2, 256], strides = [1, 1]} : vector<2x384xf32> to vector<2x256xf32>
    %c0_143 = arith.constant 0 : index
    %c0_144 = arith.constant 0 : index
    %298 = vector.load %arg8[%c0_143, %c0_144] : memref<1x256xf32, #tpu.memory_space<vmem>>, vector<1x256xf32>
    %299 = vector.broadcast %298 : vector<1x256xf32> to vector<2x256xf32>
    %300 = arith.addf %297, %299 : vector<2x256xf32>
    %301 = vector.extract_strided_slice %296 {offsets = [0, 256], sizes = [2, 128], strides = [1, 1]} : vector<2x384xf32> to vector<2x128xf32>
    %302 = vector.shape_cast %294 : vector<2x8x192xf32> to vector<16x192xf32>
    %303 = arith.truncf %302 : vector<16x192xf32> to vector<16x192xbf16>
    %c0_145 = arith.constant 0 : index
    %c0_146 = arith.constant 0 : index
    %304 = vector.load %arg9[%c0_145, %c0_146] : memref<192x256xbf16, #tpu.memory_space<vmem>>, vector<192x256xbf16>
    %cst_147 = arith.constant dense<0.000000e+00> : vector<16x256xf32>
    %305 = tpu.matmul %303, %304, %cst_147 {dimension_numbers = #tpu.dot_dimension_numbers<[1], [0], [0], [1], [0, 0, 1, 1], [], []>} : vector<16x192xbf16>, vector<192x256xbf16>, vector<16x256xf32> -> vector<16x256xf32>
    %c0_148 = arith.constant 0 : index
    %c0_149 = arith.constant 0 : index
    %306 = vector.load %arg10[%c0_148, %c0_149] : memref<1x256xf32, #tpu.memory_space<vmem>>, vector<1x256xf32>
    %307 = vector.broadcast %306 : vector<1x256xf32> to vector<16x256xf32>
    %308 = arith.addf %305, %307 : vector<16x256xf32>
    %309 = vector.shape_cast %308 : vector<16x256xf32> to vector<2x8x256xf32>
    %310 = vector.shape_cast %300 : vector<2x256xf32> to vector<2x1x256xf32>
    %311 = vector.broadcast %310 : vector<2x1x256xf32> to vector<2x8x256xf32>
    %312 = arith.mulf %309, %311 : vector<2x8x256xf32>
    %cst_150 = arith.constant dense<0.000000e+00> : vector<2x8xf32>
    %313 = vector.multi_reduction <add>, %312, %cst_150 [2] : vector<2x8x256xf32> to vector<2x8xf32>
    %cst_151 = arith.constant dense<0xFF800000> : vector<2xf32>
    %314 = vector.multi_reduction <maximumf>, %313, %cst_151 [1] : vector<2x8xf32> to vector<2xf32>
    %315 = vector.shape_cast %314 : vector<2xf32> to vector<2x1xf32>
    %316 = vector.broadcast %315 : vector<2x1xf32> to vector<2x8xf32>
    %317 = arith.subf %313, %316 : vector<2x8xf32>
    %318 = math.exp %317 : vector<2x8xf32>
    %cst_152 = arith.constant dense<0.000000e+00> : vector<2xf32>
    %319 = vector.multi_reduction <add>, %318, %cst_152 [1] : vector<2x8xf32> to vector<2xf32>
    %320 = vector.shape_cast %319 : vector<2xf32> to vector<2x1xf32>
    %321 = tpu.reciprocal %320 {approx = true} : vector<2x1xf32> -> vector<2x1xf32>
    %322 = vector.broadcast %321 : vector<2x1xf32> to vector<2x8xf32>
    %323 = arith.mulf %318, %322 : vector<2x8xf32>
    %324 = vector.shape_cast %323 : vector<2x8xf32> to vector<2x8x1xf32>
    %325 = vector.broadcast %324 : vector<2x8x1xf32> to vector<2x8x192xf32>
    %326 = arith.mulf %325, %294 : vector<2x8x192xf32>
    %cst_153 = arith.constant dense<0.000000e+00> : vector<2x192xf32>
    %327 = vector.multi_reduction <add>, %326, %cst_153 [1] : vector<2x8x192xf32> to vector<2x192xf32>
    %328 = arith.truncf %288 : vector<2x192xf32> to vector<2x192xbf16>
    %c0_154 = arith.constant 0 : index
    %c0_155 = arith.constant 0 : index
    %329 = vector.load %arg11[%c0_154, %c0_155] : memref<192x128xbf16, #tpu.memory_space<vmem>>, vector<192x128xbf16>
    %cst_156 = arith.constant dense<0.000000e+00> : vector<2x128xf32>
    %330 = tpu.matmul %328, %329, %cst_156 {dimension_numbers = #tpu.dot_dimension_numbers<[1], [0], [0], [1], [0, 0, 1, 1], [], []>} : vector<2x192xbf16>, vector<192x128xbf16>, vector<2x128xf32> -> vector<2x128xf32>
    %331 = arith.truncf %327 : vector<2x192xf32> to vector<2x192xbf16>
    %c0_157 = arith.constant 0 : index
    %c0_158 = arith.constant 0 : index
    %332 = vector.load %arg12[%c0_157, %c0_158] : memref<192x128xbf16, #tpu.memory_space<vmem>>, vector<192x128xbf16>
    %cst_159 = arith.constant dense<0.000000e+00> : vector<2x128xf32>
    %333 = tpu.matmul %331, %332, %cst_159 {dimension_numbers = #tpu.dot_dimension_numbers<[1], [0], [0], [1], [0, 0, 1, 1], [], []>} : vector<2x192xbf16>, vector<192x128xbf16>, vector<2x128xf32> -> vector<2x128xf32>
    %334 = arith.addf %330, %333 : vector<2x128xf32>
    %335 = arith.addf %334, %301 : vector<2x128xf32>
    %c0_160 = arith.constant 0 : index
    %c0_161 = arith.constant 0 : index
    %336 = vector.load %arg13[%c0_160, %c0_161] : memref<1x128xf32, #tpu.memory_space<vmem>>, vector<1x128xf32>
    %337 = vector.broadcast %336 : vector<1x128xf32> to vector<2x128xf32>
    %338 = arith.addf %335, %337 : vector<2x128xf32>
    %339 = vector.extract_strided_slice %338 {offsets = [0, 0], sizes = [2, 32], strides = [1, 1]} : vector<2x128xf32> to vector<2x32xf32>
    %340 = arith.negf %339 : vector<2x32xf32>
    %341 = math.exp %340 : vector<2x32xf32>
    %cst_162 = arith.constant 1.000000e+00 : f32
    %342 = vector.broadcast %cst_162 : f32 to vector<2x32xf32>
    %343 = arith.addf %342, %341 : vector<2x32xf32>
    %344 = arith.divf %342, %343 : vector<2x32xf32>
    %345 = vector.extract_strided_slice %338 {offsets = [0, 32], sizes = [2, 32], strides = [1, 1]} : vector<2x128xf32> to vector<2x32xf32>
    %346 = arith.negf %345 : vector<2x32xf32>
    %347 = math.exp %346 : vector<2x32xf32>
    %cst_163 = arith.constant 1.000000e+00 : f32
    %348 = vector.broadcast %cst_163 : f32 to vector<2x32xf32>
    %349 = arith.addf %348, %347 : vector<2x32xf32>
    %350 = arith.divf %348, %349 : vector<2x32xf32>
    %351 = vector.extract_strided_slice %338 {offsets = [0, 64], sizes = [2, 32], strides = [1, 1]} : vector<2x128xf32> to vector<2x32xf32>
    %352 = math.tanh %351 : vector<2x32xf32>
    %353 = vector.extract_strided_slice %338 {offsets = [0, 96], sizes = [2, 32], strides = [1, 1]} : vector<2x128xf32> to vector<2x32xf32>
    %354 = arith.negf %353 : vector<2x32xf32>
    %355 = math.exp %354 : vector<2x32xf32>
    %cst_164 = arith.constant 1.000000e+00 : f32
    %356 = vector.broadcast %cst_164 : f32 to vector<2x32xf32>
    %357 = arith.addf %356, %355 : vector<2x32xf32>
    %358 = arith.divf %356, %357 : vector<2x32xf32>
    %359 = arith.mulf %350, %221 : vector<2x32xf32>
    %360 = arith.mulf %344, %352 : vector<2x32xf32>
    %361 = arith.addf %359, %360 : vector<2x32xf32>
    %362 = math.tanh %361 : vector<2x32xf32>
    %363 = arith.mulf %358, %362 : vector<2x32xf32>
    %364 = arith.truncf %363 : vector<2x32xf32> to vector<2x32xbf16>
    %c0_165 = arith.constant 0 : index
    %c0_166 = arith.constant 0 : index
    %365 = vector.load %arg14[%c0_165, %c0_166] : memref<32x128xbf16, #tpu.memory_space<vmem>>, vector<32x128xbf16>
    %cst_167 = arith.constant dense<0.000000e+00> : vector<2x128xf32>
    %366 = tpu.matmul %364, %365, %cst_167 {dimension_numbers = #tpu.dot_dimension_numbers<[1], [0], [0], [1], [0, 0, 1, 1], [], []>} : vector<2x32xbf16>, vector<32x128xbf16>, vector<2x128xf32> -> vector<2x128xf32>
    %367 = vector.extract_strided_slice %366 {offsets = [0, 0], sizes = [2, 64], strides = [1, 1]} : vector<2x128xf32> to vector<2x64xf32>
    %368 = vector.extract_strided_slice %366 {offsets = [0, 64], sizes = [2, 32], strides = [1, 1]} : vector<2x128xf32> to vector<2x32xf32>
    %369 = vector.shape_cast %367 : vector<2x64xf32> to vector<2x1x64xf32>
    %370 = vector.broadcast %369 : vector<2x1x64xf32> to vector<2x8x64xf32>
    %371 = arith.mulf %0, %370 : vector<2x8x64xf32>
    %cst_168 = arith.constant dense<0.000000e+00> : vector<2x8xf32>
    %372 = vector.multi_reduction <add>, %371, %cst_168 [2] : vector<2x8x64xf32> to vector<2x8xf32>
    %cst_169 = arith.constant 5.000000e-01 : f32
    %373 = vector.broadcast %cst_169 : f32 to vector<2x8xf32>
    %374 = arith.cmpf ogt, %1, %373 : vector<2x8xf32>
    %cst_170 = arith.constant -1.000000e+30 : f32
    %375 = vector.broadcast %cst_170 : f32 to vector<2x8xf32>
    %376 = arith.select %374, %375, %372 : vector<2x8xi1>, vector<2x8xf32>
    %cst_171 = arith.constant dense<0xFF800000> : vector<2xf32>
    %377 = vector.multi_reduction <maximumf>, %376, %cst_171 [1] : vector<2x8xf32> to vector<2xf32>
    %378 = vector.shape_cast %377 : vector<2xf32> to vector<2x1xf32>
    %379 = vector.broadcast %378 : vector<2x1xf32> to vector<2x8xf32>
    %380 = arith.subf %376, %379 : vector<2x8xf32>
    %381 = math.exp %380 : vector<2x8xf32>
    %cst_172 = arith.constant dense<0.000000e+00> : vector<2xf32>
    %382 = vector.multi_reduction <add>, %381, %cst_172 [1] : vector<2x8xf32> to vector<2xf32>
    %383 = vector.shape_cast %382 : vector<2xf32> to vector<2x1xf32>
    %384 = tpu.reciprocal %383 {approx = true} : vector<2x1xf32> -> vector<2x1xf32>
    %385 = vector.broadcast %384 : vector<2x1xf32> to vector<2x8xf32>
    %386 = arith.mulf %381, %385 : vector<2x8xf32>
    %387 = vector.shape_cast %386 : vector<2x8xf32> to vector<2x8x1xf32>
    %388 = vector.broadcast %387 : vector<2x8x1xf32> to vector<2x8x64xf32>
    %389 = arith.mulf %388, %0 : vector<2x8x64xf32>
    %cst_173 = arith.constant dense<0.000000e+00> : vector<2x64xf32>
    %390 = vector.multi_reduction <add>, %389, %cst_173 [1] : vector<2x8x64xf32> to vector<2x64xf32>
    %391 = arith.truncf %390 : vector<2x64xf32> to vector<2x64xbf16>
    %c0_174 = arith.constant 0 : index
    %c0_175 = arith.constant 0 : index
    %392 = vector.load %arg15[%c0_174, %c0_175] : memref<64x32xbf16, #tpu.memory_space<vmem>>, vector<64x32xbf16>
    %cst_176 = arith.constant dense<0.000000e+00> : vector<2x32xf32>
    %393 = tpu.matmul %391, %392, %cst_176 {dimension_numbers = #tpu.dot_dimension_numbers<[1], [0], [0], [1], [0, 0, 1, 1], [], []>} : vector<2x64xbf16>, vector<64x32xbf16>, vector<2x32xf32> -> vector<2x32xf32>
    %394 = arith.addf %393, %368 : vector<2x32xf32>
    %395 = math.tanh %394 : vector<2x32xf32>
    %396 = arith.truncf %395 : vector<2x32xf32> to vector<2x32xbf16>
    %c0_177 = arith.constant 0 : index
    %c0_178 = arith.constant 0 : index
    %397 = vector.load %arg16[%c0_177, %c0_178] : memref<32x256xbf16, #tpu.memory_space<vmem>>, vector<32x256xbf16>
    %cst_179 = arith.constant dense<0.000000e+00> : vector<2x256xf32>
    %398 = tpu.matmul %396, %397, %cst_179 {dimension_numbers = #tpu.dot_dimension_numbers<[1], [0], [0], [1], [0, 0, 1, 1], [], []>} : vector<2x32xbf16>, vector<32x256xbf16>, vector<2x256xf32> -> vector<2x256xf32>
    %c0_180 = arith.constant 0 : index
    %c0_181 = arith.constant 0 : index
    %399 = vector.load %arg17[%c0_180, %c0_181] : memref<1x256xf32, #tpu.memory_space<vmem>>, vector<1x256xf32>
    %400 = vector.broadcast %399 : vector<1x256xf32> to vector<2x256xf32>
    %401 = arith.addf %398, %400 : vector<2x256xf32>
    %c0_182 = arith.constant 0 : index
    %c0_183 = arith.constant 0 : index
    %402 = vector.load %arg20[%c0_182, %c0_183] : memref<1x256xf32, #tpu.memory_space<vmem>>, vector<1x256xf32>
    %403 = vector.broadcast %402 : vector<1x256xf32> to vector<2x256xf32>
    %404 = arith.mulf %401, %403 : vector<2x256xf32>
    %405 = vector.shape_cast %291 : vector<2x8x192xf32> to vector<16x192xf32>
    %406 = arith.truncf %405 : vector<16x192xf32> to vector<16x192xbf16>
    %c0_184 = arith.constant 0 : index
    %c0_185 = arith.constant 0 : index
    %407 = vector.load %arg18[%c0_184, %c0_185] : memref<192x256xbf16, #tpu.memory_space<vmem>>, vector<192x256xbf16>
    %cst_186 = arith.constant dense<0.000000e+00> : vector<16x256xf32>
    %408 = tpu.matmul %406, %407, %cst_186 {dimension_numbers = #tpu.dot_dimension_numbers<[1], [0], [0], [1], [0, 0, 1, 1], [], []>} : vector<16x192xbf16>, vector<192x256xbf16>, vector<16x256xf32> -> vector<16x256xf32>
    %c0_187 = arith.constant 0 : index
    %c0_188 = arith.constant 0 : index
    %409 = vector.load %arg19[%c0_187, %c0_188] : memref<1x256xf32, #tpu.memory_space<vmem>>, vector<1x256xf32>
    %410 = vector.broadcast %409 : vector<1x256xf32> to vector<16x256xf32>
    %411 = arith.addf %408, %410 : vector<16x256xf32>
    %412 = vector.shape_cast %411 : vector<16x256xf32> to vector<2x8x256xf32>
    %413 = vector.shape_cast %404 : vector<2x256xf32> to vector<2x1x256xf32>
    %414 = vector.broadcast %413 : vector<2x1x256xf32> to vector<2x8x256xf32>
    %415 = arith.mulf %414, %412 : vector<2x8x256xf32>
    %cst_189 = arith.constant dense<0.000000e+00> : vector<2x8xf32>
    %416 = vector.multi_reduction <add>, %415, %cst_189 [2] : vector<2x8x256xf32> to vector<2x8xf32>
    %c0_190 = arith.constant 0 : index
    %c0_191 = arith.constant 0 : index
    %417 = vector.load %arg21[%c0_190, %c0_191] : memref<1x1xf32, #tpu.memory_space<vmem>>, vector<1x1xf32>
    %418 = vector.broadcast %417 : vector<1x1xf32> to vector<2x8xf32>
    %419 = arith.addf %416, %418 : vector<2x8xf32>
    %420 = tpu.concatenate %395, %361, %386, %419, %2 in 1 : vector<2x32xf32>, vector<2x32xf32>, vector<2x8xf32>, vector<2x8xf32>, vector<2x48xf32> -> vector<2x128xf32>
    %421 = arith.index_cast %c2_i32 : i32 to index
    %c0_192 = arith.constant 0 : index
    %c0_193 = arith.constant 0 : index
    %422 = vector.load %arg22[%421, %c0_192, %c0_193] : memref<4x2x128xf32, #tpu.memory_space<vmem>>, vector<1x2x128xf32>
    %423 = vector.shape_cast %422 : vector<1x2x128xf32> to vector<2x128xf32>
    %424 = vector.shape_cast %420 : vector<2x128xf32> to vector<1x2x128xf32>
    tpu.vector_store %arg22[%421, %c0_192, %c0_193], %424 {strides = array<i32>} : memref<4x2x128xf32, #tpu.memory_space<vmem>>, vector<1x2x128xf32>,
    %c3_i32 = arith.constant 3 : i32
    %425 = arith.truncf %395 : vector<2x32xf32> to vector<2x32xbf16>
    %426 = arith.index_cast %c3_i32 : i32 to index
    %c0_194 = arith.constant 0 : index
    %c0_195 = arith.constant 0 : index
    %427 = vector.load %arg0[%426, %c0_194, %c0_195] : memref<4x2x192xf32, #tpu.memory_space<vmem>>, vector<1x2x192xf32>
    %428 = vector.shape_cast %427 : vector<1x2x192xf32> to vector<2x192xf32>
    %429 = arith.index_cast %c3_i32 : i32 to index
    %c0_196 = arith.constant 0 : index
    %c0_197 = arith.constant 0 : index
    %c0_198 = arith.constant 0 : index
    %430 = vector.load %arg1[%429, %c0_196, %c0_197, %c0_198] : memref<4x2x8x192xf32, #tpu.memory_space<vmem>>, vector<1x2x8x192xf32>
    %431 = vector.shape_cast %430 : vector<1x2x8x192xf32> to vector<2x8x192xf32>
    %432 = arith.index_cast %c3_i32 : i32 to index
    %c0_199 = arith.constant 0 : index
    %c0_200 = arith.constant 0 : index
    %c0_201 = arith.constant 0 : index
    %433 = vector.load %arg2[%432, %c0_199, %c0_200, %c0_201] : memref<4x2x8x192xf32, #tpu.memory_space<vmem>>, vector<1x2x8x192xf32>
    %434 = vector.shape_cast %433 : vector<1x2x8x192xf32> to vector<2x8x192xf32>
    %c0_202 = arith.constant 0 : index
    %c0_203 = arith.constant 0 : index
    %435 = vector.load %arg7[%c0_202, %c0_203] : memref<32x384xbf16, #tpu.memory_space<vmem>>, vector<32x384xbf16>
    %cst_204 = arith.constant dense<0.000000e+00> : vector<2x384xf32>
    %436 = tpu.matmul %425, %435, %cst_204 {dimension_numbers = #tpu.dot_dimension_numbers<[1], [0], [0], [1], [0, 0, 1, 1], [], []>} : vector<2x32xbf16>, vector<32x384xbf16>, vector<2x384xf32> -> vector<2x384xf32>
    %437 = vector.extract_strided_slice %436 {offsets = [0, 0], sizes = [2, 256], strides = [1, 1]} : vector<2x384xf32> to vector<2x256xf32>
    %c0_205 = arith.constant 0 : index
    %c0_206 = arith.constant 0 : index
    %438 = vector.load %arg8[%c0_205, %c0_206] : memref<1x256xf32, #tpu.memory_space<vmem>>, vector<1x256xf32>
    %439 = vector.broadcast %438 : vector<1x256xf32> to vector<2x256xf32>
    %440 = arith.addf %437, %439 : vector<2x256xf32>
    %441 = vector.extract_strided_slice %436 {offsets = [0, 256], sizes = [2, 128], strides = [1, 1]} : vector<2x384xf32> to vector<2x128xf32>
    %442 = vector.shape_cast %434 : vector<2x8x192xf32> to vector<16x192xf32>
    %443 = arith.truncf %442 : vector<16x192xf32> to vector<16x192xbf16>
    %c0_207 = arith.constant 0 : index
    %c0_208 = arith.constant 0 : index
    %444 = vector.load %arg9[%c0_207, %c0_208] : memref<192x256xbf16, #tpu.memory_space<vmem>>, vector<192x256xbf16>
    %cst_209 = arith.constant dense<0.000000e+00> : vector<16x256xf32>
    %445 = tpu.matmul %443, %444, %cst_209 {dimension_numbers = #tpu.dot_dimension_numbers<[1], [0], [0], [1], [0, 0, 1, 1], [], []>} : vector<16x192xbf16>, vector<192x256xbf16>, vector<16x256xf32> -> vector<16x256xf32>
    %c0_210 = arith.constant 0 : index
    %c0_211 = arith.constant 0 : index
    %446 = vector.load %arg10[%c0_210, %c0_211] : memref<1x256xf32, #tpu.memory_space<vmem>>, vector<1x256xf32>
    %447 = vector.broadcast %446 : vector<1x256xf32> to vector<16x256xf32>
    %448 = arith.addf %445, %447 : vector<16x256xf32>
    %449 = vector.shape_cast %448 : vector<16x256xf32> to vector<2x8x256xf32>
    %450 = vector.shape_cast %440 : vector<2x256xf32> to vector<2x1x256xf32>
    %451 = vector.broadcast %450 : vector<2x1x256xf32> to vector<2x8x256xf32>
    %452 = arith.mulf %449, %451 : vector<2x8x256xf32>
    %cst_212 = arith.constant dense<0.000000e+00> : vector<2x8xf32>
    %453 = vector.multi_reduction <add>, %452, %cst_212 [2] : vector<2x8x256xf32> to vector<2x8xf32>
    %cst_213 = arith.constant dense<0xFF800000> : vector<2xf32>
    %454 = vector.multi_reduction <maximumf>, %453, %cst_213 [1] : vector<2x8xf32> to vector<2xf32>
    %455 = vector.shape_cast %454 : vector<2xf32> to vector<2x1xf32>
    %456 = vector.broadcast %455 : vector<2x1xf32> to vector<2x8xf32>
    %457 = arith.subf %453, %456 : vector<2x8xf32>
    %458 = math.exp %457 : vector<2x8xf32>
    %cst_214 = arith.constant dense<0.000000e+00> : vector<2xf32>
    %459 = vector.multi_reduction <add>, %458, %cst_214 [1] : vector<2x8xf32> to vector<2xf32>
    %460 = vector.shape_cast %459 : vector<2xf32> to vector<2x1xf32>
    %461 = tpu.reciprocal %460 {approx = true} : vector<2x1xf32> -> vector<2x1xf32>
    %462 = vector.broadcast %461 : vector<2x1xf32> to vector<2x8xf32>
    %463 = arith.mulf %458, %462 : vector<2x8xf32>
    %464 = vector.shape_cast %463 : vector<2x8xf32> to vector<2x8x1xf32>
    %465 = vector.broadcast %464 : vector<2x8x1xf32> to vector<2x8x192xf32>
    %466 = arith.mulf %465, %434 : vector<2x8x192xf32>
    %cst_215 = arith.constant dense<0.000000e+00> : vector<2x192xf32>
    %467 = vector.multi_reduction <add>, %466, %cst_215 [1] : vector<2x8x192xf32> to vector<2x192xf32>
    %468 = arith.truncf %428 : vector<2x192xf32> to vector<2x192xbf16>
    %c0_216 = arith.constant 0 : index
    %c0_217 = arith.constant 0 : index
    %469 = vector.load %arg11[%c0_216, %c0_217] : memref<192x128xbf16, #tpu.memory_space<vmem>>, vector<192x128xbf16>
    %cst_218 = arith.constant dense<0.000000e+00> : vector<2x128xf32>
    %470 = tpu.matmul %468, %469, %cst_218 {dimension_numbers = #tpu.dot_dimension_numbers<[1], [0], [0], [1], [0, 0, 1, 1], [], []>} : vector<2x192xbf16>, vector<192x128xbf16>, vector<2x128xf32> -> vector<2x128xf32>
    %471 = arith.truncf %467 : vector<2x192xf32> to vector<2x192xbf16>
    %c0_219 = arith.constant 0 : index
    %c0_220 = arith.constant 0 : index
    %472 = vector.load %arg12[%c0_219, %c0_220] : memref<192x128xbf16, #tpu.memory_space<vmem>>, vector<192x128xbf16>
    %cst_221 = arith.constant dense<0.000000e+00> : vector<2x128xf32>
    %473 = tpu.matmul %471, %472, %cst_221 {dimension_numbers = #tpu.dot_dimension_numbers<[1], [0], [0], [1], [0, 0, 1, 1], [], []>} : vector<2x192xbf16>, vector<192x128xbf16>, vector<2x128xf32> -> vector<2x128xf32>
    %474 = arith.addf %470, %473 : vector<2x128xf32>
    %475 = arith.addf %474, %441 : vector<2x128xf32>
    %c0_222 = arith.constant 0 : index
    %c0_223 = arith.constant 0 : index
    %476 = vector.load %arg13[%c0_222, %c0_223] : memref<1x128xf32, #tpu.memory_space<vmem>>, vector<1x128xf32>
    %477 = vector.broadcast %476 : vector<1x128xf32> to vector<2x128xf32>
    %478 = arith.addf %475, %477 : vector<2x128xf32>
    %479 = vector.extract_strided_slice %478 {offsets = [0, 0], sizes = [2, 32], strides = [1, 1]} : vector<2x128xf32> to vector<2x32xf32>
    %480 = arith.negf %479 : vector<2x32xf32>
    %481 = math.exp %480 : vector<2x32xf32>
    %cst_224 = arith.constant 1.000000e+00 : f32
    %482 = vector.broadcast %cst_224 : f32 to vector<2x32xf32>
    %483 = arith.addf %482, %481 : vector<2x32xf32>
    %484 = arith.divf %482, %483 : vector<2x32xf32>
    %485 = vector.extract_strided_slice %478 {offsets = [0, 32], sizes = [2, 32], strides = [1, 1]} : vector<2x128xf32> to vector<2x32xf32>
    %486 = arith.negf %485 : vector<2x32xf32>
    %487 = math.exp %486 : vector<2x32xf32>
    %cst_225 = arith.constant 1.000000e+00 : f32
    %488 = vector.broadcast %cst_225 : f32 to vector<2x32xf32>
    %489 = arith.addf %488, %487 : vector<2x32xf32>
    %490 = arith.divf %488, %489 : vector<2x32xf32>
    %491 = vector.extract_strided_slice %478 {offsets = [0, 64], sizes = [2, 32], strides = [1, 1]} : vector<2x128xf32> to vector<2x32xf32>
    %492 = math.tanh %491 : vector<2x32xf32>
    %493 = vector.extract_strided_slice %478 {offsets = [0, 96], sizes = [2, 32], strides = [1, 1]} : vector<2x128xf32> to vector<2x32xf32>
    %494 = arith.negf %493 : vector<2x32xf32>
    %495 = math.exp %494 : vector<2x32xf32>
    %cst_226 = arith.constant 1.000000e+00 : f32
    %496 = vector.broadcast %cst_226 : f32 to vector<2x32xf32>
    %497 = arith.addf %496, %495 : vector<2x32xf32>
    %498 = arith.divf %496, %497 : vector<2x32xf32>
    %499 = arith.mulf %490, %361 : vector<2x32xf32>
    %500 = arith.mulf %484, %492 : vector<2x32xf32>
    %501 = arith.addf %499, %500 : vector<2x32xf32>
    %502 = math.tanh %501 : vector<2x32xf32>
    %503 = arith.mulf %498, %502 : vector<2x32xf32>
    %504 = arith.truncf %503 : vector<2x32xf32> to vector<2x32xbf16>
    %c0_227 = arith.constant 0 : index
    %c0_228 = arith.constant 0 : index
    %505 = vector.load %arg14[%c0_227, %c0_228] : memref<32x128xbf16, #tpu.memory_space<vmem>>, vector<32x128xbf16>
    %cst_229 = arith.constant dense<0.000000e+00> : vector<2x128xf32>
    %506 = tpu.matmul %504, %505, %cst_229 {dimension_numbers = #tpu.dot_dimension_numbers<[1], [0], [0], [1], [0, 0, 1, 1], [], []>} : vector<2x32xbf16>, vector<32x128xbf16>, vector<2x128xf32> -> vector<2x128xf32>
    %507 = vector.extract_strided_slice %506 {offsets = [0, 0], sizes = [2, 64], strides = [1, 1]} : vector<2x128xf32> to vector<2x64xf32>
    %508 = vector.extract_strided_slice %506 {offsets = [0, 64], sizes = [2, 32], strides = [1, 1]} : vector<2x128xf32> to vector<2x32xf32>
    %509 = vector.shape_cast %507 : vector<2x64xf32> to vector<2x1x64xf32>
    %510 = vector.broadcast %509 : vector<2x1x64xf32> to vector<2x8x64xf32>
    %511 = arith.mulf %0, %510 : vector<2x8x64xf32>
    %cst_230 = arith.constant dense<0.000000e+00> : vector<2x8xf32>
    %512 = vector.multi_reduction <add>, %511, %cst_230 [2] : vector<2x8x64xf32> to vector<2x8xf32>
    %cst_231 = arith.constant 5.000000e-01 : f32
    %513 = vector.broadcast %cst_231 : f32 to vector<2x8xf32>
    %514 = arith.cmpf ogt, %1, %513 : vector<2x8xf32>
    %cst_232 = arith.constant -1.000000e+30 : f32
    %515 = vector.broadcast %cst_232 : f32 to vector<2x8xf32>
    %516 = arith.select %514, %515, %512 : vector<2x8xi1>, vector<2x8xf32>
    %cst_233 = arith.constant dense<0xFF800000> : vector<2xf32>
    %517 = vector.multi_reduction <maximumf>, %516, %cst_233 [1] : vector<2x8xf32> to vector<2xf32>
    %518 = vector.shape_cast %517 : vector<2xf32> to vector<2x1xf32>
    %519 = vector.broadcast %518 : vector<2x1xf32> to vector<2x8xf32>
    %520 = arith.subf %516, %519 : vector<2x8xf32>
    %521 = math.exp %520 : vector<2x8xf32>
    %cst_234 = arith.constant dense<0.000000e+00> : vector<2xf32>
    %522 = vector.multi_reduction <add>, %521, %cst_234 [1] : vector<2x8xf32> to vector<2xf32>
    %523 = vector.shape_cast %522 : vector<2xf32> to vector<2x1xf32>
    %524 = tpu.reciprocal %523 {approx = true} : vector<2x1xf32> -> vector<2x1xf32>
    %525 = vector.broadcast %524 : vector<2x1xf32> to vector<2x8xf32>
    %526 = arith.mulf %521, %525 : vector<2x8xf32>
    %527 = vector.shape_cast %526 : vector<2x8xf32> to vector<2x8x1xf32>
    %528 = vector.broadcast %527 : vector<2x8x1xf32> to vector<2x8x64xf32>
    %529 = arith.mulf %528, %0 : vector<2x8x64xf32>
    %cst_235 = arith.constant dense<0.000000e+00> : vector<2x64xf32>
    %530 = vector.multi_reduction <add>, %529, %cst_235 [1] : vector<2x8x64xf32> to vector<2x64xf32>
    %531 = arith.truncf %530 : vector<2x64xf32> to vector<2x64xbf16>
    %c0_236 = arith.constant 0 : index
    %c0_237 = arith.constant 0 : index
    %532 = vector.load %arg15[%c0_236, %c0_237] : memref<64x32xbf16, #tpu.memory_space<vmem>>, vector<64x32xbf16>
    %cst_238 = arith.constant dense<0.000000e+00> : vector<2x32xf32>
    %533 = tpu.matmul %531, %532, %cst_238 {dimension_numbers = #tpu.dot_dimension_numbers<[1], [0], [0], [1], [0, 0, 1, 1], [], []>} : vector<2x64xbf16>, vector<64x32xbf16>, vector<2x32xf32> -> vector<2x32xf32>
    %534 = arith.addf %533, %508 : vector<2x32xf32>
    %535 = math.tanh %534 : vector<2x32xf32>
    %536 = arith.truncf %535 : vector<2x32xf32> to vector<2x32xbf16>
    %c0_239 = arith.constant 0 : index
    %c0_240 = arith.constant 0 : index
    %537 = vector.load %arg16[%c0_239, %c0_240] : memref<32x256xbf16, #tpu.memory_space<vmem>>, vector<32x256xbf16>
    %cst_241 = arith.constant dense<0.000000e+00> : vector<2x256xf32>
    %538 = tpu.matmul %536, %537, %cst_241 {dimension_numbers = #tpu.dot_dimension_numbers<[1], [0], [0], [1], [0, 0, 1, 1], [], []>} : vector<2x32xbf16>, vector<32x256xbf16>, vector<2x256xf32> -> vector<2x256xf32>
    %c0_242 = arith.constant 0 : index
    %c0_243 = arith.constant 0 : index
    %539 = vector.load %arg17[%c0_242, %c0_243] : memref<1x256xf32, #tpu.memory_space<vmem>>, vector<1x256xf32>
    %540 = vector.broadcast %539 : vector<1x256xf32> to vector<2x256xf32>
    %541 = arith.addf %538, %540 : vector<2x256xf32>
    %c0_244 = arith.constant 0 : index
    %c0_245 = arith.constant 0 : index
    %542 = vector.load %arg20[%c0_244, %c0_245] : memref<1x256xf32, #tpu.memory_space<vmem>>, vector<1x256xf32>
    %543 = vector.broadcast %542 : vector<1x256xf32> to vector<2x256xf32>
    %544 = arith.mulf %541, %543 : vector<2x256xf32>
    %545 = vector.shape_cast %431 : vector<2x8x192xf32> to vector<16x192xf32>
    %546 = arith.truncf %545 : vector<16x192xf32> to vector<16x192xbf16>
    %c0_246 = arith.constant 0 : index
    %c0_247 = arith.constant 0 : index
    %547 = vector.load %arg18[%c0_246, %c0_247] : memref<192x256xbf16, #tpu.memory_space<vmem>>, vector<192x256xbf16>
    %cst_248 = arith.constant dense<0.000000e+00> : vector<16x256xf32>
    %548 = tpu.matmul %546, %547, %cst_248 {dimension_numbers = #tpu.dot_dimension_numbers<[1], [0], [0], [1], [0, 0, 1, 1], [], []>} : vector<16x192xbf16>, vector<192x256xbf16>, vector<16x256xf32> -> vector<16x256xf32>
    %c0_249 = arith.constant 0 : index
    %c0_250 = arith.constant 0 : index
    %549 = vector.load %arg19[%c0_249, %c0_250] : memref<1x256xf32, #tpu.memory_space<vmem>>, vector<1x256xf32>
    %550 = vector.broadcast %549 : vector<1x256xf32> to vector<16x256xf32>
    %551 = arith.addf %548, %550 : vector<16x256xf32>
    %552 = vector.shape_cast %551 : vector<16x256xf32> to vector<2x8x256xf32>
    %553 = vector.shape_cast %544 : vector<2x256xf32> to vector<2x1x256xf32>
    %554 = vector.broadcast %553 : vector<2x1x256xf32> to vector<2x8x256xf32>
    %555 = arith.mulf %554, %552 : vector<2x8x256xf32>
    %cst_251 = arith.constant dense<0.000000e+00> : vector<2x8xf32>
    %556 = vector.multi_reduction <add>, %555, %cst_251 [2] : vector<2x8x256xf32> to vector<2x8xf32>
    %c0_252 = arith.constant 0 : index
    %c0_253 = arith.constant 0 : index
    %557 = vector.load %arg21[%c0_252, %c0_253] : memref<1x1xf32, #tpu.memory_space<vmem>>, vector<1x1xf32>
    %558 = vector.broadcast %557 : vector<1x1xf32> to vector<2x8xf32>
    %559 = arith.addf %556, %558 : vector<2x8xf32>
    %560 = tpu.concatenate %535, %501, %526, %559, %2 in 1 : vector<2x32xf32>, vector<2x32xf32>, vector<2x8xf32>, vector<2x8xf32>, vector<2x48xf32> -> vector<2x128xf32>
    %561 = arith.index_cast %c3_i32 : i32 to index
    %c0_254 = arith.constant 0 : index
    %c0_255 = arith.constant 0 : index
    %562 = vector.load %arg22[%561, %c0_254, %c0_255] : memref<4x2x128xf32, #tpu.memory_space<vmem>>, vector<1x2x128xf32>
    %563 = vector.shape_cast %562 : vector<1x2x128xf32> to vector<2x128xf32>
    %564 = vector.shape_cast %560 : vector<2x128xf32> to vector<1x2x128xf32>
    tpu.vector_store %arg22[%561, %c0_254, %c0_255], %564 {strides = array<i32>} : memref<4x2x128xf32, #tpu.memory_space<vmem>>, vector<1x2x128xf32>,
    %c4_i32 = arith.constant 4 : i32
    return
  }
}

</mosaic_0001>

<bundles_post_ra>
// kernel: r2r_attn_decoder_rollout.1
= control target key start
LH: loop header
LB: loop body
LE: loop exit
PB: predicated region body
PF: predicated region fallthrough
CT: control target
= control target key end

     0   :  { %s8991_s0 = inlined_call_operand.hbm [shape: f32[4,2,192], index: 0, kind: input, shape index: {}]   ;;  %s8992_s1 = inlined_call_operand.hbm [shape: f32[4,2,8,192], index: 1, kind: input, shape index: {}]   ;;  %s8993_s2 = inlined_call_operand.hbm [shape: f32[4,2,8,192], index: 2, kind: input, shape index: {}]   ;;  %s8994_s3 = inlined_call_operand.vmem [shape: f32[2,32], index: 3, kind: input, shape index: {}]   ;;  %s8995_s4 = inlined_call_operand.vmem [shape: f32[2,32], index: 4, kind: input, shape index: {}]   ;;  %s8996_s5 = inlined_call_operand.vmem [shape: f32[2,8,64], index: 5, kind: input, shape index: {}]   ;;  %s8997_s6 = inlined_call_operand.vmem [shape: f32[2,8], index: 6, kind: input, shape index: {}]   ;;  %s8998_s7 = inlined_call_operand.hbm [shape: bf16[32,384], index: 7, kind: input, shape index: {}]   ;;  %s8999_s8 = inlined_call_operand.hbm [shape: f32[1,256], index: 8, kind: input, shape index: {}]   ;;  %s9000_s9 = inlined_call_operand.hbm [shape: bf16[192,256], index: 9, kind: input, shape index: {}]   ;;  %s9001_s10 = inlined_call_operand.hbm [shape: f32[1,256], index: 10, kind: input, shape index: {}]   ;;  %s9002_s11 = inlined_call_operand.vmem [shape: bf16[192,128], index: 11, kind: input, shape index: {}]   ;;  %s9003_s12 = inlined_call_operand.hbm [shape: bf16[192,128], index: 12, kind: input, shape index: {}]   ;;  %s9004_s13 = inlined_call_operand.hbm [shape: f32[1,128], index: 13, kind: input, shape index: {}]   ;;  %s9005_s14 = inlined_call_operand.hbm [shape: bf16[32,128], index: 14, kind: input, shape index: {}]   ;;  %s9006_s15 = inlined_call_operand.vmem [shape: bf16[64,32], index: 15, kind: input, shape index: {}]   ;;  %s9007_s16 = inlined_call_operand.hbm [shape: bf16[32,256], index: 16, kind: input, shape index: {}]   ;;  %s9008_s17 = inlined_call_operand.hbm [shape: f32[1,256], index: 17, kind: input, shape index: {}]   ;;  %s9009_s18 = inlined_call_operand.hbm [shape: bf16[192,256], index: 18, kind: input, shape index: {}]   ;;  %s9010_s19 = inlined_call_operand.hbm [shape: f32[1,256], index: 19, kind: input, shape index: {}]   ;;  %s9011_s20 = inlined_call_operand.hbm [shape: f32[1,256], index: 20, kind: input, shape index: {}]   ;;  %s9012_s21 = inlined_call_operand.<no memory space> [shape: f32[1,1], index: 21, kind: input, shape index: {}]   ;;  %s9013_s22 = inlined_call_operand.vmem [shape: f32[4,2,128], index: 22, kind: output, shape index: {}]  }
   0x1   :  { %9019 = sst [smem:[#allocation34_spill]] %s8991_s0  ;;  %v27_v0 = vstv %s9012_s21 }
   0x2   :  { %9020 = sst [smem:[#allocation35_spill]] %s8992_s1  ;;  %28 = vst [vmem:[#allocation2] sm:$0x1] %v27_v0 }
   0x3   :  { %9021 = sst [smem:[#allocation36_spill]] %s8993_s2 }
   0x4   :  { %9022 = sst [smem:[#allocation37_spill]] %s8994_s3 }
   0x5   :  { %9023 = sst [smem:[#allocation38_spill]] %s8995_s4 }
   0x6   :  { %9024 = sst [smem:[#allocation39_spill]] %s8996_s5 }
   0x7   :  { %9025 = sst [smem:[#allocation40_spill]] %s8997_s6 }
   0x8   :  { %29 = vsyncpa [#allocation4], 0 }
   0x9   :  { %30 = vsyncpa [#allocation6], 0 }
   0xa   :  { %31 = vsyncpa [#allocation9], 0 }
   0xb   :  { %32 = vsyncpa [#allocation12], 0 }
   0xc   :  { %33 = vsyncpa [#allocation15], 0 }
   0xd   :  { %34 = vsyncpa [#allocation18], 0 }
   0xe   :  { %35 = vsyncpa [#allocation21], 0 }
   0xf   :  { %36 = vsyncpa [#allocation24], 0  ;;  %s7733_s29 = smov [#allocation5]   ;;  %s9026_s23 = sld [smem:[#allocation35_spill]] }
  0x10   :  { %s54_s30 = sshll.u32 %s7733_s29, 4  ;;  %s55_s30 = int_to_ptr.vmem [resolvable:$true] %s54_s30 }
  0x15   :  { %s7387_s1 = scalar_lea.hbm %s9026_s23, 2048 }
  0x16   :  { %p7388_p0 = scmp.ne.s32.totalorder %s9026_s23, %s7387_s1  ;;  %p7391_p1 = scmp.lt.u32.totalorder %s7387_s1, %s9026_s23 }
  0x18   :  { %p7393_p2 = pnand %p7391_p1, %p7388_p0 }
  0x1a   :  { %7396 = shalt.err (!%p7393_p2)
}
  0x1b   :  { %s7397_s25 = scalar_lea.vmem %s55_s30, 2048  ;;  %p7402_p4 = scmp.lt.s32.totalorder %s55_s30, %s55_s30 }
  0x1c   :  { %p7398_p3 = scmp.ne.s32.totalorder %s55_s30, %s7397_s25  ;;  %p7403_p5 = scmp.lt.s32.totalorder %s7397_s25, %s7397_s25 }
  0x1e   :  { %p7404_p6 = por %p7403_p5, %p7402_p4 }
  0x20   :  { %p7405_p7 = pnand %p7404_p6, %p7398_p3 }
  0x22   :  { %7408 = shalt.err (!%p7405_p7)
}
  0x23   :  { %s9018_s26 = smov 256   ;;  %s7735_s2 = smov 16  }
  0x24   :  { %60 = dma.hbm_to_vmem [thread:$0]  %s9026_s23, 2048, %s55_s30, [#allocation6], %s9018_s26, %s9018_s26, %s7735_s2  }
  0x25   :  { %s7736_s28 = smov [#allocation8]   ;;  %s7409_s1 = scalar_lea.hbm %s8998_s7, 768 }
  0x26   :  { %s86_s29 = sshll.u32 %s7736_s28, 4  ;;  %p7410_p8 = scmp.ne.s32.totalorder %s8998_s7, %s7409_s1  ;;  %s87_s29 = int_to_ptr.vmem [resolvable:$true] %s86_s29 }
  0x27   :  { %p7413_p9 = scmp.lt.u32.totalorder %s7409_s1, %s8998_s7 }
  0x29   :  { %p7415_p10 = pnand %p7413_p9, %p7410_p8 }
  0x2b   :  { %7418 = shalt.err (!%p7415_p10)
}
  0x2c   :  { %s7419_s25 = scalar_lea.vmem %s87_s29, 768  ;;  %p7424_p12 = scmp.lt.s32.totalorder %s87_s29, %s87_s29 }
  0x2d   :  { %p7420_p11 = scmp.ne.s32.totalorder %s87_s29, %s7419_s25  ;;  %p7425_p13 = scmp.lt.s32.totalorder %s7419_s25, %s7419_s25 }
  0x2f   :  { %p7426_p0 = por %p7425_p13, %p7424_p12 }
  0x31   :  { %p7427_p1 = pnand %p7426_p0, %p7420_p11 }
  0x33   :  { %7430 = shalt.err (!%p7427_p1)
}
  0x34   :  { %s7737_s30 = smov 192   ;;  %s7738_s23 = smov 12  }
  0x35   :  { %92 = dma.hbm_to_vmem [thread:$0]  %s8998_s7, 768, %s87_s29, [#allocation9], %s7737_s30, %s7737_s30, %s7738_s23  }
  0x36   :  { %s7739_s28 = smov [#allocation11]   ;;  %s7431_s5 = scalar_lea.hbm %s9000_s9, 3072 }
  0x37   :  { %s108_s4 = sshll.u32 %s7739_s28, 4  ;;  %p7432_p2 = scmp.ne.s32.totalorder %s9000_s9, %s7431_s5  ;;  %s109_s4 = int_to_ptr.vmem [resolvable:$true] %s108_s4 }
  0x38   :  { %p7435_p3 = scmp.lt.u32.totalorder %s7431_s5, %s9000_s9 }
  0x3a   :  { %p7437_p4 = pnand %p7435_p3, %p7432_p2 }
  0x3c   :  { %7440 = shalt.err (!%p7437_p4)
}
  0x3d   :  { %s7441_s26 = scalar_lea.vmem %s109_s4, 3072  ;;  %p7446_p6 = scmp.lt.s32.totalorder %s109_s4, %s109_s4 }
  0x3e   :  { %p7442_p5 = scmp.ne.s32.totalorder %s109_s4, %s7441_s26  ;;  %p7447_p7 = scmp.lt.s32.totalorder %s7441_s26, %s7441_s26 }
  0x40   :  { %p7448_p8 = por %p7447_p7, %p7446_p6 }
  0x42   :  { %p7449_p9 = pnand %p7448_p8, %p7442_p5 }
  0x44   :  { %7452 = shalt.err (!%p7449_p9)
}
  0x45   :  { %s7740_s7 = smov 128   ;;  %s7741_s29 = smov 8  }
  0x46   :  { %114 = dma.hbm_to_vmem [thread:$0]  %s9000_s9, 3072, %s109_s4, [#allocation12], %s7740_s7, %s7740_s7, %s7741_s29  }
  0x47   :  { %s7742_s27 = smov [#allocation14]   ;;  %s7743_s28 = smov [#allocation17]  }
  0x48   :  { %s132_s3 = sshll.u32 %s7742_s27, 4  ;;  %s154_s0 = sshll.u32 %s7743_s28, 4  ;;  %s133_s3 = int_to_ptr.vmem [resolvable:$true] %s132_s3  ;;  %s155_s0 = int_to_ptr.vmem [resolvable:$true] %s154_s0 }
  0x49   :  { %s7453_s26 = scalar_lea.hbm %s9003_s12, 1536 }
  0x4a   :  { %p7454_p10 = scmp.ne.s32.totalorder %s9003_s12, %s7453_s26  ;;  %p7457_p11 = scmp.lt.u32.totalorder %s7453_s26, %s9003_s12 }
  0x4c   :  { %p7459_p12 = pnand %p7457_p11, %p7454_p10 }
  0x4e   :  { %7462 = shalt.err (!%p7459_p12)
}
  0x4f   :  { %s7463_s9 = scalar_lea.vmem %s133_s3, 1536  ;;  %p7468_p0 = scmp.lt.s32.totalorder %s133_s3, %s133_s3 }
  0x50   :  { %p7464_p13 = scmp.ne.s32.totalorder %s133_s3, %s7463_s9  ;;  %p7469_p1 = scmp.lt.s32.totalorder %s7463_s9, %s7463_s9 }
  0x52   :  { %p7470_p2 = por %p7469_p1, %p7468_p0 }
  0x54   :  { %p7471_p3 = pnand %p7470_p2, %p7464_p13 }
  0x56   :  { %7474 = shalt.err (!%p7471_p3)
}
  0x57   :  { %s7744_s4 = smov 64   ;;  %s7745_s30 = smov 4  }
  0x58   :  { %138 = dma.hbm_to_vmem [thread:$0]  %s9003_s12, 1536, %s133_s3, [#allocation15], %s7744_s4, %s7744_s4, %s7745_s30  }
  0x59   :  { %s7475_s5 = scalar_lea.hbm %s9005_s14, 256 }
  0x5a   :  { %p7476_p4 = scmp.ne.s32.totalorder %s9005_s14, %s7475_s5  ;;  %p7479_p5 = scmp.lt.u32.totalorder %s7475_s5, %s9005_s14 }
  0x5c   :  { %p7481_p6 = pnand %p7479_p5, %p7476_p4 }
  0x5e   :  { %7484 = shalt.err (!%p7481_p6)
}
  0x5f   :  { %s7485_s25 = scalar_lea.vmem %s155_s0, 256  ;;  %p7490_p8 = scmp.lt.s32.totalorder %s155_s0, %s155_s0 }
  0x60   :  { %p7486_p7 = scmp.ne.s32.totalorder %s155_s0, %s7485_s25  ;;  %p7491_p9 = scmp.lt.s32.totalorder %s7485_s25, %s7485_s25 }
  0x62   :  { %p7492_p10 = por %p7491_p9, %p7490_p8 }
  0x64   :  { %p7493_p11 = pnand %p7492_p10, %p7486_p7 }
  0x66   :  { %7496 = shalt.err (!%p7493_p11)
}
  0x67   :  { %160 = dma.hbm_to_vmem [thread:$0]  %s9005_s14, 256, %s155_s0, [#allocation18], %s7744_s4, %s7744_s4, %s7745_s30  }
  0x68   :  { %s7746_s9 = smov [#allocation20]   ;;  %s7747_s27 = smov [#allocation23]  }
  0x69   :  { %s181_s23 = sshll.u32 %s7746_s9, 4  ;;  %s203_s28 = sshll.u32 %s7747_s27, 4  ;;  %s182_s23 = int_to_ptr.vmem [resolvable:$true] %s181_s23  ;;  %s204_s28 = int_to_ptr.vmem [resolvable:$true] %s203_s28 }
  0x6a   :  { %s7497_s26 = scalar_lea.hbm %s9008_s17, 32 }
  0x6b   :  { %p7498_p12 = scmp.ne.s32.totalorder %s9008_s17, %s7497_s26  ;;  %p7501_p13 = scmp.lt.u32.totalorder %s7497_s26, %s9008_s17 }
  0x6d   :  { %p7503_p0 = pnand %p7501_p13, %p7498_p12 }
  0x6f   :  { %7506 = shalt.err (!%p7503_p0)
}
  0x70   :  { %s7507_s14 = scalar_lea.vmem %s182_s23, 32  ;;  %p7512_p2 = scmp.lt.s32.totalorder %s182_s23, %s182_s23 }
  0x71   :  { %p7508_p1 = scmp.ne.s32.totalorder %s182_s23, %s7507_s14  ;;  %p7513_p3 = scmp.lt.s32.totalorder %s7507_s14, %s7507_s14 }
  0x73   :  { %p7514_p4 = por %p7513_p3, %p7512_p2 }
  0x75   :  { %p7515_p5 = pnand %p7514_p4, %p7508_p1 }
  0x77   :  { %7518 = shalt.err (!%p7515_p5)
}
  0x78   :  { %184 = dma.hbm_to_vmem [thread:$0]  %s9008_s17, 32, %s182_s23, [#allocation21]  }
  0x79   :  { %s7519_s27 = scalar_lea.hbm %s9010_s19, 32 }
  0x7a   :  { %p7520_p6 = scmp.ne.s32.totalorder %s9010_s19, %s7519_s27  ;;  %p7523_p7 = scmp.lt.u32.totalorder %s7519_s27, %s9010_s19 }
  0x7c   :  { %p7525_p8 = pnand %p7523_p7, %p7520_p6 }
  0x7e   :  { %7528 = shalt.err (!%p7525_p8)
}
  0x7f   :  { %s7529_s21 = scalar_lea.vmem %s204_s28, 32  ;;  %p7534_p10 = scmp.lt.s32.totalorder %s204_s28, %s204_s28 }
  0x80   :  { %p7530_p9 = scmp.ne.s32.totalorder %s204_s28, %s7529_s21  ;;  %p7535_p11 = scmp.lt.s32.totalorder %s7529_s21, %s7529_s21 }
  0x82   :  { %p7536_p12 = por %p7535_p11, %p7534_p10 }
  0x84   :  { %p7537_p13 = pnand %p7536_p12, %p7530_p9 }
  0x86   :  { %7540 = shalt.err (!%p7537_p13)
}
  0x87   :  { %206 = dma.hbm_to_vmem [thread:$0]  %s9010_s19, 32, %s204_s28, [#allocation24]  }
  0x88   :  { %s7748_s6 = smov [#allocation3]   ;;  %s7749_s14 = smov [#allocation7]  }
  0x89   :  { %s42_s25 = sshll.u32 %s7748_s6, 4  ;;  %s66_s0 = sshll.u32 %s7749_s14, 4  ;;  %s43_s25 = int_to_ptr.vmem [resolvable:$true] %s42_s25  ;;  %s67_s0 = int_to_ptr.vmem [resolvable:$true] %s66_s0 }
  0x8a   :  { %s9027_s9 = sld [smem:[#allocation34_spill]] }
  0x90   :  { %s7541_s27 = scalar_lea.hbm %s9027_s9, 256 }
  0x91   :  { %p7542_p0 = scmp.ne.s32.totalorder %s9027_s9, %s7541_s27  ;;  %p7545_p1 = scmp.lt.u32.totalorder %s7541_s27, %s9027_s9 }
  0x93   :  { %p7547_p2 = pnand %p7545_p1, %p7542_p0 }
  0x95   :  { %7550 = shalt.err (!%p7547_p2)
}
  0x96   :  { %s7551_s19 = scalar_lea.vmem %s43_s25, 256  ;;  %p7556_p4 = scmp.lt.s32.totalorder %s43_s25, %s43_s25 }
  0x97   :  { %p7552_p3 = scmp.ne.s32.totalorder %s43_s25, %s7551_s19  ;;  %p7557_p5 = scmp.lt.s32.totalorder %s7551_s19, %s7551_s19 }
  0x99   :  { %p7558_p6 = por %p7557_p5, %p7556_p4 }
  0x9b   :  { %p7559_p7 = pnand %p7558_p6, %p7552_p3 }
  0x9d   :  { %7562 = shalt.err (!%p7559_p7)
}
  0x9e   :  { %48 = dma.hbm_to_vmem [thread:$0]  %s9027_s9, 256, %s43_s25, [#allocation4], %s7744_s4, %s7744_s4, %s7745_s30  }
  0x9f   :  { %s9028_s6 = sld [smem:[#allocation36_spill]] }
  0xa5   :  { %s7563_s14 = scalar_lea.hbm %s9028_s6, 2048 }
  0xa6   :  { %p7564_p8 = scmp.ne.s32.totalorder %s9028_s6, %s7563_s14  ;;  %p7567_p9 = scmp.lt.u32.totalorder %s7563_s14, %s9028_s6 }
  0xa8   :  { %p7569_p10 = pnand %p7567_p9, %p7564_p8 }
  0xaa   :  { %7572 = shalt.err (!%p7569_p10)
}
  0xab   :  { %s7573_s5 = scalar_lea.vmem %s67_s0, 2048  ;;  %p7578_p12 = scmp.lt.s32.totalorder %s67_s0, %s67_s0 }
  0xac   :  { %p7574_p11 = scmp.ne.s32.totalorder %s67_s0, %s7573_s5  ;;  %p7579_p13 = scmp.lt.s32.totalorder %s7573_s5, %s7573_s5 }
  0xae   :  { %p7580_p0 = por %p7579_p13, %p7578_p12 }
  0xb0   :  { %p7581_p1 = pnand %p7580_p0, %p7574_p11 }
  0xb2   :  { %7584 = shalt.err (!%p7581_p1)
}
  0xb3   :  { %s9029_s30 = smov 256   ;;  %s7750_s26 = smov [#allocation10]  }
  0xb4   :  { %72 = dma.hbm_to_vmem [thread:$0]  %s9028_s6, 2048, %s67_s0, [#allocation6], %s9029_s30, %s9029_s30, %s7735_s2  }
  0xb5   :  { %s99_s24 = sshll.u32 %s7750_s26, 4  ;;  %s7751_s19 = smov [#allocation13]   ;;  %s100_s24 = int_to_ptr.vmem [resolvable:$true] %s99_s24 }
  0xb6   :  { %s121_s28 = sshll.u32 %s7751_s19, 4  ;;  %s7585_s23 = scalar_lea.hbm %s8999_s8, 32  ;;  %s122_s28 = int_to_ptr.vmem [resolvable:$true] %s121_s28 }
  0xb7   :  { %p7586_p2 = scmp.ne.s32.totalorder %s8999_s8, %s7585_s23  ;;  %p7589_p3 = scmp.lt.u32.totalorder %s7585_s23, %s8999_s8 }
  0xb9   :  { %p7591_p4 = pnand %p7589_p3, %p7586_p2 }
  0xbb   :  { %7594 = shalt.err (!%p7591_p4)
}
  0xbc   :  { %s7595_s2 = scalar_lea.vmem %s100_s24, 32  ;;  %p7600_p6 = scmp.lt.s32.totalorder %s100_s24, %s100_s24 }
  0xbd   :  { %p7596_p5 = scmp.ne.s32.totalorder %s100_s24, %s7595_s2  ;;  %p7601_p7 = scmp.lt.s32.totalorder %s7595_s2, %s7595_s2 }
  0xbf   :  { %p7602_p8 = por %p7601_p7, %p7600_p6 }
  0xc1   :  { %p7603_p9 = pnand %p7602_p8, %p7596_p5 }
  0xc3   :  { %7606 = shalt.err (!%p7603_p9)
}
  0xc4   :  { %102 = dma.hbm_to_vmem [thread:$0]  %s8999_s8, 32, %s100_s24, [#allocation9]  }
  0xc5   :  { %s7607_s30 = scalar_lea.hbm %s9001_s10, 32 }
  0xc6   :  { %p7608_p10 = scmp.ne.s32.totalorder %s9001_s10, %s7607_s30  ;;  %p7611_p11 = scmp.lt.u32.totalorder %s7607_s30, %s9001_s10 }
  0xc8   :  { %p7613_p12 = pnand %p7611_p11, %p7608_p10 }
  0xca   :  { %7616 = shalt.err (!%p7613_p12)
}
  0xcb   :  { %s7617_s21 = scalar_lea.vmem %s122_s28, 32  ;;  %p7622_p0 = scmp.lt.s32.totalorder %s122_s28, %s122_s28 }
  0xcc   :  { %p7618_p13 = scmp.ne.s32.totalorder %s122_s28, %s7617_s21  ;;  %p7623_p1 = scmp.lt.s32.totalorder %s7617_s21, %s7617_s21 }
  0xce   :  { %p7624_p2 = por %p7623_p1, %p7622_p0 }
  0xd0   :  { %p7625_p3 = pnand %p7624_p2, %p7618_p13 }
  0xd2   :  { %7628 = shalt.err (!%p7625_p3)
}
  0xd3   :  { %124 = dma.hbm_to_vmem [thread:$0]  %s9001_s10, 32, %s122_s28, [#allocation12]  }
  0xd4   :  { %s7752_s17 = smov [#allocation16]   ;;  %s7753_s14 = smov [#allocation19]  }
  0xd5   :  { %s145_s23 = sshll.u32 %s7752_s17, 4  ;;  %s168_s12 = sshll.u32 %s7753_s14, 4  ;;  %s146_s23 = int_to_ptr.vmem [resolvable:$true] %s145_s23  ;;  %s169_s12 = int_to_ptr.vmem [resolvable:$true] %s168_s12 }
  0xd6   :  { %s7629_s2 = scalar_lea.hbm %s9004_s13, 16 }
  0xd7   :  { %p7630_p4 = scmp.ne.s32.totalorder %s9004_s13, %s7629_s2  ;;  %p7633_p5 = scmp.lt.u32.totalorder %s7629_s2, %s9004_s13 }
  0xd9   :  { %p7635_p6 = pnand %p7633_p5, %p7630_p4 }
  0xdb   :  { %7638 = shalt.err (!%p7635_p6)
}
  0xdc   :  { %s7639_s10 = scalar_lea.vmem %s146_s23, 16  ;;  %s7643_s28 = scalar_lea.vmem %s146_s23, 32 }
  0xdd   :  { %p7640_p7 = scmp.ne.s32.totalorder %s146_s23, %s7639_s10  ;;  %p7644_p8 = scmp.lt.s32.totalorder %s146_s23, %s146_s23 }
  0xde   :  { %p7645_p9 = scmp.lt.s32.totalorder %s7643_s28, %s7639_s10 }
  0xe0   :  { %p7646_p10 = por %p7645_p9, %p7644_p8 }
  0xe2   :  { %p7647_p11 = pnand %p7646_p10, %p7640_p7 }
  0xe4   :  { %7650 = shalt.err (!%p7647_p11)
}
  0xe5   :  { %148 = dma.hbm_to_vmem [thread:$0]  %s9004_s13, 16, %s146_s23, [#allocation15]  }
  0xe6   :  { %s7651_s19 = scalar_lea.hbm %s9007_s16, 512 }
  0xe7   :  { %p7652_p12 = scmp.ne.s32.totalorder %s9007_s16, %s7651_s19  ;;  %p7655_p13 = scmp.lt.u32.totalorder %s7651_s19, %s9007_s16 }
  0xe9   :  { %p7657_p0 = pnand %p7655_p13, %p7652_p12 }
  0xeb   :  { %7660 = shalt.err (!%p7657_p0)
}
  0xec   :  { %s7661_s14 = scalar_lea.vmem %s169_s12, 512  ;;  %p7666_p2 = scmp.lt.s32.totalorder %s169_s12, %s169_s12 }
  0xed   :  { %p7662_p1 = scmp.ne.s32.totalorder %s169_s12, %s7661_s14  ;;  %p7667_p3 = scmp.lt.s32.totalorder %s7661_s14, %s7661_s14 }
  0xef   :  { %p7668_p4 = por %p7667_p3, %p7666_p2 }
  0xf1   :  { %p7669_p5 = pnand %p7668_p4, %p7662_p1 }
  0xf3   :  { %7672 = shalt.err (!%p7669_p5)
}
  0xf4   :  { %174 = dma.hbm_to_vmem [thread:$0]  %s9007_s16, 512, %s169_s12, [#allocation18], %s7740_s7, %s7740_s7, %s7741_s29  }
  0xf5   :  { %s7754_s3 = smov [#allocation22]   ;;  %s7755_s2 = smov [#allocation25]  }
  0xf6   :  { %s190_s27 = sshll.u32 %s7754_s3, 4  ;;  %s213_s0 = sshll.u32 %s7755_s2, 4  ;;  %s191_s27 = int_to_ptr.vmem [resolvable:$true] %s190_s27  ;;  %s214_s0 = int_to_ptr.vmem [resolvable:$true] %s213_s0 }
  0xf7   :  { %s7673_s5 = scalar_lea.hbm %s9009_s18, 3072 }
  0xf8   :  { %p7674_p6 = scmp.ne.s32.totalorder %s9009_s18, %s7673_s5  ;;  %p7677_p7 = scmp.lt.u32.totalorder %s7673_s5, %s9009_s18 }
  0xfa   :  { %p7679_p8 = pnand %p7677_p7, %p7674_p6 }
  0xfc   :  { %7682 = shalt.err (!%p7679_p8)
}
  0xfd   :  { %s7683_s16 = scalar_lea.vmem %s191_s27, 3072  ;;  %p7688_p10 = scmp.lt.s32.totalorder %s191_s27, %s191_s27 }
  0xfe   :  { %p7684_p9 = scmp.ne.s32.totalorder %s191_s27, %s7683_s16  ;;  %p7689_p11 = scmp.lt.s32.totalorder %s7683_s16, %s7683_s16 }
 0x100   :  { %p7690_p12 = por %p7689_p11, %p7688_p10 }
 0x102   :  { %p7691_p13 = pnand %p7690_p12, %p7684_p9 }
 0x104   :  { %7694 = shalt.err (!%p7691_p13)
}
 0x105   :  { %196 = dma.hbm_to_vmem [thread:$0]  %s9009_s18, 3072, %s191_s27, [#allocation21], %s7740_s7, %s7740_s7, %s7741_s29  }
 0x106   :  { %s7695_s21 = scalar_lea.hbm %s9011_s20, 32 }
 0x107   :  { %p7696_p0 = scmp.ne.s32.totalorder %s9011_s20, %s7695_s21  ;;  %p7699_p1 = scmp.lt.u32.totalorder %s7695_s21, %s9011_s20 }
 0x109   :  { %p7701_p2 = pnand %p7699_p1, %p7696_p0 }
 0x10b   :  { %7704 = shalt.err (!%p7701_p2)
}
 0x10c   :  { %s7705_s13 = scalar_lea.vmem %s214_s0, 32  ;;  %p7710_p4 = scmp.lt.s32.totalorder %s214_s0, %s214_s0 }
 0x10d   :  { %p7706_p3 = scmp.ne.s32.totalorder %s214_s0, %s7705_s13  ;;  %p7711_p5 = scmp.lt.s32.totalorder %s7705_s13, %s7705_s13 }
 0x10f   :  { %p7712_p6 = por %p7711_p5, %p7710_p4 }
 0x111   :  { %p7713_p7 = pnand %p7712_p6, %p7706_p3 }
 0x113   :  { %7716 = shalt.err (!%p7713_p7)
}
 0x114   :  { %216 = dma.hbm_to_vmem [thread:$0]  %s9011_s20, 32, %s214_s0, [#allocation24]  }
 0x115   :  { %7717 = dma.done.wait [#allocation4], 256  }
 0x116   :  { %7718 = vsyncadd [#allocation4], 4294967040 }
 0x117   :  { %7719 = dma.done.wait [#allocation6], 4096  }
 0x118   :  { %7720 = vsyncadd [#allocation6], 4294963200 }
 0x119   :  { %7721 = dma.done.wait [#allocation9], 800  }
 0x11a   :  { %7722 = vsyncadd [#allocation9], 4294966496 }
 0x11b   :  { %7723 = dma.done.wait [#allocation12], 3104  }
 0x11c   :  { %7724 = vsyncadd [#allocation12], 4294964192 }
 0x11d   :  { %7725 = dma.done.wait [#allocation15], 1552  }
 0x11e   :  { %7726 = vsyncadd [#allocation15], 4294965744 }
 0x11f   :  { %7727 = dma.done.wait [#allocation18], 768  }
 0x120   :  { %7728 = vsyncadd [#allocation18], 4294966528 }
 0x121   :  { %7729 = dma.done.wait [#allocation21], 3104  }
 0x122   :  { %7730 = vsyncadd [#allocation21], 4294964192 }
 0x123   :  { %7731 = dma.done.wait [#allocation24], 64  }
 0x124   :  { %7732 = vsyncadd [#allocation24], 4294967232  ;;  %v7756_v1 = vmov 0   ;;  %v6837_v2 = vld [vmem:[#allocation11 + $0x4] ss:$8 sps:$4 sm:$0xff]   ;;  %s9030_s23 = sld [smem:[#allocation37_spill]]  ;;  %v407_v38 = vlaneseq }
 0x125   :  { %356 = vmatprep.mubr.bf16.mxu1 %v7756_v1  ;;  %6836 = vset.pattern.permute.xlu0 %v7756_v1  ;;  %v6839_v3 = vld [vmem:[#allocation11] ss:$8 sps:$4 sm:$0xff]   ;;  %v6840_v4 = vld [vmem:[#allocation11 + $0x14] ss:$8 sps:$4 sm:$0xff]   ;;  %v6842_v5 = vld [vmem:[#allocation11 + $0x10] ss:$8 sps:$4 sm:$0xff]  }
 0x126   :  { %6835 = vset.pattern.permute.xlu1 %v7756_v1  ;;  %581 = vmatprep.subr.bf16.mxu0 %v6837_v2  ;;  %v6843_v6 = vld [vmem:[#allocation11 + $0x24] ss:$8 sps:$4 sm:$0xff]   ;;  %v6845_v7 = vld [vmem:[#allocation11 + $0x20] ss:$8 sps:$4 sm:$0xff]   ;;  %v6846_v8 = vld [vmem:[#allocation11 + $0x34] ss:$8 sps:$4 sm:$0xff]  }
 0x127   :  { %582 = vmatpush1.bf16.msra.mxu0 %v6839_v3  ;;  %v6848_v9 = vld [vmem:[#allocation11 + $0x30] ss:$8 sps:$4 sm:$0xff]   ;;  %v6849_v12 = vld [vmem:[#allocation11 + $0x44] ss:$8 sps:$4 sm:$0xff]   ;;  %v6851_v15 = vld [vmem:[#allocation11 + $0x40] ss:$8 sps:$4 sm:$0xff]  }
 0x128   :  { %583 = vmatprep.subr.bf16.mxu0 %v6840_v4  ;;  %v6860_v10 = vld [vmem:[#allocation8 + $0x4] ss:$12 sps:$4 sm:$0xff]   ;;  %v6863_v11 = vld [vmem:[#allocation8] ss:$12 sps:$4 sm:$0xff]   ;;  %v6866_v13 = vld [vmem:[#allocation8 + $0x1c] ss:$12 sps:$4 sm:$0xff]  }
 0x129   :  { %324 = vmatprep.subr.bf16.mxu1 %v6860_v10  ;;  %v6869_v14 = vld [vmem:[#allocation8 + $0x18] ss:$12 sps:$4 sm:$0xff]   ;;  %vm320_vm0 = vcmask 261120   ;;  %v277_v20 = vld [vmem:[#allocation7 + $0x8] sm:$0xff]  ;;  %vm577_vm1 = vcmask 523264   ;;  %v278_v36 = vld [vmem:[#allocation7 + $0x10] sm:$0xff] }
 0x12a   :  { %325 = vmatpush1.bf16.msra.mxu1 %v6863_v11  ;;  %v268_v16 = vld [vmem:[%s9030_s23] sm:$0x3]  ;;  %v6854_v19 = vld [vmem:[#allocation11 + $0x50] ss:$8 sps:$4 sm:$0xff]   ;;  %v279_v21 = vld [vmem:[#allocation7 + $0x18] sm:$0xff]  ;;  %v8095_v39 = vshrl.u32 %v407_v38, 7 }
 0x12b   :  { %584 = vmatpush1.bf16.msra.mxu0 %v6842_v5  ;;  %326 = vmatprep.subr.bf16.mxu1 %v6866_v13  ;;  %v6852_v17 = vld [vmem:[#allocation11 + $0x54] ss:$8 sps:$4 sm:$0xff]   ;;  %v8089_v18 = vpack.c.bf16 %v268_v16, %v268_v16  ;;  %v6855_v22 = vld [vmem:[#allocation11 + $0x64] ss:$8 sps:$4 sm:$0xff]   ;;  %v420_v23 = vpack.c.bf16 %v279_v21, %v277_v20  ;;  %v6857_v24 = vld [vmem:[#allocation11 + $0x60] ss:$8 sps:$4 sm:$0xff]  }
 0x12c   :  { %585 = vmatprep.subr.bf16.mxu0 %v6843_v6  ;;  %v6858_v25 = vld [vmem:[#allocation11 + $0x74] ss:$8 sps:$4 sm:$0xff]   ;;  %v6862_v26 = vld [vmem:[#allocation11 + $0x70] ss:$8 sps:$4 sm:$0xff]   ;;  %v6864_v27 = vld [vmem:[#allocation11 + $0x84] ss:$8 sps:$4 sm:$0xff]  }
 0x12d   :  { %6276 = vmatprep.mubr.msk.bf16.mxu0 %vm577_vm1, %v420_v23  ;;  %v6868_v28 = vld [vmem:[#allocation11 + $0x80] ss:$8 sps:$4 sm:$0xff]   ;;  %v6870_v29 = vld [vmem:[#allocation11 + $0x94] ss:$8 sps:$4 sm:$0xff]   ;;  %v6872_v30 = vld [vmem:[#allocation11 + $0x90] ss:$8 sps:$4 sm:$0xff]  }
 0x12e   :  { %327 = vmatpush1.bf16.msra.mxu1 %v6869_v14  ;;  %v6873_v31 = vld [vmem:[#allocation11 + $0xa4] ss:$8 sps:$4 sm:$0xff]   ;;  %v6875_v32 = vld [vmem:[#allocation11 + $0xa0] ss:$8 sps:$4 sm:$0xff]   ;;  %v6876_v33 = vld [vmem:[#allocation11 + $0xb4] ss:$8 sps:$4 sm:$0xff]  }
 0x12f   :  { %586 = vmatpush1.bf16.msra.mxu0 %v6845_v7  ;;  %v6878_v34 = vld [vmem:[#allocation11 + $0xb0] ss:$8 sps:$4 sm:$0xff]   ;;  %v8098_v40 = vsub.s32 0, %v8095_v39  ;;  %v405_v41 = vld [vmem:[#allocation10] sm:$0x3]  ;;  %v8101_v42 = vsub.s32 1, %v8095_v39 }
 0x130   :  { %587 = vmatprep.subr.bf16.mxu0 %v6846_v8  ;;  %v276_v35 = vld [vmem:[#allocation7] sm:$0xff]  ;;  %v7757_v52 = vmov 1966171168   ;;  %v445_v58 = vld [vmem:[#allocation13] sm:$0x3]  ;;  %vm691_vm2 = vcmask 1041409  }
 0x131   :  { %6250 = vmatmul.mubr.msk.bf16.vlgmr.msra.gmra.mrb[0].mxu1 %vm320_vm0, %v8089_v18  ;;  %v419_v37 = vpack.c.bf16 %v278_v36, %v276_v35  ;;  %v410_v43 = vrot.slane %v405_v41, %v8098_v40  ;;  %v414_v44 = vrot.slane %v405_v41, %v8101_v42  ;;  %v628_v53 = vunpack.c.l.s4 %v7757_v52  ;;  %v6884_v52 = vld [vmem:[#allocation14 + $0x8] sm:$0xff]   ;;  %s9031_s23 = sld [smem:[#allocation38_spill]]  ;;  %s7760_s3 = smov 32  }
 0x132   :  { %v450_v60 = vrot.slane %v445_v58, %v8098_v40  ;;  %v454_v62 = vrot.slane %v445_v58, %v8101_v42  ;;  %vm694_vm3 = vcmask 58368   ;;  %vm7759_vm4 = vmmov 0   ;;  %v6890_v58 = vld [vmem:[#allocation14 + $0x20] sm:$0xff]   ;;  %s9032_s0 = sld [smem:[#allocation39_spill]]  ;;  %s9033_s28 = sld [smem:[#allocation40_spill]] }
 0x133   :  { %588 = vmatpush1.bf16.msra.mxu0 %v6848_v9  ;;  %v629_v54 = vunpack.c.0.s8 %v628_v53  ;;  %v6887_v53 = vld [vmem:[%s9002_s11 + $0x18] sm:$0xff]   ;;  %vm1766_vm6 = vcmask 588800   ;;  %vm1768_vm7 = vcmask 654336  }
 0x134   :  { %589 = vmatprep.subr.bf16.mxu0 %v6849_v12 }
 0x135   :  { %v8106_v55 = vsub.s32 %v629_v54, %v8095_v39  ;;  %v6886_v54 = vld [vmem:[#allocation14 + $0x10] sm:$0xff]  }
 0x137   :  { %590 = vmatpush1.bf16.msra.mxu0 %v6851_v15 }
 0x138   :  { %591 = vmatprep.subr.bf16.mxu0 %v6852_v17 }
 0x13b   :  { %592 = vmatpush1.bf16.msra.mxu0 %v6854_v19  ;;  %v8117_v19 = vand.u32 127, %v407_v38 }
 0x13c   :  { %593 = vmatprep.subr.bf16.mxu0 %v6855_v22 }
 0x13d   :  { %v8121_v21 = vsub.s32 %v8117_v19, %v8095_v39 }
 0x13f   :  { %594 = vmatpush1.bf16.msra.mxu0 %v6857_v24 }
 0x140   :  { %595 = vmatprep.subr.bf16.mxu0 %v6858_v25 }
 0x143   :  { %596 = vmatpush1.bf16.msra.mxu0 %v6862_v26 }
 0x144   :  { %597 = vmatprep.subr.bf16.mxu0 %v6864_v27 }
 0x147   :  { %598 = vmatpush1.bf16.msra.mxu0 %v6868_v28 }
 0x148   :  { %599 = vmatprep.subr.bf16.mxu0 %v6870_v29 }
 0x14b   :  { %600 = vmatpush1.bf16.msra.mxu0 %v6872_v30 }
 0x14c   :  { %601 = vmatprep.subr.bf16.mxu0 %v6873_v31 }
 0x14f   :  { %602 = vmatpush1.bf16.msra.mxu0 %v6875_v32 }
 0x150   :  { %603 = vmatprep.subr.bf16.mxu0 %v6876_v33 }
 0x153   :  { %604 = vmatpush1.bf16.msra.mxu0 %v6878_v34 }
 0x154   :  { %1058 = vmatprep.subr.bf16.mxu0 %v7756_v1 }
 0x156   :  { %614 = vmatmul.mubr.bf16.vlgmr.msra.gmra.mrb[0].mxu0 %v419_v37 }
 0x204   :  { %v358_v45 = vpop.f32.mrb[0].mxu1 }
 0x205   :  { %v417_v46 = vadd.f32 %v410_v43, %v358_v45  ;;  %v360_v47 = vpop.f32.mrb[1].mxu1  ;;  %v6879_v45 = vld [vmem:[#allocation8 + $0x8] ss:$12 sps:$4 sm:$0xff]  }
 0x206   :  { %v418_v48 = vadd.f32 %v414_v44, %v360_v47  ;;  %v362_v49 = vpop.f32.mrb[2].mxu1  ;;  %v6881_v47 = vld [vmem:[%s9002_s11] sm:$0xff]  }
 0x207   :  { %v363_v50 = vpop.f32.mrb[3].mxu1  ;;  %1059 = vmatpush1.bf16.msra.mxu0 %v6881_v47  ;;  %v6883_v49 = vld [vmem:[%s9002_s11 + $0x8] sm:$0xff]  }
 0x208   :  { %v626_v51 = vcombine.low %v417_v46, %v418_v48  ;;  %v7758_v46 = vmov 0.0   ;;  %v6880_v48 = vld [vmem:[#allocation8 + $0x20] ss:$12 sps:$4 sm:$0xff]   ;;  %1060 = vmatprep.subr.bf16.mxu0 %v7756_v1  ;;  %v6882_v50 = vld [vmem:[#allocation14] sm:$0xff]  }
 0x209   :  { %6695 = vmatprep.subr.bf16.mxu1 %v7758_v46  ;;  %6699 = vmatprep.mubr.msk.bf16.mxu1 %vm7759_vm4, %v7758_v46  ;;  %v7382_v47 = vld [vmem:[#allocation7 + $0x18] sm:$0xff] }
 0x20a   :  { %v633_v56 = vrot.slane %v626_v51, %v8106_v55  ;;  %6696 = vmatpush3.bf16.msra.mxu1 %v6879_v45  ;;  %v6885_v51 = vld [vmem:[%s9002_s11 + $0x10] sm:$0xff]  }
 0x20b   :  { %6697 = vmatprep.subr.bf16.mxu1 %v7758_v46  ;;  %1061 = vmatpush1.bf16.msra.mxu0 %v6883_v49 }
 0x20c   :  { %v634_v57 = vcombine.high %v633_v56, %v633_v56  ;;  %v641_v59 = vrot.slane %v633_v56, %v8106_v55  ;;  %1062 = vmatprep.subr.bf16.mxu0 %v7756_v1  ;;  %v6888_v56 = vld [vmem:[#allocation14 + $0x18] sm:$0xff]  }
 0x20e   :  { %v648_v61 = vrot.slane %v634_v57, %v8106_v55  ;;  %v652_v63 = vrot.slane %v641_v59, %v8098_v40  ;;  %v656_v2 = vrot.slane %v641_v59, %v8101_v42  ;;  %6698 = vmatpush3.bf16.msra.mxu1 %v6880_v48  ;;  %v6891_v57 = vld [vmem:[%s9002_s11 + $0x28] sm:$0xff]  }
 0x20f   :  { %943 = vmatprep.subr.bf16.mxu1 %v7756_v1  ;;  %1063 = vmatpush1.bf16.msra.mxu0 %v6885_v51 }
 0x210   :  { %v660_v5 = vrot.slane %v648_v61, %v8098_v40  ;;  %v664_v8 = vrot.slane %v648_v61, %v8101_v42  ;;  %1064 = vmatprep.subr.bf16.mxu0 %v7756_v1 }
 0x211   :  { %6700 = vmatmul.mubr.msk.bf16.vlgmr.msra.gmra.mrb[4].mxu1 %vm320_vm0, %v8089_v18  ;;  %v6889_v18 = vld [vmem:[%s9002_s11 + $0x20] sm:$0xff]  }
 0x212   :  { %944 = vmatpush1.bf16.msra.mxu1 %v6882_v50 }
 0x213   :  { %945 = vmatprep.subr.bf16.mxu1 %v7756_v1  ;;  %1065 = vmatpush1.bf16.msra.mxu0 %v6887_v53 }
 0x214   :  { %1066 = vmatprep.subr.bf16.mxu0 %v7756_v1 }
 0x216   :  { %946 = vmatpush1.bf16.msra.mxu1 %v6884_v52 }
 0x217   :  { %947 = vmatprep.subr.bf16.mxu1 %v7756_v1  ;;  %1067 = vmatpush1.bf16.msra.mxu0 %v6889_v18 }
 0x218   :  { %1068 = vmatprep.subr.bf16.mxu0 %v7756_v1 }
 0x21a   :  { %948 = vmatpush1.bf16.msra.mxu1 %v6886_v54 }
 0x21b   :  { %949 = vmatprep.subr.bf16.mxu1 %v7756_v1  ;;  %1069 = vmatpush1.bf16.msra.mxu0 %v6891_v57 }
 0x21c   :  { %1070 = vmatprep.subr.bf16.mxu0 %v7756_v1 }
 0x21e   :  { %950 = vmatpush1.bf16.msra.mxu1 %v6888_v56 }
 0x21f   :  { %951 = vmatprep.subr.bf16.mxu1 %v7756_v1 }
 0x222   :  { %952 = vmatpush1.bf16.msra.mxu1 %v6890_v58 }
 0x223   :  { %953 = vmatprep.subr.bf16.mxu1 %v7756_v1 }
 0x229   :  { %v615_v0 = vpop.f32.mrb[0].mxu0 }
 0x22a   :  { %v616_v3 = vadd.f32 %v615_v0, %v450_v60  ;;  %v617_v4 = vpop.f32.mrb[1].mxu0  ;;  %v6892_v0 = vld [vmem:[#allocation14 + $0x28] sm:$0xff]  }
 0x22b   :  { %v618_v6 = vadd.f32 %v617_v4, %v454_v62  ;;  %v619_v7 = vpop.f32.mrb[2].mxu0  ;;  %954 = vmatpush1.bf16.msra.mxu1 %v6892_v0  ;;  %v6894_v4 = vld [vmem:[#allocation14 + $0x30] sm:$0xff]  }
 0x22c   :  { %v620_v9 = vadd.f32 %v619_v7, %v450_v60  ;;  %v621_v10 = vpop.f32.mrb[3].mxu0  ;;  %v669_v11 = vmul.f32 %v652_v63, %v616_v3  ;;  %955 = vmatprep.subr.bf16.mxu1 %v7756_v1  ;;  %v6897_v7 = vld [vmem:[%s9002_s11 + $0x40] sm:$0xff]  }
 0x22d   :  { %v622_v12 = vadd.f32 %v621_v10, %v454_v62  ;;  %v670_v13 = vmul.f32 %v656_v2, %v618_v6  ;;  %v6893_v2 = vld [vmem:[%s9002_s11 + $0x30] sm:$0xff]   ;;  %v6896_v6 = vld [vmem:[#allocation14 + $0x38] sm:$0xff]  }
 0x22e   :  { %v671_v14 = vmul.f32 %v660_v5, %v620_v9  ;;  %1071 = vmatpush1.bf16.msra.mxu0 %v6893_v2  ;;  %v6895_v5 = vld [vmem:[%s9002_s11 + $0x38] sm:$0xff]   ;;  %v6899_v9 = vld [vmem:[%s9002_s11 + $0x48] sm:$0xff]  }
 0x22f   :  { %v672_v15 = vmul.f32 %v664_v8, %v622_v12  ;;  %v673_v16 = vadd.f32 %v670_v13, %v669_v11  ;;  %1072 = vmatprep.subr.bf16.mxu0 %v7756_v1  ;;  %956 = vmatpush1.bf16.msra.mxu1 %v6894_v4  ;;  %v6898_v8 = vld [vmem:[#allocation14 + $0x40] sm:$0xff]   ;;  %v6900_v10 = vld [vmem:[#allocation14 + $0x48] sm:$0xff]   ;;  %v6902_v12 = vld [vmem:[#allocation14 + $0x50] sm:$0xff]  }
 0x230   :  { %957 = vmatprep.subr.bf16.mxu1 %v7756_v1  ;;  %v6901_v11 = vld [vmem:[%s9002_s11 + $0x50] sm:$0xff]   ;;  %v6277_v13 = vld.sshfl [vmem:[#allocation3] sm:$0x33 pattern:$0x76325410] }
 0x231   :  { %674 = vadd.xlane.f32.xlu0 %v673_v16  ;;  %v676_v17 = vadd.f32 %v672_v15, %v671_v14  ;;  %v6903_v14 = vld [vmem:[%s9002_s11 + $0x58] sm:$0xff]   ;;  %v798_v15 = vcombine.high %v6277_v13, %v6277_v13 }
 0x232   :  { %1073 = vmatpush1.bf16.msra.mxu0 %v6895_v5 }
 0x233   :  { %1074 = vmatprep.subr.bf16.mxu0 %v7756_v1  ;;  %958 = vmatpush1.bf16.msra.mxu1 %v6896_v6  ;;  %v802_v16 = vpack.c.bf16 %v798_v15, %v798_v15 }
 0x234   :  { %959 = vmatprep.subr.bf16.mxu1 %v7756_v1 }
 0x235   :  { %677 = vadd.xlane.f32.xlu0 %v676_v17  ;;  %v6904_v17 = vld [vmem:[#allocation14 + $0x58] sm:$0xff]   ;;  %6303 = vmatprep.mubr.msk.bf16.mxu0 %vm577_vm1, %v802_v16 }
 0x236   :  { %1075 = vmatpush1.bf16.msra.mxu0 %v6897_v7 }
 0x237   :  { %1076 = vmatprep.subr.bf16.mxu0 %v7756_v1  ;;  %960 = vmatpush1.bf16.msra.mxu1 %v6898_v8 }
 0x238   :  { %961 = vmatprep.subr.bf16.mxu1 %v7756_v1 }
 0x23a   :  { %1077 = vmatpush1.bf16.msra.mxu0 %v6899_v9 }
 0x23b   :  { %1078 = vmatprep.subr.bf16.mxu0 %v7756_v1  ;;  %962 = vmatpush1.bf16.msra.mxu1 %v6900_v10 }
 0x23c   :  { %963 = vmatprep.subr.bf16.mxu1 %v7756_v1 }
 0x23e   :  { %1079 = vmatpush1.bf16.msra.mxu0 %v6901_v11 }
 0x23f   :  { %1080 = vmatprep.subr.bf16.mxu0 %v7756_v1  ;;  %964 = vmatpush1.bf16.msra.mxu1 %v6902_v12 }
 0x240   :  { %965 = vmatprep.subr.bf16.mxu1 %v7756_v1 }
 0x242   :  { %1081 = vmatpush1.bf16.msra.mxu0 %v6903_v14 }
 0x243   :  { %966 = vmatpush1.bf16.msra.mxu1 %v6904_v17 }
 0x244   :  { %6703 = vmatprep.subr.bf16.mxu1 %v7758_v46 }
 0x2be   :  { %v675_v20 = vpop.xlane.xlu0 %674 }
 0x2bf   :  { %v686_v23 = vrot.slane %v675_v20, %v8121_v21 }
 0x2c2   :  { %v678_v22 = vpop.xlane.xlu0 %677 }
 0x2c3   :  { %v690_v24 = vrot.slane %v678_v22, %v8121_v21 }
 0x2c5   :  { %v692_v25 = vsel %vm691_vm2, %v690_v24, %v686_v23  ;;  %v7376_v23 = vld [vmem:[#allocation8] ss:$12 sps:$4 sm:$0xff]   ;;  %v7377_v24 = vld [vmem:[#allocation8 + $0x1c] ss:$12 sps:$4 sm:$0xff]  }
 0x2c6   :  { %v695_v26 = vsel %vm694_vm3, %v692_v25, -inf  ;;  %v269_v25 = vld [vmem:[%s9031_s23] sm:$0x3] }
 0x2c7   :  { %696 = vmax.xlane.f32.xlu1 %v695_v26  ;;  %v7378_v26 = vld [vmem:[#allocation8 + $0x18] ss:$12 sps:$4 sm:$0xff]  }
 0x354   :  { %v697_v27 = vpop.xlane.xlu1 %696 }
 0x355   :  { %v702_v28 = vrot.slane %v697_v27, %v8098_v40  ;;  %v706_v29 = vrot.slane %v697_v27, %v8101_v42  ;;  %v8212_v27 = vpop.f32.mrb[4].mxu1 }
 0x357   :  { %v709_v30 = vsub.f32 %v675_v20, %v702_v28  ;;  %v710_v31 = vsub.f32 %v678_v22, %v706_v29  ;;  %v801_v20 = vpack.c.bf16 %v6277_v13, %v6277_v13  ;;  %v7375_v22 = vld [vmem:[#allocation8 + $0x4] ss:$12 sps:$4 sm:$0xff]   ;;  %v6701_v28 = vpop.f32.mrb[5].mxu1 }
 0x358   :  { %1823 = vmatprep.subr.bf16.mxu0 %v7375_v22  ;;  %v402_v29 = vpop.f32.mrb[6].mxu1 }
 0x359   :  { %v711_v32 = vmul.f32 1.442695, %v709_v30  ;;  %v713_v33 = vmul.f32 1.442695, %v710_v31  ;;  %1091 = vmatmul.mubr.bf16.vlgmr.msra.gmra.mrb[4].mxu0 %v801_v20  ;;  %v6702_v30 = vpop.f32.mrb[7].mxu1 }
 0x35a   :  { %1824 = vmatpush1.bf16.msra.mxu0 %v7376_v23  ;;  %1855 = vmatprep.mubr.bf16.mxu0 %v7756_v1 }
 0x35b   :  { %7295 = vpow2.f32 %v711_v32  ;;  %1825 = vmatprep.subr.bf16.mxu0 %v7377_v24  ;;  %v7379_v32 = vld [vmem:[#allocation7] sm:$0xff] }
 0x35c   :  { %7297 = vpow2.f32 %v713_v33 }
 0x35e   :  { %1826 = vmatpush1.bf16.msra.mxu0 %v7378_v26 }
 0x35f   :  { %6723 = vmatprep.subr.bf16.mxu0 %v7758_v46 }
 0x365   :  { %v7296_v34 = vpop.eup %7295 }
 0x366   :  { %v8129_v35 = vpop.eup %7297  ;;  %718 = vperm.xlu1 %6835, %v7296_v34  }
 0x367   :  { %721 = vperm.xlu0 %6836, %v8129_v35  }
 0x3e5   :  { %v719_v36 = vpop.permute.xlu1 %718 }
 0x3e6   :  { %v722_v37 = vpop.permute.xlu0 %721  ;;  %v726_v38 = vrot.slane %v719_v36, %v8121_v21 }
 0x3e7   :  { %v730_v41 = vrot.slane %v722_v37, %v8121_v21 }
 0x3e9   :  { %v731_v43 = vsel %vm691_vm2, %v730_v41, %v726_v38 }
 0x3ea   :  { %v733_v44 = vsel %vm694_vm3, %v731_v43, 0.0 }
 0x3eb   :  { %734 = vadd.xlane.f32.xlu1 %v733_v44  ;;  %v7381_v44 = vld [vmem:[#allocation7 + $0x10] sm:$0xff] }
 0x42c   :  { %v1092_v23 = vpop.f32.mrb[4].mxu0 }
 0x42d   :  { %v1094_v24 = vpop.f32.mrb[5].mxu0 }
 0x478   :  { %v735_v59 = vpop.xlane.xlu1 %734 }
 0x479   :  { %7299 = vrcp.f32 %v735_v59 }
 0x483   :  { %v7300_v60 = vpop.eup %7299 }
 0x484   :  { %v741_v61 = vrot.slane %v7300_v60, %v8098_v40  ;;  %v745_v63 = vrot.slane %v7300_v60, %v8101_v42 }
 0x486   :  { %v748_v62 = vmul.f32 %v7296_v34, %v741_v61  ;;  %v749_v3 = vmul.f32 %v8129_v35, %v745_v63  ;;  %v7380_v34 = vld [vmem:[#allocation7 + $0x8] sm:$0xff] }
 0x488   :  { %752 = vperm.xlu0 %6836, %v748_v62  }
 0x48c   :  { %757 = vperm.xlu0 %6836, %v749_v3  }
 0x490   :  { %1115 = vrot.lane.b32.xlu0 %v269_v25, %s7760_s3  ;;  %v1095_v25 = vpop.f32.mrb[6].mxu0 }
 0x491   :  { %v1096_v26 = vpop.f32.mrb[7].mxu0 }
 0x507   :  { %v753_v31 = vpop.permute.xlu0 %752 }
 0x508   :  { %v760_v33 = vmul.f32 %v7379_v32, %v753_v31  ;;  %v761_v35 = vmul.f32 %v7380_v34, %v753_v31  ;;  %v6304_v31 = vld [vmem:[#allocation16] ss:$0 sm:$0xff] }
 0x50a   :  { %v764_v36 = vrot.slane %v760_v33, 4  ;;  %v770_v37 = vsel %vm577_vm1, %v761_v35, 0.0 }
 0x50b   :  { %v771_v38 = vrot.slane %v770_v37, 4  ;;  %v758_v41 = vpop.permute.xlu0 %757 }
 0x50c   :  { %v765_v43 = vadd.f32 %v764_v36, %v760_v33  ;;  %v762_v45 = vmul.f32 %v7381_v44, %v758_v41  ;;  %v763_v48 = vmul.f32 %v7382_v47, %v758_v41 }
 0x50d   :  { %v772_v49 = vadd.f32 %v771_v38, %v770_v37 }
 0x50e   :  { %v766_v50 = vrot.slane %v765_v43, 2  ;;  %v777_v51 = vrot.slane %v762_v45, 4  ;;  %v783_v52 = vsel %vm577_vm1, %v763_v48, 0.0 }
 0x50f   :  { %v773_v53 = vrot.slane %v772_v49, 2  ;;  %v784_v54 = vrot.slane %v783_v52, 4  ;;  %v1116_v47 = vpop.permute.xlu0 %1115 }
 0x510   :  { %v767_v18 = vadd.f32 %v766_v50, %v765_v43  ;;  %v778_v56 = vadd.f32 %v777_v51, %v762_v45  ;;  %v6905_v50 = vld [vmem:[#allocation17] sm:$0xff]   ;;  %v6906_v51 = vld [vmem:[#allocation17 + $0x8] sm:$0xff]  }
 0x511   :  { %v774_v57 = vadd.f32 %v773_v53, %v772_v49  ;;  %v785_v58 = vadd.f32 %v784_v54, %v783_v52 }
 0x512   :  { %v768_v59 = vrot.slane %v767_v18, 1  ;;  %v779_v60 = vrot.slane %v778_v56, 2 }
 0x513   :  { %v775_v61 = vrot.slane %v774_v57, 1  ;;  %v786_v62 = vrot.slane %v785_v58, 2 }
 0x514   :  { %v769_v63 = vadd.f32 %v768_v59, %v767_v18  ;;  %v780_v0 = vadd.f32 %v779_v60, %v778_v56 }
 0x515   :  { %v776_v2 = vadd.f32 %v775_v61, %v774_v57  ;;  %v787_v3 = vadd.f32 %v786_v62, %v785_v58 }
 0x516   :  { %v781_v4 = vrot.slane %v780_v0, 1  ;;  %v827_v6 = vpack.c.bf16 %v769_v63, %v769_v63 }
 0x517   :  { %v788_v5 = vrot.slane %v787_v3, 1  ;;  %v828_v8 = vpack.c.bf16 %v776_v2, %v776_v2 }
 0x518   :  { %v782_v7 = vadd.f32 %v781_v4, %v780_v0  ;;  %v859_v12 = vunpack.c.l.b16 %v827_v6  ;;  %v8239_v0 = vld [vmem:[%s9032_s0] sm:$0xff]  ;;  %v8246_v4 = vld [vmem:[%s9032_s0 + $0x8] sm:$0xff] }
 0x519   :  { %v789_v9 = vadd.f32 %v788_v5, %v787_v3  ;;  %v860_v14 = vunpack.c.l.b16 %v828_v8 }
 0x51a   :  { %v829_v10 = vpack.c.bf16 %v782_v7, %v782_v7 }
 0x51b   :  { %v830_v11 = vpack.c.bf16 %v789_v9, %v789_v9 }
 0x51c   :  { %v861_v13 = vunpack.c.l.b16 %v829_v10 }
 0x51d   :  { %v862_v15 = vunpack.c.l.b16 %v830_v11  ;;  %v8256_v11 = vld [vmem:[%s9033_s28] sm:$0x3] }
 0x51e   :  { %v863_v16 = vsel %vm691_vm2, %v861_v13, %v859_v12  ;;  %vm1239_vm5 = vcmp.gt.f32.partialorder %v8256_v11, 0.5 }
 0x51f   :  { %v864_v17 = vsel %vm691_vm2, %v862_v15, %v860_v14  ;;  %v865_v22 = vpack.c.b16 %v863_v16, %v863_v16 }
 0x520   :  { %v866_v20 = vpack.c.b16 %v864_v17, %v864_v17 }
 0x522   :  { %6290 = vmatprep.mubr.msk.bf16.mxu1 %vm577_vm1, %v866_v20 }
 0x523   :  { %976 = vmatmul.mubr.bf16.vlgmr.msra.gmra.mrb[8].mxu1 %v865_v22 }
 0x524   :  { %6707 = vmatprep.mubr.msk.bf16.mxu1 %vm7759_vm4, %v7758_v46  ;;  %6704 = vmatpush3.bf16.msra.mxu1 %v6905_v50 }
 0x525   :  { %6705 = vmatprep.subr.bf16.mxu1 %v7758_v46 }
 0x528   :  { %6706 = vmatpush3.bf16.msra.mxu1 %v6906_v51 }
 0x529   :  { %6711 = vmatprep.subr.bf16.mxu1 %v7758_v46 }
 0x5f6   :  { %v977_v28 = vpop.f32.mrb[8].mxu1 }
 0x5f7   :  { %v1093_v29 = vadd.f32 %v1092_v23, %v977_v28  ;;  %v979_v30 = vpop.f32.mrb[9].mxu1  ;;  %v6907_v28 = vld [vmem:[%s9006_s15] sm:$0xff]  }
 0x5f8   :  { %v980_v32 = vpop.f32.mrb[10].mxu1 }
 0x5f9   :  { %v1098_v33 = vadd.f32 %v1093_v29, %v8212_v27  ;;  %v981_v34 = vpop.f32.mrb[11].mxu1 }
 0x5fa   :  { %v6909_v34 = vld [vmem:[%s9006_s15 + $0x10] sm:$0xff]  }
 0x5fb   :  { %v1106_v35 = vadd.f32 %v6304_v31, %v1098_v33  ;;  %v6908_v31 = vld [vmem:[%s9006_s15 + $0x8] sm:$0xff]  }
 0x5fd   :  { %7301 = vtanh.f32 %v1106_v35  ;;  %v6305_v37 = vmul.f32 -1.442695, %v1106_v35  ;;  %v6910_v35 = vld [vmem:[%s9006_s15 + $0x18] sm:$0xff]  }
 0x5ff   :  { %7303 = vpow2.f32 %v6305_v37 }
 0x607   :  { %v7302_v36 = vpop.eup %7301 }
 0x608   :  { %1120 = vrot.lane.b32.xlu1 %v7302_v36, %s7744_s4 }
 0x609   :  { %v7304_v38 = vpop.eup %7303 }
 0x60a   :  { %v1110_v41 = vadd.f32 1.0, %v7304_v38 }
 0x60c   :  { %7305 = vrcp.f32 %v1110_v41 }
 0x616   :  { %v7306_v43 = vpop.eup %7305 }
 0x617   :  { %v1118_v48 = vmul.f32 %v7306_v43, %v1116_v47 }
 0x67a   :  { %v1121_v44 = vpop.permute.xlu1 %1120 }
 0x67b   :  { %v1123_v45 = vmul.f32 %v7306_v43, %v1121_v44 }
 0x67d   :  { %1125 = vrot.lane.b32.xlu0 %v1123_v45, %s7760_s3 }
 0x6ef   :  { %v1126_v49 = vpop.permute.xlu0 %1125 }
 0x6f0   :  { %v8224_v27 = vadd.f32 %v1126_v49, %v1118_v48 }
 0x6f2   :  { %7307 = vtanh.f32 %v8224_v27 }
 0x6fc   :  { %v7308_v52 = vpop.eup %7307 }
 0x6fd   :  { %1131 = vrot.lane.b32.xlu0 %v7308_v52, %s7744_s4 }
 0x76f   :  { %v1132_v53 = vpop.permute.xlu0 %1131 }
 0x770   :  { %v1134_v54 = vmul.f32 %v7306_v43, %v1132_v53 }
 0x772   :  { %v1135_v18 = vpack.c.bf16 %v1134_v54, %v1134_v54 }
 0x774   :  { %1141 = vrot.lane.b32.xlu0 %v1135_v18, %s7760_s3 }
 0x7e6   :  { %v1142_v56 = vpop.permute.xlu0 %1141 }
 0x7e7   :  { %6708 = vmatmul.mubr.msk.bf16.vlgmr.msra.gmra.mrb[12].mxu1 %vm320_vm0, %v1142_v56 }
 0x7e8   :  { %6719 = vmatprep.mubr.msk.bf16.mxu1 %vm7759_vm4, %v7758_v46  ;;  %6712 = vmatpush3.bf16.msra.mxu1 %v6907_v28  ;;  %v6924_v28 = vld [vmem:[#allocation8 + $0x20] ss:$12 sps:$4 sm:$0xff]  }
 0x7e9   :  { %6713 = vmatprep.subr.bf16.mxu1 %v7758_v46 }
 0x7ec   :  { %6714 = vmatpush3.bf16.msra.mxu1 %v6908_v31  ;;  %v6930_v31 = vld [vmem:[#allocation11 + $0x4] ss:$8 sps:$4 sm:$0xff]  }
 0x7ed   :  { %6715 = vmatprep.subr.bf16.mxu1 %v7758_v46 }
 0x7f0   :  { %6716 = vmatpush3.bf16.msra.mxu1 %v6909_v34  ;;  %v6925_v34 = vld [vmem:[#allocation22 + $0x20] ss:$8 sps:$4 sm:$0xff]  }
 0x7f1   :  { %6717 = vmatprep.subr.bf16.mxu1 %v7758_v46 }
 0x7f4   :  { %6718 = vmatpush3.bf16.msra.mxu1 %v6910_v35  ;;  %v6928_v35 = vld [vmem:[#allocation11] ss:$8 sps:$4 sm:$0xff]  }
 0x8ba   :  { %v1192_v57 = vpop.f32.mrb[12].mxu1 }
 0x8bb   :  { %v1205_v58 = vrot.slane %v1192_v57, %v8106_v55  ;;  %v6709_v59 = vpop.f32.mrb[13].mxu1 }
 0x8bc   :  { %v1195_v60 = vpop.f32.mrb[14].mxu1 }
 0x8bd   :  { %v1206_v61 = vcombine.high %v1205_v58, %v1205_v58  ;;  %v1213_v62 = vrot.slane %v1205_v58, %v8106_v55  ;;  %v6710_v63 = vpop.f32.mrb[15].mxu1 }
 0x8bf   :  { %v1220_v2 = vrot.slane %v1206_v61, %v8106_v55  ;;  %v1224_v3 = vrot.slane %v1213_v62, %v8098_v40 }
 0x8c1   :  { %v1231_v5 = vmul.f32 %v1224_v3, %v8239_v0  ;;  %v1228_v6 = vrot.slane %v1220_v2, %v8098_v40  ;;  %v6911_v2 = vld [vmem:[#allocation19] ss:$8 sps:$4 sm:$0xff]   ;;  %v6913_v3 = vld [vmem:[#allocation19 + $0x4] ss:$8 sps:$4 sm:$0xff]  }
 0x8c2   :  { %1421 = vmatprep.subr.bf16.mxu1 %v6913_v3  ;;  %v6969_v3 = vld [vmem:[#allocation22 + $0x94] ss:$8 sps:$4 sm:$0xff]  }
 0x8c3   :  { %v1233_v7 = vsel %vm577_vm1, %v1231_v5, 0.0  ;;  %v1232_v8 = vmul.f32 %v1228_v6, %v8246_v4  ;;  %v6916_v5 = vld [vmem:[#allocation19 + $0x14] ss:$8 sps:$4 sm:$0xff]   ;;  %v6914_v6 = vld [vmem:[#allocation19 + $0x10] ss:$8 sps:$4 sm:$0xff]  }
 0x8c4   :  { %1234 = vadd.xlane.f32.xlu1 %v1233_v7  ;;  %v6919_v7 = vld [vmem:[#allocation22 + $0x4] ss:$8 sps:$4 sm:$0xff]  }
 0x8c5   :  { %v1236_v9 = vsel %vm577_vm1, %v1232_v8, 0.0 }
 0x8c6   :  { %1237 = vadd.xlane.f32.xlu0 %v1236_v9 }
 0x951   :  { %v1235_v10 = vpop.xlane.xlu1 %1234 }
 0x952   :  { %v1245_v13 = vrot.slane %v1235_v10, %v8121_v21 }
 0x953   :  { %v1238_v12 = vpop.xlane.xlu0 %1237 }
 0x954   :  { %v1249_v14 = vrot.slane %v1238_v12, %v8121_v21 }
 0x956   :  { %v1250_v15 = vsel %vm691_vm2, %v1249_v14, %v1245_v13 }
 0x957   :  { %v1252_v16 = vsel %vm1239_vm5, -1e+30, %v1250_v15  ;;  %v273_v15 = vld [vmem:[#allocation5 + $0x8] sm:$0xff] }
 0x958   :  { %v1253_v17 = vsel %vm694_vm3, %v1252_v16, -inf }
 0x959   :  { %1254 = vmax.xlane.f32.xlu0 %v1253_v17 }
 0x9e6   :  { %v1255_v20 = vpop.xlane.xlu0 %1254 }
 0x9e7   :  { %v1256_v22 = vsub.f32 %v1252_v16, %v1255_v20  ;;  %v275_v16 = vld [vmem:[#allocation5 + $0x18] sm:$0xff]  ;;  %v6917_v20 = vld [vmem:[#allocation22] ss:$8 sps:$4 sm:$0xff]  }
 0x9e9   :  { %v1257_v23 = vmul.f32 1.442695, %v1256_v22  ;;  %v6920_v22 = vld [vmem:[#allocation8 + $0x8] ss:$12 sps:$4 sm:$0xff]  }
 0x9eb   :  { %7309 = vpow2.f32 %v1257_v23 }
 0x9f5   :  { %v7310_v24 = vpop.eup %7309 }
 0x9f6   :  { %v1259_v25 = vsel %vm694_vm3, %v7310_v24, 0.0 }
 0x9f7   :  { %1260 = vadd.xlane.f32.xlu1 %v1259_v25  ;;  %v1477_v25 = vpack.c.bf16 %v275_v16, %v273_v15  ;;  %v6979_v15 = vld [vmem:[#allocation22 + $0xb0] ss:$8 sps:$4 sm:$0xff]  }
 0x9f8   :  { %v6982_v16 = vld [vmem:[#allocation11 + $0x90] ss:$8 sps:$4 sm:$0xff]  }
 0xa84   :  { %v1261_v26 = vpop.xlane.xlu1 %1260 }
 0xa85   :  { %7311 = vrcp.f32 %v1261_v26  ;;  %v6921_v26 = vld [vmem:[#allocation22 + $0x10] ss:$8 sps:$4 sm:$0xff]  }
 0xa8f   :  { %v7312_v29 = vpop.eup %7311 }
 0xa90   :  { %v8270_v30 = vmul.f32 %v7312_v29, %v7310_v24  ;;  %v6923_v24 = vld [vmem:[#allocation22 + $0x14] ss:$8 sps:$4 sm:$0xff]   ;;  %v6927_v29 = vld [vmem:[#allocation22 + $0x24] ss:$8 sps:$4 sm:$0xff]  }
 0xa92   :  { %v1274_v32 = vrot.slane %v8270_v30, %v8101_v42  ;;  %v1267_v33 = vrot.slane %v8270_v30, %v8098_v40 }
 0xa94   :  { %1276 = vbcast.lane.b32.xlu1 %v1274_v32, 256  ;;  %1269 = vbcast.lane.b32.xlu0 %v1267_v33, 256  ;;  %v8305_v32 = vld [vmem:[#allocation7 + $0x28] sm:$0xff]  ;;  %v8307_v33 = vld [vmem:[#allocation7 + $0x38] sm:$0xff] }
 0xa98   :  { %1334 = vrot.lane.b32.xlu1 %v1192_v57, %s7744_s4 }
 0xb06   :  { %v1277_v36 = vpop.permute.xlu1 %1276  ;;  %v1270_v37 = vpop.permute.xlu0 %1269 }
 0xb07   :  { %v1279_v38 = vmul.f32 %v1277_v36, %v8246_v4  ;;  %v1278_v41 = vmul.f32 %v1270_v37, %v8239_v0  ;;  %v6933_v36 = vld [vmem:[#allocation22 + $0x34] ss:$8 sps:$4 sm:$0xff]  }
 0xb08   :  { %v6936_v37 = vld [vmem:[#allocation11 + $0x14] ss:$8 sps:$4 sm:$0xff]  }
 0xb09   :  { %v1287_v43 = vsel %vm577_vm1, %v1279_v38, 0.0  ;;  %v1280_v44 = vsel %vm577_vm1, %v1278_v41, 0.0  ;;  %v1919_v38 = vpack.c.bf16 %v8307_v33, %v8305_v32  ;;  %v6931_v41 = vld [vmem:[#allocation22 + $0x30] ss:$8 sps:$4 sm:$0xff]  }
 0xb0a   :  { %v1288_v45 = vrot.slane %v1287_v43, 4  ;;  %v1281_v47 = vrot.slane %v1280_v44, 4  ;;  %v1335_v8 = vpop.permute.xlu1 %1334 }
 0xb0c   :  { %v1289_v48 = vadd.f32 %v1288_v45, %v1287_v43  ;;  %v1282_v49 = vadd.f32 %v1281_v47, %v1280_v44  ;;  %v6934_v43 = vld [vmem:[#allocation11 + $0x10] ss:$8 sps:$4 sm:$0xff]   ;;  %v6942_v45 = vld [vmem:[#allocation11 + $0x24] ss:$8 sps:$4 sm:$0xff]  }
 0xb0d   :  { %v6939_v44 = vld [vmem:[#allocation22 + $0x44] ss:$8 sps:$4 sm:$0xff]   ;;  %v6937_v47 = vld [vmem:[#allocation22 + $0x40] ss:$8 sps:$4 sm:$0xff]  }
 0xb0e   :  { %v1290_v50 = vrot.slane %v1289_v48, 2  ;;  %v1283_v51 = vrot.slane %v1282_v49, 2 }
 0xb10   :  { %v1291_v52 = vadd.f32 %v1290_v50, %v1289_v48  ;;  %v1284_v53 = vadd.f32 %v1283_v51, %v1282_v49  ;;  %v6940_v48 = vld [vmem:[#allocation11 + $0x20] ss:$8 sps:$4 sm:$0xff]   ;;  %v6948_v50 = vld [vmem:[#allocation11 + $0x34] ss:$8 sps:$4 sm:$0xff]  }
 0xb11   :  { %v6945_v49 = vld [vmem:[#allocation22 + $0x54] ss:$8 sps:$4 sm:$0xff]   ;;  %v6943_v51 = vld [vmem:[#allocation22 + $0x50] ss:$8 sps:$4 sm:$0xff]  }
 0xb12   :  { %v1292_v54 = vrot.slane %v1291_v52, 1  ;;  %v1285_v18 = vrot.slane %v1284_v53, 1 }
 0xb14   :  { %v1293_v56 = vadd.f32 %v1292_v54, %v1291_v52  ;;  %v1286_v57 = vadd.f32 %v1285_v18, %v1284_v53  ;;  %v6946_v52 = vld [vmem:[#allocation11 + $0x30] ss:$8 sps:$4 sm:$0xff]   ;;  %v6954_v54 = vld [vmem:[#allocation11 + $0x44] ss:$8 sps:$4 sm:$0xff]  }
 0xb15   :  { %v6951_v53 = vld [vmem:[#allocation22 + $0x64] ss:$8 sps:$4 sm:$0xff]   ;;  %v6949_v18 = vld [vmem:[#allocation22 + $0x60] ss:$8 sps:$4 sm:$0xff]  }
 0xb16   :  { %v1295_v58 = vpack.c.bf16 %v1293_v56, %v1293_v56  ;;  %v1294_v59 = vpack.c.bf16 %v1286_v57, %v1286_v57  ;;  %v6952_v56 = vld [vmem:[#allocation11 + $0x40] ss:$8 sps:$4 sm:$0xff]  }
 0xb17   :  { %v6957_v57 = vld [vmem:[#allocation22 + $0x74] ss:$8 sps:$4 sm:$0xff]  }
 0xb18   :  { %v1307_v60 = vunpack.c.l.b16 %v1295_v58  ;;  %v1306_v61 = vunpack.c.l.b16 %v1294_v59  ;;  %v6960_v58 = vld [vmem:[#allocation11 + $0x54] ss:$8 sps:$4 sm:$0xff]   ;;  %v6955_v59 = vld [vmem:[#allocation22 + $0x70] ss:$8 sps:$4 sm:$0xff]  }
 0xb1a   :  { %v1308_v62 = vsel %vm691_vm2, %v1307_v60, %v1306_v61  ;;  %v6958_v60 = vld [vmem:[#allocation11 + $0x50] ss:$8 sps:$4 sm:$0xff]  }
 0xb1b   :  { %v1309_v63 = vpack.c.b16 %v1308_v62, %v1308_v62  ;;  %v6963_v61 = vld [vmem:[#allocation22 + $0x84] ss:$8 sps:$4 sm:$0xff]  }
 0xb1c   :  { %v6966_v62 = vld [vmem:[#allocation11 + $0x64] ss:$8 sps:$4 sm:$0xff]  }
 0xb1d   :  { %6720 = vmatmul.mubr.msk.bf16.vlgmr.msra.gmra.mrb[16].mxu1 %vm577_vm1, %v1309_v63  ;;  %v6961_v63 = vld [vmem:[#allocation22 + $0x80] ss:$8 sps:$4 sm:$0xff]  }
 0xb1e   :  { %1453 = vmatprep.mubr.bf16.mxu1 %v7756_v1  ;;  %1422 = vmatpush1.bf16.msra.mxu1 %v6911_v2  ;;  %v6964_v2 = vld [vmem:[#allocation11 + $0x60] ss:$8 sps:$4 sm:$0xff]  }
 0xb1f   :  { %1423 = vmatprep.subr.bf16.mxu1 %v6916_v5  ;;  %v6972_v5 = vld [vmem:[#allocation11 + $0x74] ss:$8 sps:$4 sm:$0xff]  }
 0xb22   :  { %1424 = vmatpush1.bf16.msra.mxu1 %v6914_v6  ;;  %v6967_v6 = vld [vmem:[#allocation22 + $0x90] ss:$8 sps:$4 sm:$0xff]  }
 0xb23   :  { %1637 = vmatprep.subr.bf16.mxu1 %v6919_v7  ;;  %v6970_v7 = vld [vmem:[#allocation11 + $0x70] ss:$8 sps:$4 sm:$0xff]  }
 0xbf0   :  { %v1374_v9 = vpop.f32.mrb[16].mxu1 }
 0xbf1   :  { %v1375_v10 = vadd.f32 %v1374_v9, %v1335_v8  ;;  %v6721_v12 = vpop.f32.mrb[17].mxu1  ;;  %v6975_v8 = vld [vmem:[#allocation22 + $0xa4] ss:$8 sps:$4 sm:$0xff]  }
 0xbf2   :  { %v1377_v13 = vpop.f32.mrb[18].mxu1  ;;  %v6978_v9 = vld [vmem:[#allocation11 + $0x84] ss:$8 sps:$4 sm:$0xff]   ;;  %v6976_v12 = vld [vmem:[#allocation11 + $0x80] ss:$8 sps:$4 sm:$0xff]  }
 0xbf3   :  { %7313 = vtanh.f32 %v1375_v10  ;;  %v6722_v14 = vpop.f32.mrb[19].mxu1  ;;  %v6973_v10 = vld [vmem:[#allocation22 + $0xa0] ss:$8 sps:$4 sm:$0xff]   ;;  %v6981_v13 = vld [vmem:[#allocation22 + $0xb4] ss:$8 sps:$4 sm:$0xff]  }
 0xbf4   :  { %v6984_v14 = vld [vmem:[#allocation11 + $0x94] ss:$8 sps:$4 sm:$0xff]  }
 0xbfd   :  { %v8295_v17 = vpop.eup %7313 }
 0xbfe   :  { %v1381_v23 = vpack.c.bf16 %v8295_v17, %v8295_v17 }
 0xc00   :  { %6318 = vmatmul.mubr.msk.bf16.vlgmr.msra.gmra.mrb[20].mxu1 %vm320_vm0, %v1381_v23  ;;  %6351 = vmatmul.mubr.msk.bf16.vlgmr.msra.gmra.mrb[8].mxu0 %vm320_vm0, %v1381_v23 }
 0xc01   :  { %1638 = vmatpush1.bf16.msra.mxu1 %v6917_v20  ;;  %6724 = vmatpush3.bf16.msra.mxu0 %v6920_v22  ;;  %v272_v20 = vld [vmem:[#allocation5] sm:$0xff]  ;;  %v274_v22 = vld [vmem:[#allocation5 + $0x10] sm:$0xff] }
 0xc02   :  { %1639 = vmatprep.subr.bf16.mxu1 %v6923_v24  ;;  %6725 = vmatprep.subr.bf16.mxu0 %v7758_v46  ;;  %v1476_v24 = vpack.c.bf16 %v274_v22, %v272_v20 }
 0xc03   :  { %6727 = vmatprep.mubr.msk.bf16.mxu0 %vm7759_vm4, %v7758_v46  ;;  %6343 = vmatprep.mubr.msk.bf16.mxu1 %vm577_vm1, %v1477_v25  ;;  %v6985_v25 = vld [vmem:[#allocation11 + $0xa0] ss:$8 sps:$4 sm:$0xff]  }
 0xc05   :  { %1640 = vmatpush1.bf16.msra.mxu1 %v6921_v26  ;;  %6726 = vmatpush3.bf16.msra.mxu0 %v6924_v28  ;;  %v6990_v26 = vld [vmem:[#allocation11 + $0xb4] ss:$8 sps:$4 sm:$0xff]   ;;  %v6988_v28 = vld [vmem:[#allocation11 + $0xb0] ss:$8 sps:$4 sm:$0xff]  }
 0xc06   :  { %1641 = vmatprep.subr.bf16.mxu1 %v6927_v29  ;;  %2079 = vmatprep.subr.bf16.mxu0 %v6930_v31  ;;  %v8314_v29 = vld [vmem:[#allocation7 + $0x20] sm:$0xff]  ;;  %v8316_v31 = vld [vmem:[#allocation7 + $0x30] sm:$0xff] }
 0xc08   :  { %6728 = vmatmul.mubr.msk.bf16.vlgmr.msra.gmra.mrb[12].mxu0 %vm320_vm0, %v1381_v23  ;;  %v6987_v23 = vld [vmem:[#allocation11 + $0xa4] ss:$8 sps:$4 sm:$0xff]  }
 0xc09   :  { %1642 = vmatpush1.bf16.msra.mxu1 %v6925_v34  ;;  %2080 = vmatpush1.bf16.msra.mxu0 %v6928_v35  ;;  %v1918_v34 = vpack.c.bf16 %v8316_v31, %v8314_v29  ;;  %v1386_v35 = vld [vmem:[#allocation20] sm:$0x3] }
 0xc0a   :  { %1643 = vmatprep.subr.bf16.mxu1 %v6933_v36  ;;  %2081 = vmatprep.subr.bf16.mxu0 %v6936_v37  ;;  %v1904_v36 = vld [vmem:[#allocation10] sm:$0x3]  ;;  %v1462_v37 = vld [vmem:[#allocation25] sm:$0x3] }
 0xc0b   :  { %6377 = vmatprep.mubr.msk.bf16.mxu0 %vm577_vm1, %v1919_v38  ;;  %v1391_v38 = vrot.slane %v1386_v35, %v8098_v40 }
 0xc0d   :  { %1644 = vmatpush1.bf16.msra.mxu1 %v6931_v41  ;;  %2082 = vmatpush1.bf16.msra.mxu0 %v6934_v43  ;;  %v1909_v41 = vrot.slane %v1904_v36, %v8098_v40  ;;  %v1395_v43 = vrot.slane %v1386_v35, %v8101_v42 }
 0xc0e   :  { %1645 = vmatprep.subr.bf16.mxu1 %v6939_v44  ;;  %2083 = vmatprep.subr.bf16.mxu0 %v6942_v45  ;;  %v1913_v44 = vrot.slane %v1904_v36, %v8101_v42  ;;  %v1467_v45 = vrot.slane %v1462_v37, %v8098_v40 }
 0xc11   :  { %1646 = vmatpush1.bf16.msra.mxu1 %v6937_v47  ;;  %2084 = vmatpush1.bf16.msra.mxu0 %v6940_v48 }
 0xc12   :  { %1647 = vmatprep.subr.bf16.mxu1 %v6945_v49  ;;  %2085 = vmatprep.subr.bf16.mxu0 %v6948_v50  ;;  %v1471_v49 = vrot.slane %v1462_v37, %v8101_v42 }
 0xc15   :  { %1648 = vmatpush1.bf16.msra.mxu1 %v6943_v51  ;;  %2086 = vmatpush1.bf16.msra.mxu0 %v6946_v52 }
 0xc16   :  { %1649 = vmatprep.subr.bf16.mxu1 %v6951_v53  ;;  %2087 = vmatprep.subr.bf16.mxu0 %v6954_v54 }
 0xc19   :  { %1650 = vmatpush1.bf16.msra.mxu1 %v6949_v18  ;;  %2088 = vmatpush1.bf16.msra.mxu0 %v6952_v56 }
 0xc1a   :  { %1651 = vmatprep.subr.bf16.mxu1 %v6957_v57  ;;  %2089 = vmatprep.subr.bf16.mxu0 %v6960_v58 }
 0xc1d   :  { %1652 = vmatpush1.bf16.msra.mxu1 %v6955_v59  ;;  %2090 = vmatpush1.bf16.msra.mxu0 %v6958_v60 }
 0xc1e   :  { %1653 = vmatprep.subr.bf16.mxu1 %v6963_v61  ;;  %2091 = vmatprep.subr.bf16.mxu0 %v6966_v62 }
 0xc21   :  { %1654 = vmatpush1.bf16.msra.mxu1 %v6961_v63  ;;  %2092 = vmatpush1.bf16.msra.mxu0 %v6964_v2 }
 0xc22   :  { %1655 = vmatprep.subr.bf16.mxu1 %v6969_v3  ;;  %2093 = vmatprep.subr.bf16.mxu0 %v6972_v5 }
 0xc25   :  { %1656 = vmatpush1.bf16.msra.mxu1 %v6967_v6  ;;  %2094 = vmatpush1.bf16.msra.mxu0 %v6970_v7 }
 0xc26   :  { %1657 = vmatprep.subr.bf16.mxu1 %v6975_v8  ;;  %2095 = vmatprep.subr.bf16.mxu0 %v6978_v9  ;;  %v1502_v8 = vld [vmem:[#allocation23] sm:$0x3] }
 0xc29   :  { %1658 = vmatpush1.bf16.msra.mxu1 %v6973_v10  ;;  %2096 = vmatpush1.bf16.msra.mxu0 %v6976_v12  ;;  %v1507_v10 = vrot.slane %v1502_v8, %v8098_v40 }
 0xc2a   :  { %1659 = vmatprep.subr.bf16.mxu1 %v6981_v13  ;;  %2097 = vmatprep.subr.bf16.mxu0 %v6984_v14  ;;  %v1511_v13 = vrot.slane %v1502_v8, %v8101_v42 }
 0xc2d   :  { %1660 = vmatpush1.bf16.msra.mxu1 %v6979_v15  ;;  %2098 = vmatpush1.bf16.msra.mxu0 %v6982_v16 }
 0xc2e   :  { %2099 = vmatprep.subr.bf16.mxu0 %v6987_v23  ;;  %2437 = vmatprep.subr.bf16.mxu1 %v7756_v1 }
 0xc30   :  { %1670 = vmatmul.mubr.bf16.vlgmr.msra.gmra.mrb[24].mxu1 %v1476_v24 }
 0xc31   :  { %2100 = vmatpush1.bf16.msra.mxu0 %v6985_v25 }
 0xc32   :  { %2101 = vmatprep.subr.bf16.mxu0 %v6990_v26 }
 0xc35   :  { %2102 = vmatpush1.bf16.msra.mxu0 %v6988_v28  ;;  %v1944_v28 = vld [vmem:[#allocation13] sm:$0x3] }
 0xc36   :  { %2552 = vmatprep.subr.bf16.mxu0 %v7756_v1 }
 0xc38   :  { %2112 = vmatmul.mubr.bf16.vlgmr.msra.gmra.mrb[16].mxu0 %v1918_v34 }
 0xcd3   :  { %v1455_v47 = vpop.f32.mrb[20].mxu1  ;;  %v1857_v48 = vpop.f32.mrb[8].mxu0 }
 0xcd4   :  { %v1456_v50 = vadd.f32 %v1455_v47, %v1391_v38  ;;  %v1916_v51 = vadd.f32 %v1909_v41, %v1857_v48  ;;  %v1457_v52 = vpop.f32.mrb[21].mxu1  ;;  %v1859_v53 = vpop.f32.mrb[9].mxu0  ;;  %v1949_v47 = vrot.slane %v1944_v28, %v8098_v40 }
 0xcd5   :  { %v1458_v54 = vadd.f32 %v1457_v52, %v1395_v43  ;;  %v1917_v18 = vadd.f32 %v1913_v44, %v1859_v53  ;;  %v1459_v56 = vpop.f32.mrb[22].mxu1  ;;  %v1861_v57 = vpop.f32.mrb[10].mxu0 }
 0xcd6   :  { %v1474_v58 = vmul.f32 %v1467_v45, %v1456_v50  ;;  %v1460_v59 = vpop.f32.mrb[23].mxu1  ;;  %v1862_v60 = vpop.f32.mrb[11].mxu0  ;;  %v1953_v50 = vrot.slane %v1944_v28, %v8101_v42 }
 0xcd7   :  { %v1475_v61 = vmul.f32 %v1471_v49, %v1458_v54  ;;  %v2124_v62 = vcombine.low %v1916_v51, %v1917_v18 }
 0xcd9   :  { %v1682_v63 = vcombine.low %v1474_v58, %v1475_v61  ;;  %v2131_v14 = vrot.slane %v2124_v62, %v8106_v55 }
 0xcdb   :  { %v8327_v2 = vpop.f32.mrb[12].mxu0  ;;  %v1689_v7 = vrot.slane %v1682_v63, %v8106_v55  ;;  %v2132_v34 = vcombine.high %v2131_v14, %v2131_v14  ;;  %v2139_v48 = vrot.slane %v2131_v14, %v8106_v55 }
 0xcdc   :  { %v6729_v3 = vpop.f32.mrb[13].mxu0 }
 0xcdd   :  { %v1901_v5 = vpop.f32.mrb[14].mxu0  ;;  %v1690_v9 = vcombine.high %v1689_v7, %v1689_v7  ;;  %v1697_v12 = vrot.slane %v1689_v7, %v8106_v55  ;;  %v2146_v52 = vrot.slane %v2132_v34, %v8106_v55  ;;  %v2150_v56 = vrot.slane %v2139_v48, %v8098_v40 }
 0xcde   :  { %v6730_v6 = vpop.f32.mrb[15].mxu0  ;;  %v2154_v59 = vrot.slane %v2139_v48, %v8101_v42  ;;  %v6991_v48 = vld [vmem:[%s9002_s11] sm:$0xff]  }
 0xcdf   :  { %v1704_v15 = vrot.slane %v1690_v9, %v8106_v55  ;;  %v1708_v22 = vrot.slane %v1697_v12, %v8098_v40  ;;  %v1712_v25 = vrot.slane %v1697_v12, %v8101_v42  ;;  %v2158_v63 = vrot.slane %v2146_v52, %v8098_v40  ;;  %2553 = vmatpush1.bf16.msra.mxu0 %v6991_v48 }
 0xce0   :  { %v2162_v7 = vrot.slane %v2146_v52, %v8101_v42  ;;  %v6994_v52 = vld [vmem:[#allocation14 + $0x8] sm:$0xff]   ;;  %2554 = vmatprep.subr.bf16.mxu0 %v7756_v1 }
 0xce1   :  { %v1716_v37 = vrot.slane %v1704_v15, %v8098_v40  ;;  %v1720_v44 = vrot.slane %v1704_v15, %v8101_v42 }
 0xd03   :  { %v1671_v16 = vpop.f32.mrb[24].mxu1 }
 0xd04   :  { %v1672_v20 = vadd.f32 %v1671_v16, %v1507_v10  ;;  %v1673_v23 = vpop.f32.mrb[25].mxu1 }
 0xd05   :  { %v1674_v24 = vadd.f32 %v1673_v23, %v1511_v13  ;;  %v1675_v26 = vpop.f32.mrb[26].mxu1 }
 0xd06   :  { %v1725_v35 = vmul.f32 %v1708_v22, %v1672_v20  ;;  %v1676_v36 = vadd.f32 %v1675_v26, %v1507_v10  ;;  %v1677_v38 = vpop.f32.mrb[27].mxu1 }
 0xd07   :  { %v1726_v41 = vmul.f32 %v1712_v25, %v1674_v24  ;;  %v1678_v43 = vadd.f32 %v1677_v38, %v1511_v13 }
 0xd08   :  { %v1727_v45 = vmul.f32 %v1716_v37, %v1676_v36 }
 0xd09   :  { %v1728_v49 = vmul.f32 %v1720_v44, %v1678_v43  ;;  %v8342_v51 = vadd.f32 %v1726_v41, %v1725_v35 }
 0xd0b   :  { %v2113_v53 = vpop.f32.mrb[16].mxu0  ;;  %v8345_v54 = vadd.f32 %v1728_v49, %v1727_v45  ;;  %v6992_v49 = vld [vmem:[#allocation14] sm:$0xff]  }
 0xd0c   :  { %v2114_v18 = vadd.f32 %v2113_v53, %v1949_v47  ;;  %v2115_v57 = vpop.f32.mrb[17].mxu0  ;;  %2438 = vmatpush1.bf16.msra.mxu1 %v6992_v49  ;;  %v6995_v53 = vld [vmem:[%s9002_s11 + $0x10] sm:$0xff]  }
 0xd0d   :  { %v2116_v58 = vadd.f32 %v2115_v57, %v1953_v50  ;;  %v2117_v60 = vpop.f32.mrb[18].mxu0  ;;  %2439 = vmatprep.subr.bf16.mxu1 %v7756_v1  ;;  %v6998_v57 = vld [vmem:[#allocation14 + $0x18] sm:$0xff]  }
 0xd0e   :  { %v2167_v61 = vmul.f32 %v2150_v56, %v2114_v18  ;;  %v2118_v62 = vadd.f32 %v2117_v60, %v1949_v47  ;;  %v2119_v3 = vpop.f32.mrb[19].mxu0  ;;  %v6996_v18 = vld [vmem:[#allocation14 + $0x10] sm:$0xff]   ;;  %v7001_v60 = vld [vmem:[%s9002_s11 + $0x28] sm:$0xff]  }
 0xd0f   :  { %v2168_v5 = vmul.f32 %v2154_v59, %v2116_v58  ;;  %v2120_v6 = vadd.f32 %v2119_v3, %v1953_v50  ;;  %v6993_v50 = vld [vmem:[%s9002_s11 + $0x8] sm:$0xff]   ;;  %v6997_v56 = vld [vmem:[%s9002_s11 + $0x18] sm:$0xff]   ;;  %v6999_v58 = vld [vmem:[%s9002_s11 + $0x20] sm:$0xff]  }
 0xd10   :  { %v2169_v8 = vmul.f32 %v2158_v63, %v2118_v62  ;;  %2555 = vmatpush1.bf16.msra.mxu0 %v6993_v50  ;;  %2440 = vmatpush1.bf16.msra.mxu1 %v6994_v52  ;;  %v7000_v59 = vld [vmem:[#allocation14 + $0x20] sm:$0xff]  }
 0xd11   :  { %v2170_v9 = vmul.f32 %v2162_v7, %v2120_v6  ;;  %v2171_v10 = vadd.f32 %v2168_v5, %v2167_v61  ;;  %2556 = vmatprep.subr.bf16.mxu0 %v7756_v1  ;;  %2441 = vmatprep.subr.bf16.mxu1 %v7756_v1  ;;  %v7002_v6 = vld [vmem:[#allocation14 + $0x28] sm:$0xff]  }
 0xd12   :  { %v7003_v7 = vld [vmem:[%s9002_s11 + $0x30] sm:$0xff]  }
 0xd13   :  { %2172 = vadd.xlane.f32.xlu0 %v2171_v10  ;;  %v2174_v12 = vadd.f32 %v2170_v9, %v2169_v8  ;;  %v7004_v9 = vld [vmem:[#allocation14 + $0x30] sm:$0xff]  }
 0xd14   :  { %2557 = vmatpush1.bf16.msra.mxu0 %v6995_v53  ;;  %2442 = vmatpush1.bf16.msra.mxu1 %v6996_v18  ;;  %v7005_v10 = vld [vmem:[%s9002_s11 + $0x38] sm:$0xff]  }
 0xd15   :  { %2175 = vadd.xlane.f32.xlu1 %v2174_v12  ;;  %2558 = vmatprep.subr.bf16.mxu0 %v7756_v1  ;;  %v7006_v12 = vld [vmem:[#allocation14 + $0x38] sm:$0xff]  }
 0xd16   :  { %2443 = vmatprep.subr.bf16.mxu1 %v7756_v1 }
 0xd18   :  { %2559 = vmatpush1.bf16.msra.mxu0 %v6997_v56  ;;  %2444 = vmatpush1.bf16.msra.mxu1 %v6998_v57 }
 0xd19   :  { %2560 = vmatprep.subr.bf16.mxu0 %v7756_v1  ;;  %2445 = vmatprep.subr.bf16.mxu1 %v7756_v1 }
 0xd1c   :  { %2561 = vmatpush1.bf16.msra.mxu0 %v6999_v58  ;;  %2446 = vmatpush1.bf16.msra.mxu1 %v7000_v59 }
 0xd1d   :  { %2562 = vmatprep.subr.bf16.mxu0 %v7756_v1  ;;  %2447 = vmatprep.subr.bf16.mxu1 %v7756_v1 }
 0xd20   :  { %2563 = vmatpush1.bf16.msra.mxu0 %v7001_v60  ;;  %2448 = vmatpush1.bf16.msra.mxu1 %v7002_v6 }
 0xd21   :  { %2564 = vmatprep.subr.bf16.mxu0 %v7756_v1  ;;  %2449 = vmatprep.subr.bf16.mxu1 %v7756_v1 }
 0xd24   :  { %2565 = vmatpush1.bf16.msra.mxu0 %v7003_v7  ;;  %2450 = vmatpush1.bf16.msra.mxu1 %v7004_v9 }
 0xd25   :  { %2566 = vmatprep.subr.bf16.mxu0 %v7756_v1  ;;  %2451 = vmatprep.subr.bf16.mxu1 %v7756_v1 }
 0xd28   :  { %2567 = vmatpush1.bf16.msra.mxu0 %v7005_v10  ;;  %2452 = vmatpush1.bf16.msra.mxu1 %v7006_v12 }
 0xd29   :  { %2568 = vmatprep.subr.bf16.mxu0 %v7756_v1  ;;  %2453 = vmatprep.subr.bf16.mxu1 %v7756_v1 }
 0xda0   :  { %v2173_v13 = vpop.xlane.xlu0 %2172 }
 0xda1   :  { %v2182_v15 = vrot.slane %v2173_v13, %v8121_v21 }
 0xda2   :  { %v2176_v14 = vpop.xlane.xlu1 %2175 }
 0xda3   :  { %v2186_v16 = vrot.slane %v2176_v14, %v8121_v21 }
 0xda5   :  { %v2187_v20 = vsel %vm691_vm2, %v2186_v16, %v2182_v15  ;;  %v7009_v15 = vld [vmem:[%s9002_s11 + $0x48] sm:$0xff]  }
 0xda6   :  { %v2189_v22 = vsel %vm694_vm3, %v2187_v20, -inf  ;;  %v7010_v16 = vld [vmem:[#allocation14 + $0x48] sm:$0xff]  }
 0xda7   :  { %2190 = vmax.xlane.f32.xlu0 %v2189_v22  ;;  %v7011_v20 = vld [vmem:[%s9002_s11 + $0x50] sm:$0xff]  }
 0xda8   :  { %v7012_v22 = vld [vmem:[#allocation14 + $0x50] sm:$0xff]  }
 0xe34   :  { %v2191_v23 = vpop.xlane.xlu0 %2190 }
 0xe35   :  { %v2196_v24 = vrot.slane %v2191_v23, %v8098_v40  ;;  %v2200_v25 = vrot.slane %v2191_v23, %v8101_v42  ;;  %v6378_v23 = vld.sshfl [vmem:[#allocation3 + $0x4] sm:$0x33 pattern:$0x76325410] }
 0xe37   :  { %v2203_v26 = vsub.f32 %v2173_v13, %v2196_v24  ;;  %v2204_v28 = vsub.f32 %v2176_v14, %v2200_v25  ;;  %v7007_v13 = vld [vmem:[%s9002_s11 + $0x40] sm:$0xff]   ;;  %v7013_v24 = vld [vmem:[%s9002_s11 + $0x58] sm:$0xff]   ;;  %v2292_v25 = vcombine.high %v6378_v23, %v6378_v23 }
 0xe38   :  { %2569 = vmatpush1.bf16.msra.mxu0 %v7007_v13  ;;  %v7008_v14 = vld [vmem:[#allocation14 + $0x40] sm:$0xff]  }
 0xe39   :  { %v2205_v34 = vmul.f32 1.442695, %v2203_v26  ;;  %v2207_v35 = vmul.f32 1.442695, %v2204_v28  ;;  %2570 = vmatprep.subr.bf16.mxu0 %v7756_v1  ;;  %2454 = vmatpush1.bf16.msra.mxu1 %v7008_v14  ;;  %v2296_v26 = vpack.c.bf16 %v2292_v25, %v2292_v25  ;;  %v7014_v28 = vld [vmem:[#allocation14 + $0x58] sm:$0xff]  }
 0xe3a   :  { %2455 = vmatprep.subr.bf16.mxu1 %v7756_v1 }
 0xe3b   :  { %7315 = vpow2.f32 %v2205_v34  ;;  %v2295_v34 = vpack.c.bf16 %v6378_v23, %v6378_v23  ;;  %6404 = vmatprep.mubr.msk.bf16.mxu0 %vm577_vm1, %v2296_v26 }
 0xe3c   :  { %7317 = vpow2.f32 %v2207_v35  ;;  %2571 = vmatpush1.bf16.msra.mxu0 %v7009_v15 }
 0xe3d   :  { %2572 = vmatprep.subr.bf16.mxu0 %v7756_v1  ;;  %2456 = vmatpush1.bf16.msra.mxu1 %v7010_v16 }
 0xe3e   :  { %2457 = vmatprep.subr.bf16.mxu1 %v7756_v1 }
 0xe40   :  { %2573 = vmatpush1.bf16.msra.mxu0 %v7011_v20 }
 0xe41   :  { %2574 = vmatprep.subr.bf16.mxu0 %v7756_v1  ;;  %2458 = vmatpush1.bf16.msra.mxu1 %v7012_v22 }
 0xe42   :  { %2459 = vmatprep.subr.bf16.mxu1 %v7756_v1 }
 0xe44   :  { %2575 = vmatpush1.bf16.msra.mxu0 %v7013_v24 }
 0xe45   :  { %v7316_v36 = vpop.eup %7315  ;;  %2460 = vmatpush1.bf16.msra.mxu1 %v7014_v28 }
 0xe46   :  { %v7318_v37 = vpop.eup %7317  ;;  %2212 = vperm.xlu0 %6836, %v7316_v36   ;;  %6731 = vmatprep.subr.bf16.mxu1 %v7758_v46 }
 0xe47   :  { %2215 = vperm.xlu1 %6835, %v7318_v37   ;;  %2585 = vmatmul.mubr.bf16.vlgmr.msra.gmra.mrb[20].mxu0 %v2295_v34 }
 0xec5   :  { %v2213_v38 = vpop.permute.xlu0 %2212 }
 0xec6   :  { %v2216_v41 = vpop.permute.xlu1 %2215  ;;  %v2220_v43 = vrot.slane %v2213_v38, %v8121_v21 }
 0xec7   :  { %v2224_v44 = vrot.slane %v2216_v41, %v8121_v21 }
 0xec9   :  { %v2225_v45 = vsel %vm691_vm2, %v2224_v44, %v2220_v43 }
 0xeca   :  { %v2227_v47 = vsel %vm694_vm3, %v2225_v45, 0.0 }
 0xecb   :  { %2228 = vadd.xlane.f32.xlu1 %v2227_v47 }
 0xf1a   :  { %v2586_v26 = vpop.f32.mrb[20].mxu0 }
 0xf1b   :  { %v2588_v28 = vpop.f32.mrb[21].mxu0 }
 0xf1c   :  { %v2589_v34 = vpop.f32.mrb[22].mxu0 }
 0xf58   :  { %v2229_v61 = vpop.xlane.xlu1 %2228 }
 0xf59   :  { %7319 = vrcp.f32 %v2229_v61 }
 0xf63   :  { %v7320_v62 = vpop.eup %7319 }
 0xf64   :  { %v2235_v63 = vrot.slane %v7320_v62, %v8098_v40  ;;  %v2239_v5 = vrot.slane %v7320_v62, %v8101_v42 }
 0xf66   :  { %v2242_v3 = vmul.f32 %v7316_v36, %v2235_v63  ;;  %v2243_v8 = vmul.f32 %v7318_v37, %v2239_v5 }
 0xf68   :  { %2246 = vperm.xlu0 %6836, %v2242_v3  }
 0xf6c   :  { %2251 = vperm.xlu0 %6836, %v2243_v8  }
 0xfe7   :  { %v2247_v35 = vpop.permute.xlu0 %2246 }
 0xfe8   :  { %v2254_v36 = vmul.f32 %v2247_v35, %v8314_v29  ;;  %v2255_v37 = vmul.f32 %v2247_v35, %v8305_v32  ;;  %v2590_v35 = vpop.f32.mrb[23].mxu0 }
 0xfea   :  { %v2258_v38 = vrot.slane %v2254_v36, 4  ;;  %v2264_v41 = vsel %vm577_vm1, %v2255_v37, 0.0 }
 0xfeb   :  { %v2265_v43 = vrot.slane %v2264_v41, 4  ;;  %v2252_v44 = vpop.permute.xlu0 %2251 }
 0xfec   :  { %v2259_v45 = vadd.f32 %v2258_v38, %v2254_v36  ;;  %v2256_v47 = vmul.f32 %v2252_v44, %v8316_v31  ;;  %v2257_v48 = vmul.f32 %v2252_v44, %v8307_v33 }
 0xfed   :  { %v2266_v49 = vadd.f32 %v2265_v43, %v2264_v41  ;;  %v6405_v41 = vld [vmem:[#allocation16] ss:$0 sm:$0xff] }
 0xfee   :  { %v2260_v50 = vrot.slane %v2259_v45, 2  ;;  %v2271_v52 = vrot.slane %v2256_v47, 4  ;;  %v2277_v53 = vsel %vm577_vm1, %v2257_v48, 0.0 }
 0xfef   :  { %v2267_v18 = vrot.slane %v2266_v49, 2  ;;  %v2278_v56 = vrot.slane %v2277_v53, 4 }
 0xff0   :  { %v2261_v29 = vadd.f32 %v2260_v50, %v2259_v45  ;;  %v2272_v57 = vadd.f32 %v2271_v52, %v2256_v47 }
 0xff1   :  { %v2268_v32 = vadd.f32 %v2267_v18, %v2266_v49  ;;  %v2279_v58 = vadd.f32 %v2278_v56, %v2277_v53 }
 0xff2   :  { %v2262_v59 = vrot.slane %v2261_v29, 1  ;;  %v2273_v60 = vrot.slane %v2272_v57, 2 }
 0xff3   :  { %v2269_v61 = vrot.slane %v2268_v32, 1  ;;  %v2280_v62 = vrot.slane %v2279_v58, 2 }
 0xff4   :  { %v2263_v63 = vadd.f32 %v2262_v59, %v2261_v29  ;;  %v2274_v3 = vadd.f32 %v2273_v60, %v2272_v57 }
 0xff5   :  { %v2270_v31 = vadd.f32 %v2269_v61, %v2268_v32  ;;  %v2281_v5 = vadd.f32 %v2280_v62, %v2279_v58  ;;  %v7015_v32 = vld [vmem:[#allocation17] sm:$0xff]   ;;  %v7016_v58 = vld [vmem:[#allocation17 + $0x8] sm:$0xff]  }
 0xff6   :  { %v2275_v33 = vrot.slane %v2274_v3, 1  ;;  %v2321_v7 = vpack.c.bf16 %v2263_v63, %v2263_v63 }
 0xff7   :  { %v2282_v6 = vrot.slane %v2281_v5, 1  ;;  %v2322_v9 = vpack.c.bf16 %v2270_v31, %v2270_v31 }
 0xff8   :  { %v2276_v8 = vadd.f32 %v2275_v33, %v2274_v3  ;;  %v2353_v14 = vunpack.c.l.b16 %v2321_v7 }
 0xff9   :  { %v2283_v10 = vadd.f32 %v2282_v6, %v2281_v5  ;;  %v2354_v16 = vunpack.c.l.b16 %v2322_v9 }
 0xffa   :  { %v2323_v12 = vpack.c.bf16 %v2276_v8, %v2276_v8 }
 0xffb   :  { %v2324_v13 = vpack.c.bf16 %v2283_v10, %v2283_v10 }
 0xffc   :  { %v2355_v15 = vunpack.c.l.b16 %v2323_v12 }
 0xffd   :  { %v2356_v20 = vunpack.c.l.b16 %v2324_v13 }
 0xffe   :  { %v2357_v22 = vsel %vm691_vm2, %v2355_v15, %v2353_v14 }
 0xfff   :  { %v2358_v23 = vsel %vm691_vm2, %v2356_v20, %v2354_v16  ;;  %v2359_v25 = vpack.c.b16 %v2357_v22, %v2357_v22 }
0x1000   :  { %v2360_v24 = vpack.c.b16 %v2358_v23, %v2358_v23 }
0x1002   :  { %6391 = vmatprep.mubr.msk.bf16.mxu1 %vm577_vm1, %v2360_v24 }
0x1003   :  { %2470 = vmatmul.mubr.bf16.vlgmr.msra.gmra.mrb[28].mxu1 %v2359_v25 }
0x1004   :  { %6735 = vmatprep.mubr.msk.bf16.mxu1 %vm7759_vm4, %v7758_v46  ;;  %6732 = vmatpush3.bf16.msra.mxu1 %v7015_v32  ;;  %v7030_v32 = vld [vmem:[#allocation22 + $0x30] ss:$8 sps:$4 sm:$0xff]  }
0x1005   :  { %6733 = vmatprep.subr.bf16.mxu1 %v7758_v46 }
0x1008   :  { %6734 = vmatpush3.bf16.msra.mxu1 %v7016_v58  ;;  %v7035_v58 = vld [vmem:[#allocation22 + $0x44] ss:$8 sps:$4 sm:$0xff]  }
0x1009   :  { %6739 = vmatprep.subr.bf16.mxu1 %v7758_v46 }
0x10d6   :  { %v2471_v36 = vpop.f32.mrb[28].mxu1 }
0x10d7   :  { %v2587_v37 = vadd.f32 %v2586_v26, %v2471_v36  ;;  %v2473_v38 = vpop.f32.mrb[29].mxu1 }
0x10d8   :  { %v2474_v43 = vpop.f32.mrb[30].mxu1  ;;  %v7017_v38 = vld [vmem:[%s9006_s15] sm:$0xff]  }
0x10d9   :  { %v2592_v44 = vadd.f32 %v2587_v37, %v8327_v2  ;;  %v2475_v45 = vpop.f32.mrb[31].mxu1 }
0x10db   :  { %v2600_v47 = vadd.f32 %v6405_v41, %v2592_v44  ;;  %v7018_v44 = vld [vmem:[%s9006_s15 + $0x8] sm:$0xff]  }
0x10dd   :  { %7321 = vtanh.f32 %v2600_v47  ;;  %v6406_v49 = vmul.f32 -1.442695, %v2600_v47 }
0x10df   :  { %7323 = vpow2.f32 %v6406_v49  ;;  %v7020_v49 = vld [vmem:[%s9006_s15 + $0x18] sm:$0xff]  }
0x10e7   :  { %v7322_v48 = vpop.eup %7321 }
0x10e8   :  { %2610 = vrot.lane.b32.xlu0 %v7322_v48, %s7744_s4  ;;  %v7019_v48 = vld [vmem:[%s9006_s15 + $0x10] sm:$0xff]  }
0x10e9   :  { %v7324_v50 = vpop.eup %7323 }
0x10ea   :  { %v2604_v52 = vadd.f32 1.0, %v7324_v50  ;;  %v7021_v50 = vld [vmem:[#allocation22] ss:$8 sps:$4 sm:$0xff]  }
0x10ec   :  { %7325 = vrcp.f32 %v2604_v52  ;;  %v7023_v52 = vld [vmem:[#allocation22 + $0x4] ss:$8 sps:$4 sm:$0xff]  }
0x10ed   :  { %3126 = vmatprep.subr.bf16.mxu0 %v7023_v52  ;;  %v7059_v52 = vld [vmem:[#allocation8 + $0x4] ss:$12 sps:$4 sm:$0xff]  }
0x10ee   :  { %3127 = vmatpush1.bf16.msra.mxu0 %v7021_v50  ;;  %v7056_v50 = vld [vmem:[#allocation22 + $0x94] ss:$8 sps:$4 sm:$0xff]  }
0x10f6   :  { %v7326_v53 = vpop.eup %7325 }
0x10f7   :  { %v2608_v29 = vmul.f32 %v7326_v53, %v8224_v27 }
0x115a   :  { %v2611_v18 = vpop.permute.xlu0 %2610 }
0x115b   :  { %v2613_v56 = vmul.f32 %v7326_v53, %v2611_v18  ;;  %v7024_v18 = vld [vmem:[#allocation22 + $0x10] ss:$8 sps:$4 sm:$0xff]  }
0x115d   :  { %2615 = vrot.lane.b32.xlu0 %v2613_v56, %s7760_s3  ;;  %v7029_v56 = vld [vmem:[#allocation22 + $0x24] ss:$8 sps:$4 sm:$0xff]  }
0x11cf   :  { %v2616_v57 = vpop.permute.xlu0 %2615 }
0x11d0   :  { %v8438_v2 = vadd.f32 %v2616_v57, %v2608_v29  ;;  %v7027_v29 = vld [vmem:[#allocation22 + $0x20] ss:$8 sps:$4 sm:$0xff]   ;;  %v7032_v57 = vld [vmem:[#allocation22 + $0x34] ss:$8 sps:$4 sm:$0xff]  }
0x11d2   :  { %7327 = vtanh.f32 %v8438_v2 }
0x11dc   :  { %v7328_v59 = vpop.eup %7327 }
0x11dd   :  { %2621 = vrot.lane.b32.xlu0 %v7328_v59, %s7744_s4  ;;  %v7033_v59 = vld [vmem:[#allocation22 + $0x40] ss:$8 sps:$4 sm:$0xff]  }
0x124f   :  { %v2622_v60 = vpop.permute.xlu0 %2621 }
0x1250   :  { %v2624_v61 = vmul.f32 %v7326_v53, %v2622_v60  ;;  %v7026_v53 = vld [vmem:[#allocation22 + $0x14] ss:$8 sps:$4 sm:$0xff]  }
0x1251   :  { %3128 = vmatprep.subr.bf16.mxu0 %v7026_v53  ;;  %v7038_v60 = vld [vmem:[#allocation22 + $0x54] ss:$8 sps:$4 sm:$0xff]   ;;  %v7054_v53 = vld [vmem:[#allocation22 + $0x90] ss:$8 sps:$4 sm:$0xff]  }
0x1252   :  { %v2625_v62 = vpack.c.bf16 %v2624_v61, %v2624_v61  ;;  %3129 = vmatpush1.bf16.msra.mxu0 %v7024_v18  ;;  %v7036_v61 = vld [vmem:[#allocation22 + $0x50] ss:$8 sps:$4 sm:$0xff]   ;;  %v7060_v18 = vld [vmem:[#allocation22 + $0xa0] ss:$8 sps:$4 sm:$0xff]  }
0x1253   :  { %3130 = vmatprep.subr.bf16.mxu0 %v7029_v56  ;;  %v7062_v56 = vld [vmem:[#allocation22 + $0xa4] ss:$8 sps:$4 sm:$0xff]  }
0x1254   :  { %2631 = vrot.lane.b32.xlu0 %v2625_v62, %s7760_s3 }
0x1256   :  { %3131 = vmatpush1.bf16.msra.mxu0 %v7027_v29  ;;  %v7066_v29 = vld [vmem:[#allocation22 + $0xb0] ss:$8 sps:$4 sm:$0xff]  }
0x1257   :  { %3132 = vmatprep.subr.bf16.mxu0 %v7032_v57  ;;  %v7068_v57 = vld [vmem:[#allocation22 + $0xb4] ss:$8 sps:$4 sm:$0xff]  }
0x125a   :  { %3133 = vmatpush1.bf16.msra.mxu0 %v7030_v32  ;;  %v1775_v32 = vld [vmem:[#allocation5 + $0x28] sm:$0xff] }
0x125b   :  { %3134 = vmatprep.subr.bf16.mxu0 %v7035_v58  ;;  %v1777_v58 = vld [vmem:[#allocation5 + $0x38] sm:$0xff] }
0x125e   :  { %3135 = vmatpush1.bf16.msra.mxu0 %v7033_v59  ;;  %v2966_v59 = vpack.c.bf16 %v1777_v58, %v1775_v32  ;;  %v8524_v32 = vld [vmem:[#allocation7 + $0x40] sm:$0xff]  ;;  %v8526_v58 = vld [vmem:[#allocation7 + $0x50] sm:$0xff] }
0x125f   :  { %3136 = vmatprep.subr.bf16.mxu0 %v7038_v60  ;;  %v1774_v60 = vld [vmem:[#allocation5 + $0x20] sm:$0xff] }
0x1260   :  { %6444 = vmatprep.mubr.msk.bf16.mxu0 %vm577_vm1, %v2966_v59  ;;  %v3405_v59 = vpack.c.bf16 %v8526_v58, %v8524_v32 }
0x1262   :  { %3137 = vmatpush1.bf16.msra.mxu0 %v7036_v61  ;;  %v1776_v61 = vld [vmem:[#allocation5 + $0x30] sm:$0xff] }
0x12c6   :  { %v2632_v63 = vpop.permute.xlu0 %2631 }
0x12c7   :  { %6736 = vmatmul.mubr.msk.bf16.vlgmr.msra.gmra.mrb[32].mxu1 %vm320_vm0, %v2632_v63 }
0x12c8   :  { %6747 = vmatprep.mubr.msk.bf16.mxu1 %vm7759_vm4, %v7758_v46  ;;  %6740 = vmatpush3.bf16.msra.mxu1 %v7017_v38  ;;  %v7044_v38 = vld [vmem:[#allocation22 + $0x74] ss:$8 sps:$4 sm:$0xff]  }
0x12c9   :  { %6741 = vmatprep.subr.bf16.mxu1 %v7758_v46 }
0x12cc   :  { %6742 = vmatpush3.bf16.msra.mxu1 %v7018_v44  ;;  %v7047_v44 = vld [vmem:[#allocation19 + $0x4] ss:$8 sps:$4 sm:$0xff]  }
0x12cd   :  { %6743 = vmatprep.subr.bf16.mxu1 %v7758_v46 }
0x12d0   :  { %6744 = vmatpush3.bf16.msra.mxu1 %v7019_v48  ;;  %v7048_v48 = vld [vmem:[#allocation22 + $0x80] ss:$8 sps:$4 sm:$0xff]  }
0x12d1   :  { %6745 = vmatprep.subr.bf16.mxu1 %v7758_v46 }
0x12d4   :  { %6746 = vmatpush3.bf16.msra.mxu1 %v7020_v49  ;;  %v7051_v49 = vld [vmem:[#allocation19 + $0x10] ss:$8 sps:$4 sm:$0xff]  }
0x12d5   :  { %2910 = vmatprep.subr.bf16.mxu1 %v7047_v44  ;;  %v7091_v44 = vld [vmem:[#allocation11 + $0x64] ss:$8 sps:$4 sm:$0xff]  }
0x139a   :  { %v2682_v3 = vpop.f32.mrb[32].mxu1 }
0x139b   :  { %v2695_v31 = vrot.slane %v2682_v3, %v8106_v55  ;;  %v6737_v5 = vpop.f32.mrb[33].mxu1 }
0x139c   :  { %v2685_v33 = vpop.f32.mrb[34].mxu1  ;;  %v8495_v5 = vld [vmem:[%s9032_s0] sm:$0xff] }
0x139d   :  { %v2696_v6 = vcombine.high %v2695_v31, %v2695_v31  ;;  %v2703_v7 = vrot.slane %v2695_v31, %v8106_v55  ;;  %v6738_v8 = vpop.f32.mrb[35].mxu1 }
0x139f   :  { %v2710_v9 = vrot.slane %v2696_v6, %v8106_v55  ;;  %v2714_v10 = vrot.slane %v2703_v7, %v8098_v40 }
0x13a1   :  { %v2721_v12 = vmul.f32 %v2714_v10, %v8239_v0  ;;  %v2718_v13 = vrot.slane %v2710_v9, %v8098_v40 }
0x13a3   :  { %v2723_v14 = vsel %vm577_vm1, %v2721_v12, 0.0  ;;  %v2722_v15 = vmul.f32 %v2718_v13, %v8246_v4 }
0x13a4   :  { %2724 = vadd.xlane.f32.xlu0 %v2723_v14 }
0x13a5   :  { %v2726_v16 = vsel %vm577_vm1, %v2722_v15, 0.0 }
0x13a6   :  { %2727 = vadd.xlane.f32.xlu1 %v2726_v16 }
0x1431   :  { %v2725_v20 = vpop.xlane.xlu0 %2724 }
0x1432   :  { %v2734_v23 = vrot.slane %v2725_v20, %v8121_v21 }
0x1433   :  { %v2728_v22 = vpop.xlane.xlu1 %2727 }
0x1434   :  { %v2738_v24 = vrot.slane %v2728_v22, %v8121_v21 }
0x1436   :  { %v2739_v25 = vsel %vm691_vm2, %v2738_v24, %v2734_v23 }
0x1437   :  { %v2741_v0 = vsel %vm1239_vm5, -1e+30, %v2739_v25 }
0x1438   :  { %v2742_v26 = vsel %vm694_vm3, %v2741_v0, -inf }
0x1439   :  { %2743 = vmax.xlane.f32.xlu1 %v2742_v26 }
0x14c6   :  { %v2744_v28 = vpop.xlane.xlu1 %2743 }
0x14c7   :  { %v2745_v4 = vsub.f32 %v2741_v0, %v2744_v28 }
0x14c9   :  { %v2746_v34 = vmul.f32 1.442695, %v2745_v4 }
0x14cb   :  { %7329 = vpow2.f32 %v2746_v34 }
0x14d5   :  { %v7330_v35 = vpop.eup %7329 }
0x14d6   :  { %v2748_v36 = vsel %vm694_vm3, %v7330_v35, 0.0 }
0x14d7   :  { %2749 = vadd.xlane.f32.xlu1 %v2748_v36  ;;  %v7039_v36 = vld [vmem:[#allocation22 + $0x60] ss:$8 sps:$4 sm:$0xff]  }
0x1564   :  { %v2750_v37 = vpop.xlane.xlu1 %2749 }
0x1565   :  { %7331 = vrcp.f32 %v2750_v37  ;;  %v7042_v37 = vld [vmem:[#allocation22 + $0x70] ss:$8 sps:$4 sm:$0xff]  }
0x156f   :  { %v7332_v41 = vpop.eup %7331 }
0x1570   :  { %v8468_v43 = vmul.f32 %v7332_v41, %v7330_v35  ;;  %v7041_v35 = vld [vmem:[#allocation22 + $0x64] ss:$8 sps:$4 sm:$0xff]  }
0x1571   :  { %3138 = vmatprep.subr.bf16.mxu0 %v7041_v35  ;;  %v7045_v41 = vld [vmem:[#allocation19] ss:$8 sps:$4 sm:$0xff]   ;;  %v7080_v35 = vld [vmem:[#allocation11 + $0x30] ss:$8 sps:$4 sm:$0xff]  }
0x1572   :  { %v2763_v45 = vrot.slane %v8468_v43, %v8101_v42  ;;  %v2756_v47 = vrot.slane %v8468_v43, %v8098_v40  ;;  %3139 = vmatpush1.bf16.msra.mxu0 %v7039_v36  ;;  %v7085_v36 = vld [vmem:[#allocation11 + $0x44] ss:$8 sps:$4 sm:$0xff]  }
0x1573   :  { %3140 = vmatprep.subr.bf16.mxu0 %v7044_v38  ;;  %v7088_v38 = vld [vmem:[#allocation11 + $0x54] ss:$8 sps:$4 sm:$0xff]  }
0x1574   :  { %2765 = vbcast.lane.b32.xlu0 %v2763_v45, 256  ;;  %2758 = vbcast.lane.b32.xlu1 %v2756_v47, 256  ;;  %v7050_v45 = vld [vmem:[#allocation22 + $0x84] ss:$8 sps:$4 sm:$0xff]   ;;  %v7053_v47 = vld [vmem:[#allocation19 + $0x14] ss:$8 sps:$4 sm:$0xff]  }
0x1576   :  { %3141 = vmatpush1.bf16.msra.mxu0 %v7042_v37  ;;  %v7083_v37 = vld [vmem:[#allocation11 + $0x40] ss:$8 sps:$4 sm:$0xff]  }
0x1577   :  { %3142 = vmatprep.subr.bf16.mxu0 %v7050_v45  ;;  %v7089_v45 = vld [vmem:[#allocation11 + $0x60] ss:$8 sps:$4 sm:$0xff]  }
0x1578   :  { %2823 = vrot.lane.b32.xlu1 %v2682_v3, %s7744_s4  ;;  %v8489_v3 = vld [vmem:[%s9032_s0 + $0x8] sm:$0xff] }
0x157a   :  { %3143 = vmatpush1.bf16.msra.mxu0 %v7048_v48  ;;  %v7092_v48 = vld [vmem:[#allocation11 + $0x70] ss:$8 sps:$4 sm:$0xff]  }
0x157b   :  { %3144 = vmatprep.subr.bf16.mxu0 %v7056_v50  ;;  %v7095_v50 = vld [vmem:[#allocation11 + $0x80] ss:$8 sps:$4 sm:$0xff]  }
0x157e   :  { %3145 = vmatpush1.bf16.msra.mxu0 %v7054_v53  ;;  %v7098_v53 = vld [vmem:[#allocation11 + $0x90] ss:$8 sps:$4 sm:$0xff]  }
0x157f   :  { %3146 = vmatprep.subr.bf16.mxu0 %v7062_v56  ;;  %v7101_v56 = vld [vmem:[#allocation11 + $0xa0] ss:$8 sps:$4 sm:$0xff]  }
0x1582   :  { %3147 = vmatpush1.bf16.msra.mxu0 %v7060_v18  ;;  %v7103_v18 = vld [vmem:[#allocation11 + $0xa4] ss:$8 sps:$4 sm:$0xff]  }
0x1583   :  { %3148 = vmatprep.subr.bf16.mxu0 %v7068_v57  ;;  %v7104_v57 = vld [vmem:[#allocation11 + $0xb0] ss:$8 sps:$4 sm:$0xff]  }
0x1586   :  { %3149 = vmatpush1.bf16.msra.mxu0 %v7066_v29  ;;  %v7106_v29 = vld [vmem:[#allocation11 + $0xb4] ss:$8 sps:$4 sm:$0xff]  }
0x1587   :  { %3924 = vmatprep.subr.bf16.mxu0 %v7756_v1 }
0x15e6   :  { %v2766_v62 = vpop.permute.xlu0 %2765  ;;  %v2759_v63 = vpop.permute.xlu1 %2758 }
0x15e7   :  { %v2768_v31 = vmul.f32 %v8489_v3, %v2766_v62  ;;  %v2767_v33 = vmul.f32 %v8495_v5, %v2759_v63  ;;  %v2965_v62 = vpack.c.bf16 %v1776_v61, %v1774_v60 }
0x15e9   :  { %v2776_v6 = vsel %vm577_vm1, %v2768_v31, 0.0  ;;  %v2769_v7 = vsel %vm577_vm1, %v2767_v33, 0.0  ;;  %3159 = vmatmul.mubr.bf16.vlgmr.msra.gmra.mrb[24].mxu0 %v2965_v62 }
0x15ea   :  { %v2777_v8 = vrot.slane %v2776_v6, 4  ;;  %v2770_v9 = vrot.slane %v2769_v7, 4  ;;  %v2824_v63 = vpop.permute.xlu1 %2823 }
0x15ec   :  { %v2778_v10 = vadd.f32 %v2777_v8, %v2776_v6  ;;  %v2771_v12 = vadd.f32 %v2770_v9, %v2769_v7 }
0x15ee   :  { %v2779_v13 = vrot.slane %v2778_v10, 2  ;;  %v2772_v14 = vrot.slane %v2771_v12, 2 }
0x15f0   :  { %v2780_v15 = vadd.f32 %v2779_v13, %v2778_v10  ;;  %v2773_v16 = vadd.f32 %v2772_v14, %v2771_v12  ;;  %v7057_v10 = vld [vmem:[#allocation8] ss:$12 sps:$4 sm:$0xff]   ;;  %v7065_v13 = vld [vmem:[#allocation8 + $0x1c] ss:$12 sps:$4 sm:$0xff]   ;;  %v7063_v14 = vld [vmem:[#allocation8 + $0x18] ss:$12 sps:$4 sm:$0xff]  }
0x15f2   :  { %v2781_v20 = vrot.slane %v2780_v15, 1  ;;  %v2774_v22 = vrot.slane %v2773_v16, 1 }
0x15f4   :  { %v2782_v23 = vadd.f32 %v2781_v20, %v2780_v15  ;;  %v2775_v24 = vadd.f32 %v2774_v22, %v2773_v16  ;;  %v7069_v15 = vld [vmem:[#allocation8 + $0x8] ss:$12 sps:$4 sm:$0xff]   ;;  %v7070_v16 = vld [vmem:[#allocation8 + $0x20] ss:$12 sps:$4 sm:$0xff]  }
0x15f5   :  { %v7073_v20 = vld [vmem:[#allocation11 + $0x4] ss:$8 sps:$4 sm:$0xff]   ;;  %v8516_v22 = vld [vmem:[#allocation7 + $0x48] sm:$0xff] }
0x15f6   :  { %v2784_v25 = vpack.c.bf16 %v2782_v23, %v2782_v23  ;;  %v2783_v0 = vpack.c.bf16 %v2775_v24, %v2775_v24  ;;  %v8518_v23 = vld [vmem:[#allocation7 + $0x58] sm:$0xff] }
0x15f7   :  { %v7071_v24 = vld [vmem:[#allocation11] ss:$8 sps:$4 sm:$0xff]  }
0x15f8   :  { %v2796_v26 = vunpack.c.l.b16 %v2784_v25  ;;  %v2795_v28 = vunpack.c.l.b16 %v2783_v0  ;;  %v3406_v25 = vpack.c.bf16 %v8518_v23, %v8516_v22  ;;  %v7076_v0 = vld [vmem:[#allocation11 + $0x14] ss:$8 sps:$4 sm:$0xff]  }
0x15fa   :  { %v2797_v4 = vsel %vm691_vm2, %v2796_v26, %v2795_v28  ;;  %v7074_v26 = vld [vmem:[#allocation11 + $0x10] ss:$8 sps:$4 sm:$0xff]   ;;  %v7079_v28 = vld [vmem:[#allocation11 + $0x24] ss:$8 sps:$4 sm:$0xff]  }
0x15fb   :  { %v2798_v34 = vpack.c.b16 %v2797_v4, %v2797_v4  ;;  %v7077_v4 = vld [vmem:[#allocation11 + $0x20] ss:$8 sps:$4 sm:$0xff]  }
0x15fd   :  { %6748 = vmatmul.mubr.msk.bf16.vlgmr.msra.gmra.mrb[36].mxu1 %vm577_vm1, %v2798_v34  ;;  %v7082_v34 = vld [vmem:[#allocation11 + $0x34] ss:$8 sps:$4 sm:$0xff]  }
0x15fe   :  { %2942 = vmatprep.mubr.bf16.mxu1 %v7756_v1  ;;  %2911 = vmatpush1.bf16.msra.mxu1 %v7045_v41  ;;  %v7086_v41 = vld [vmem:[#allocation11 + $0x50] ss:$8 sps:$4 sm:$0xff]  }
0x15ff   :  { %2912 = vmatprep.subr.bf16.mxu1 %v7053_v47  ;;  %v7094_v47 = vld [vmem:[#allocation11 + $0x74] ss:$8 sps:$4 sm:$0xff]  }
0x1602   :  { %2913 = vmatpush1.bf16.msra.mxu1 %v7051_v49  ;;  %v7097_v49 = vld [vmem:[#allocation11 + $0x84] ss:$8 sps:$4 sm:$0xff]  }
0x1603   :  { %3310 = vmatprep.subr.bf16.mxu1 %v7059_v52  ;;  %v7100_v52 = vld [vmem:[#allocation11 + $0x94] ss:$8 sps:$4 sm:$0xff]  }
0x16bc   :  { %v3160_v60 = vpop.f32.mrb[24].mxu0 }
0x16bd   :  { %v3162_v61 = vpop.f32.mrb[25].mxu0 }
0x16be   :  { %v3164_v62 = vpop.f32.mrb[26].mxu0 }
0x16d0   :  { %v2863_v31 = vpop.f32.mrb[36].mxu1 }
0x16d1   :  { %v2864_v33 = vadd.f32 %v2863_v31, %v2824_v63  ;;  %v6749_v6 = vpop.f32.mrb[37].mxu1  ;;  %v3166_v63 = vpop.f32.mrb[27].mxu0  ;;  %v2875_v31 = vld [vmem:[#allocation20] sm:$0x3] }
0x16d2   :  { %v2866_v7 = vpop.f32.mrb[38].mxu1  ;;  %v2880_v6 = vrot.slane %v2875_v31, %v8098_v40 }
0x16d3   :  { %7333 = vtanh.f32 %v2864_v33  ;;  %v6750_v8 = vpop.f32.mrb[39].mxu1  ;;  %v2951_v33 = vld [vmem:[#allocation25] sm:$0x3]  ;;  %v2884_v7 = vrot.slane %v2875_v31, %v8101_v42 }
0x16d4   :  { %v2956_v8 = vrot.slane %v2951_v33, %v8098_v40 }
0x16dd   :  { %v8505_v9 = vpop.eup %7333 }
0x16de   :  { %v2870_v12 = vpack.c.bf16 %v8505_v9, %v8505_v9 }
0x16e0   :  { %6419 = vmatmul.mubr.msk.bf16.vlgmr.msra.gmra.mrb[40].mxu1 %vm320_vm0, %v2870_v12 }
0x16e1   :  { %3311 = vmatpush1.bf16.msra.mxu1 %v7057_v10  ;;  %3342 = vmatprep.mubr.bf16.mxu1 %v7756_v1 }
0x16e2   :  { %3312 = vmatprep.subr.bf16.mxu1 %v7065_v13 }
0x16e5   :  { %3313 = vmatpush1.bf16.msra.mxu1 %v7063_v14 }
0x16e6   :  { %6751 = vmatprep.subr.bf16.mxu1 %v7758_v46 }
0x16e8   :  { %6453 = vmatmul.mubr.msk.bf16.vlgmr.msra.gmra.mrb[44].mxu1 %vm320_vm0, %v2870_v12 }
0x16e9   :  { %6752 = vmatpush3.bf16.msra.mxu1 %v7069_v15  ;;  %6755 = vmatprep.mubr.msk.bf16.mxu1 %vm7759_vm4, %v7758_v46 }
0x16ea   :  { %6753 = vmatprep.subr.bf16.mxu1 %v7758_v46 }
0x16ed   :  { %6754 = vmatpush3.bf16.msra.mxu1 %v7070_v16 }
0x16ee   :  { %3566 = vmatprep.subr.bf16.mxu1 %v7073_v20  ;;  %v3391_v20 = vld [vmem:[#allocation10] sm:$0x3] }
0x16f0   :  { %6756 = vmatmul.mubr.msk.bf16.vlgmr.msra.gmra.mrb[48].mxu1 %vm320_vm0, %v2870_v12  ;;  %v2960_v12 = vrot.slane %v2951_v33, %v8101_v42 }
0x16f1   :  { %3567 = vmatpush1.bf16.msra.mxu1 %v7071_v24  ;;  %6479 = vmatprep.mubr.msk.bf16.mxu1 %vm577_vm1, %v3406_v25  ;;  %v2991_v24 = vld [vmem:[#allocation23] sm:$0x3] }
0x16f2   :  { %3568 = vmatprep.subr.bf16.mxu1 %v7076_v0 }
0x16f5   :  { %3569 = vmatpush1.bf16.msra.mxu1 %v7074_v26 }
0x16f6   :  { %3570 = vmatprep.subr.bf16.mxu1 %v7079_v28  ;;  %v3396_v28 = vrot.slane %v3391_v20, %v8098_v40 }
0x16f9   :  { %3571 = vmatpush1.bf16.msra.mxu1 %v7077_v4  ;;  %v2996_v4 = vrot.slane %v2991_v24, %v8098_v40 }
0x16fa   :  { %3572 = vmatprep.subr.bf16.mxu1 %v7082_v34 }
0x16fd   :  { %3573 = vmatpush1.bf16.msra.mxu1 %v7080_v35  ;;  %v3400_v35 = vrot.slane %v3391_v20, %v8101_v42 }
0x16fe   :  { %3574 = vmatprep.subr.bf16.mxu1 %v7085_v36  ;;  %v3000_v36 = vrot.slane %v2991_v24, %v8101_v42 }
0x1700   :  { %v3167_v31 = vadd.f32 %v3166_v63, %v3000_v36  ;;  %v3431_v63 = vld [vmem:[#allocation13] sm:$0x3] }
0x1701   :  { %3575 = vmatpush1.bf16.msra.mxu1 %v7083_v37  ;;  %v3436_v24 = vrot.slane %v3431_v63, %v8098_v40 }
0x1702   :  { %3576 = vmatprep.subr.bf16.mxu1 %v7088_v38 }
0x1705   :  { %3577 = vmatpush1.bf16.msra.mxu1 %v7086_v41 }
0x1706   :  { %3578 = vmatprep.subr.bf16.mxu1 %v7091_v44 }
0x1709   :  { %3579 = vmatpush1.bf16.msra.mxu1 %v7089_v45  ;;  %v3161_v45 = vadd.f32 %v3160_v60, %v2996_v4 }
0x170a   :  { %3580 = vmatprep.subr.bf16.mxu1 %v7094_v47 }
0x170d   :  { %3581 = vmatpush1.bf16.msra.mxu1 %v7092_v48 }
0x170e   :  { %3582 = vmatprep.subr.bf16.mxu1 %v7097_v49 }
0x1711   :  { %3583 = vmatpush1.bf16.msra.mxu1 %v7095_v50  ;;  %v3163_v50 = vadd.f32 %v3162_v61, %v3000_v36 }
0x1712   :  { %3584 = vmatprep.subr.bf16.mxu1 %v7100_v52 }
0x1715   :  { %3585 = vmatpush1.bf16.msra.mxu1 %v7098_v53 }
0x1716   :  { %3586 = vmatprep.subr.bf16.mxu1 %v7103_v18  ;;  %v3165_v18 = vadd.f32 %v3164_v62, %v2996_v4 }
0x1719   :  { %3587 = vmatpush1.bf16.msra.mxu1 %v7101_v56 }
0x171a   :  { %3588 = vmatprep.subr.bf16.mxu1 %v7106_v29 }
0x171d   :  { %3589 = vmatpush1.bf16.msra.mxu1 %v7104_v57 }
0x171e   :  { %4039 = vmatprep.subr.bf16.mxu1 %v7756_v1 }
0x1720   :  { %3599 = vmatmul.mubr.bf16.vlgmr.msra.gmra.mrb[52].mxu1 %v3405_v59 }
0x17b3   :  { %v2944_v10 = vpop.f32.mrb[40].mxu1 }
0x17b4   :  { %v2945_v13 = vadd.f32 %v2944_v10, %v2880_v6  ;;  %v2946_v14 = vpop.f32.mrb[41].mxu1 }
0x17b5   :  { %v2947_v15 = vadd.f32 %v2946_v14, %v2884_v7  ;;  %v2948_v16 = vpop.f32.mrb[42].mxu1 }
0x17b6   :  { %v2963_v25 = vmul.f32 %v2956_v8, %v2945_v13  ;;  %v2949_v0 = vpop.f32.mrb[43].mxu1 }
0x17b7   :  { %v2964_v26 = vmul.f32 %v2960_v12, %v2947_v15  ;;  %v3440_v0 = vrot.slane %v3431_v63, %v8101_v42 }
0x17b9   :  { %v3171_v34 = vcombine.low %v2963_v25, %v2964_v26 }
0x17bb   :  { %v3178_v37 = vrot.slane %v3171_v34, %v8106_v55  ;;  %v3344_v38 = vpop.f32.mrb[44].mxu1 }
0x17bc   :  { %v3403_v41 = vadd.f32 %v3396_v28, %v3344_v38  ;;  %v3346_v44 = vpop.f32.mrb[45].mxu1 }
0x17bd   :  { %v3404_v47 = vadd.f32 %v3400_v35, %v3346_v44  ;;  %v3186_v48 = vrot.slane %v3178_v37, %v8106_v55  ;;  %v3348_v49 = vpop.f32.mrb[46].mxu1  ;;  %v3179_v52 = vcombine.high %v3178_v37, %v3178_v37 }
0x17be   :  { %v3349_v53 = vpop.f32.mrb[47].mxu1 }
0x17bf   :  { %v3611_v56 = vcombine.low %v3403_v41, %v3404_v47  ;;  %v3197_v29 = vrot.slane %v3186_v48, %v8098_v40  ;;  %v3201_v57 = vrot.slane %v3186_v48, %v8101_v42  ;;  %v3193_v59 = vrot.slane %v3179_v52, %v8106_v55 }
0x17c1   :  { %v3214_v33 = vmul.f32 %v3197_v29, %v3161_v45  ;;  %v3215_v6 = vmul.f32 %v3201_v57, %v3163_v50  ;;  %v3205_v60 = vrot.slane %v3193_v59, %v8098_v40  ;;  %v3209_v7 = vrot.slane %v3193_v59, %v8101_v42 }
0x17c2   :  { %v3618_v16 = vrot.slane %v3611_v56, %v8106_v55 }
0x17c3   :  { %v3216_v8 = vmul.f32 %v3205_v60, %v3165_v18  ;;  %v8546_v10 = vpop.f32.mrb[48].mxu1  ;;  %v8548_v61 = vadd.f32 %v3215_v6, %v3214_v33  ;;  %v3217_v62 = vmul.f32 %v3209_v7, %v3167_v31 }
0x17c4   :  { %v6757_v12 = vpop.f32.mrb[49].mxu1  ;;  %v3619_v20 = vcombine.high %v3618_v16, %v3618_v16  ;;  %v3626_v25 = vrot.slane %v3618_v16, %v8106_v55 }
0x17c5   :  { %v3388_v13 = vpop.f32.mrb[50].mxu1  ;;  %v8550_v15 = vadd.f32 %v3217_v62, %v3216_v8 }
0x17c6   :  { %v6758_v14 = vpop.f32.mrb[51].mxu1  ;;  %v3633_v26 = vrot.slane %v3619_v20, %v8106_v55  ;;  %v3637_v34 = vrot.slane %v3626_v25, %v8098_v40  ;;  %v3641_v37 = vrot.slane %v3626_v25, %v8101_v42 }
0x17c8   :  { %v3645_v45 = vrot.slane %v3633_v26, %v8098_v40  ;;  %v3649_v50 = vrot.slane %v3633_v26, %v8101_v42 }
0x17f3   :  { %v3600_v28 = vpop.f32.mrb[52].mxu1 }
0x17f4   :  { %v3601_v4 = vadd.f32 %v3600_v28, %v3436_v24  ;;  %v3602_v35 = vpop.f32.mrb[53].mxu1 }
0x17f5   :  { %v3603_v36 = vadd.f32 %v3602_v35, %v3440_v0  ;;  %v3604_v38 = vpop.f32.mrb[54].mxu1  ;;  %v7109_v35 = vld [vmem:[%s9002_s11 + $0x8] sm:$0xff]  }
0x17f6   :  { %v3654_v41 = vmul.f32 %v3637_v34, %v3601_v4  ;;  %v3605_v44 = vadd.f32 %v3604_v38, %v3436_v24  ;;  %v3606_v47 = vpop.f32.mrb[55].mxu1  ;;  %v7107_v4 = vld [vmem:[%s9002_s11] sm:$0xff]   ;;  %v7112_v38 = vld [vmem:[#allocation14 + $0x10] sm:$0xff]  }
0x17f7   :  { %v3655_v48 = vmul.f32 %v3641_v37, %v3603_v36  ;;  %v3607_v49 = vadd.f32 %v3606_v47, %v3440_v0  ;;  %v7108_v34 = vld [vmem:[#allocation14] sm:$0xff]   ;;  %4040 = vmatpush1.bf16.msra.mxu1 %v7107_v4  ;;  %v7110_v36 = vld [vmem:[#allocation14 + $0x8] sm:$0xff]  }
0x17f8   :  { %v3656_v52 = vmul.f32 %v3645_v45, %v3605_v44  ;;  %3925 = vmatpush1.bf16.msra.mxu0 %v7108_v34  ;;  %4041 = vmatprep.subr.bf16.mxu1 %v7756_v1  ;;  %v7111_v37 = vld [vmem:[%s9002_s11 + $0x10] sm:$0xff]   ;;  %v7114_v44 = vld [vmem:[#allocation14 + $0x18] sm:$0xff]   ;;  %v7116_v47 = vld [vmem:[#allocation14 + $0x20] sm:$0xff]  }
0x17f9   :  { %v3657_v53 = vmul.f32 %v3649_v50, %v3607_v49  ;;  %v3658_v18 = vadd.f32 %v3655_v48, %v3654_v41  ;;  %3926 = vmatprep.subr.bf16.mxu0 %v7756_v1  ;;  %v7113_v41 = vld [vmem:[%s9002_s11 + $0x18] sm:$0xff]   ;;  %v7115_v45 = vld [vmem:[%s9002_s11 + $0x20] sm:$0xff]   ;;  %v7117_v48 = vld [vmem:[%s9002_s11 + $0x28] sm:$0xff]  }
0x17fb   :  { %3659 = vadd.xlane.f32.xlu1 %v3658_v18  ;;  %v3661_v56 = vadd.f32 %v3657_v53, %v3656_v52  ;;  %4042 = vmatpush1.bf16.msra.mxu1 %v7109_v35 }
0x17fc   :  { %3927 = vmatpush1.bf16.msra.mxu0 %v7110_v36  ;;  %4043 = vmatprep.subr.bf16.mxu1 %v7756_v1 }
0x17fd   :  { %3662 = vadd.xlane.f32.xlu0 %v3661_v56  ;;  %3928 = vmatprep.subr.bf16.mxu0 %v7756_v1  ;;  %v7118_v56 = vld [vmem:[#allocation14 + $0x28] sm:$0xff]  }
0x17ff   :  { %4044 = vmatpush1.bf16.msra.mxu1 %v7111_v37 }
0x1800   :  { %3929 = vmatpush1.bf16.msra.mxu0 %v7112_v38  ;;  %4045 = vmatprep.subr.bf16.mxu1 %v7756_v1 }
0x1801   :  { %3930 = vmatprep.subr.bf16.mxu0 %v7756_v1 }
0x1803   :  { %4046 = vmatpush1.bf16.msra.mxu1 %v7113_v41 }
0x1804   :  { %3931 = vmatpush1.bf16.msra.mxu0 %v7114_v44  ;;  %4047 = vmatprep.subr.bf16.mxu1 %v7756_v1 }
0x1805   :  { %3932 = vmatprep.subr.bf16.mxu0 %v7756_v1 }
0x1807   :  { %4048 = vmatpush1.bf16.msra.mxu1 %v7115_v45 }
0x1808   :  { %3933 = vmatpush1.bf16.msra.mxu0 %v7116_v47  ;;  %4049 = vmatprep.subr.bf16.mxu1 %v7756_v1 }
0x1809   :  { %3934 = vmatprep.subr.bf16.mxu0 %v7756_v1 }
0x180b   :  { %4050 = vmatpush1.bf16.msra.mxu1 %v7117_v48 }
0x180c   :  { %4051 = vmatprep.subr.bf16.mxu1 %v7756_v1  ;;  %3935 = vmatpush1.bf16.msra.mxu0 %v7118_v56 }
0x180d   :  { %3936 = vmatprep.subr.bf16.mxu0 %v7756_v1 }
0x1888   :  { %v3660_v29 = vpop.xlane.xlu1 %3659 }
0x1889   :  { %v3669_v59 = vrot.slane %v3660_v29, %v8121_v21 }
0x188a   :  { %v3663_v57 = vpop.xlane.xlu0 %3662 }
0x188b   :  { %v3673_v31 = vrot.slane %v3663_v57, %v8121_v21 }
0x188d   :  { %v3674_v33 = vsel %vm691_vm2, %v3673_v31, %v3669_v59  ;;  %v7120_v59 = vld [vmem:[#allocation14 + $0x30] sm:$0xff]  }
0x188e   :  { %v3676_v6 = vsel %vm694_vm3, %v3674_v33, -inf  ;;  %v7121_v31 = vld [vmem:[%s9002_s11 + $0x38] sm:$0xff]   ;;  %3937 = vmatpush1.bf16.msra.mxu0 %v7120_v59 }
0x188f   :  { %3677 = vmax.xlane.f32.xlu1 %v3676_v6  ;;  %3938 = vmatprep.subr.bf16.mxu0 %v7756_v1  ;;  %v7122_v33 = vld [vmem:[#allocation14 + $0x38] sm:$0xff]  }
0x1890   :  { %v7123_v6 = vld [vmem:[%s9002_s11 + $0x40] sm:$0xff]  }
0x1892   :  { %3939 = vmatpush1.bf16.msra.mxu0 %v7122_v33 }
0x1893   :  { %3940 = vmatprep.subr.bf16.mxu0 %v7756_v1 }
0x191c   :  { %v3678_v60 = vpop.xlane.xlu1 %3677 }
0x191d   :  { %v3683_v7 = vrot.slane %v3678_v60, %v8098_v40  ;;  %v3687_v8 = vrot.slane %v3678_v60, %v8101_v42  ;;  %v7124_v60 = vld [vmem:[#allocation14 + $0x40] sm:$0xff]  }
0x191e   :  { %3941 = vmatpush1.bf16.msra.mxu0 %v7124_v60 }
0x191f   :  { %v3690_v62 = vsub.f32 %v3660_v29, %v3683_v7  ;;  %v3691_v12 = vsub.f32 %v3663_v57, %v3687_v8  ;;  %v7119_v29 = vld [vmem:[%s9002_s11 + $0x30] sm:$0xff]   ;;  %v7125_v7 = vld [vmem:[%s9002_s11 + $0x48] sm:$0xff]   ;;  %3942 = vmatprep.subr.bf16.mxu0 %v7756_v1 }
0x1920   :  { %4052 = vmatpush1.bf16.msra.mxu1 %v7119_v29  ;;  %v7126_v8 = vld [vmem:[#allocation14 + $0x48] sm:$0xff]  }
0x1921   :  { %v3692_v13 = vmul.f32 1.442695, %v3690_v62  ;;  %v3694_v14 = vmul.f32 1.442695, %v3691_v12  ;;  %4053 = vmatprep.subr.bf16.mxu1 %v7756_v1  ;;  %v7127_v62 = vld [vmem:[%s9002_s11 + $0x50] sm:$0xff]  }
0x1922   :  { %3943 = vmatpush1.bf16.msra.mxu0 %v7126_v8  ;;  %v7128_v12 = vld [vmem:[#allocation14 + $0x50] sm:$0xff]  }
0x1923   :  { %7335 = vpow2.f32 %v3692_v13  ;;  %3944 = vmatprep.subr.bf16.mxu0 %v7756_v1  ;;  %v6480_v13 = vld.sshfl [vmem:[#allocation3 + $0x8] sm:$0x33 pattern:$0x76325410] }
0x1924   :  { %7337 = vpow2.f32 %v3694_v14  ;;  %4054 = vmatpush1.bf16.msra.mxu1 %v7121_v31  ;;  %v7129_v14 = vld [vmem:[%s9002_s11 + $0x58] sm:$0xff]  }
0x1925   :  { %4055 = vmatprep.subr.bf16.mxu1 %v7756_v1 }
0x1926   :  { %3945 = vmatpush1.bf16.msra.mxu0 %v7128_v12 }
0x1927   :  { %3946 = vmatprep.subr.bf16.mxu0 %v7756_v1 }
0x1928   :  { %4056 = vmatpush1.bf16.msra.mxu1 %v7123_v6 }
0x1929   :  { %4057 = vmatprep.subr.bf16.mxu1 %v7756_v1 }
0x192c   :  { %4058 = vmatpush1.bf16.msra.mxu1 %v7125_v7 }
0x192d   :  { %v7336_v16 = vpop.eup %7335  ;;  %4059 = vmatprep.subr.bf16.mxu1 %v7756_v1 }
0x192e   :  { %v7338_v63 = vpop.eup %7337  ;;  %3699 = vperm.xlu1 %6835, %v7336_v16  }
0x192f   :  { %3702 = vperm.xlu0 %6836, %v7338_v63  }
0x1930   :  { %4060 = vmatpush1.bf16.msra.mxu1 %v7127_v62 }
0x1931   :  { %4061 = vmatprep.subr.bf16.mxu1 %v7756_v1 }
0x1934   :  { %4062 = vmatpush1.bf16.msra.mxu1 %v7129_v14 }
0x1935   :  { %6767 = vmatprep.subr.bf16.mxu1 %v7758_v46 }
0x19ad   :  { %v3700_v20 = vpop.permute.xlu1 %3699 }
0x19ae   :  { %v3703_v24 = vpop.permute.xlu0 %3702  ;;  %v3707_v25 = vrot.slane %v3700_v20, %v8121_v21  ;;  %v7130_v20 = vld [vmem:[#allocation14 + $0x58] sm:$0xff]  }
0x19af   :  { %v3711_v0 = vrot.slane %v3703_v24, %v8121_v21  ;;  %v3782_v24 = vpack.c.bf16 %v6480_v13, %v6480_v13  ;;  %3947 = vmatpush1.bf16.msra.mxu0 %v7130_v20 }
0x19b0   :  { %6759 = vmatprep.subr.bf16.mxu0 %v7758_v46 }
0x19b1   :  { %v3712_v26 = vsel %vm691_vm2, %v3711_v0, %v3707_v25 }
0x19b2   :  { %v3714_v28 = vsel %vm694_vm3, %v3712_v26, 0.0 }
0x19b3   :  { %3715 = vadd.xlane.f32.xlu1 %v3714_v28 }
0x1a40   :  { %v3716_v49 = vpop.xlane.xlu1 %3715 }
0x1a41   :  { %7339 = vrcp.f32 %v3716_v49 }
0x1a4b   :  { %v7340_v50 = vpop.eup %7339 }
0x1a4c   :  { %v3722_v52 = vrot.slane %v7340_v50, %v8098_v40  ;;  %v3726_v18 = vrot.slane %v7340_v50, %v8101_v42 }
0x1a4e   :  { %v3729_v53 = vmul.f32 %v7336_v16, %v3722_v52  ;;  %v3730_v57 = vmul.f32 %v7338_v63, %v3726_v18  ;;  %v3779_v16 = vcombine.high %v6480_v13, %v6480_v13 }
0x1a50   :  { %3733 = vperm.xlu0 %6836, %v3729_v53   ;;  %v3783_v63 = vpack.c.bf16 %v3779_v16, %v3779_v16 }
0x1a52   :  { %6506 = vmatprep.mubr.msk.bf16.mxu1 %vm577_vm1, %v3783_v63 }
0x1a53   :  { %4072 = vmatmul.mubr.bf16.vlgmr.msra.gmra.mrb[56].mxu1 %v3782_v24 }
0x1a54   :  { %3738 = vperm.xlu0 %6836, %v3730_v57   ;;  %6775 = vmatprep.mubr.msk.bf16.mxu1 %vm7759_vm4, %v7758_v46 }
0x1acf   :  { %v3734_v25 = vpop.permute.xlu0 %3733 }
0x1ad0   :  { %v3741_v0 = vmul.f32 %v3734_v25, %v8524_v32  ;;  %v3742_v26 = vmul.f32 %v3734_v25, %v8516_v22 }
0x1ad2   :  { %v3745_v28 = vrot.slane %v3741_v0, 4  ;;  %v3751_v4 = vsel %vm577_vm1, %v3742_v26, 0.0 }
0x1ad3   :  { %v3752_v34 = vrot.slane %v3751_v4, 4  ;;  %v3739_v35 = vpop.permute.xlu0 %3738 }
0x1ad4   :  { %v3746_v36 = vadd.f32 %v3745_v28, %v3741_v0  ;;  %v3743_v37 = vmul.f32 %v3739_v35, %v8526_v58  ;;  %v3744_v38 = vmul.f32 %v3739_v35, %v8518_v23 }
0x1ad5   :  { %v3753_v41 = vadd.f32 %v3752_v34, %v3751_v4 }
0x1ad6   :  { %v3747_v44 = vrot.slane %v3746_v36, 2  ;;  %v3758_v45 = vrot.slane %v3743_v37, 4  ;;  %v3764_v47 = vsel %vm577_vm1, %v3744_v38, 0.0  ;;  %v6507_v38 = vld [vmem:[#allocation16] ss:$0 sm:$0xff] }
0x1ad7   :  { %v3754_v48 = vrot.slane %v3753_v41, 2  ;;  %v3765_v49 = vrot.slane %v3764_v47, 4 }
0x1ad8   :  { %v3748_v32 = vadd.f32 %v3747_v44, %v3746_v36  ;;  %v3759_v50 = vadd.f32 %v3758_v45, %v3743_v37 }
0x1ad9   :  { %v3755_v22 = vadd.f32 %v3754_v48, %v3753_v41  ;;  %v3766_v52 = vadd.f32 %v3765_v49, %v3764_v47 }
0x1ada   :  { %v3749_v53 = vrot.slane %v3748_v32, 1  ;;  %v3760_v18 = vrot.slane %v3759_v50, 2 }
0x1adb   :  { %v3756_v56 = vrot.slane %v3755_v22, 1  ;;  %v3767_v29 = vrot.slane %v3766_v52, 2 }
0x1adc   :  { %v3750_v57 = vadd.f32 %v3749_v53, %v3748_v32  ;;  %v3761_v59 = vadd.f32 %v3760_v18, %v3759_v50 }
0x1add   :  { %v3757_v58 = vadd.f32 %v3756_v56, %v3755_v22  ;;  %v3768_v31 = vadd.f32 %v3767_v29, %v3766_v52  ;;  %v7131_v29 = vld [vmem:[#allocation17] sm:$0xff]  }
0x1ade   :  { %v3762_v23 = vrot.slane %v3761_v59, 1  ;;  %v3808_v6 = vpack.c.bf16 %v3750_v57, %v3750_v57  ;;  %v7132_v57 = vld [vmem:[#allocation17 + $0x8] sm:$0xff]  }
0x1adf   :  { %v3769_v33 = vrot.slane %v3768_v31, 1  ;;  %v3809_v7 = vpack.c.bf16 %v3757_v58, %v3757_v58 }
0x1ae0   :  { %v3763_v60 = vadd.f32 %v3762_v23, %v3761_v59  ;;  %v3840_v13 = vunpack.c.l.b16 %v3808_v6 }
0x1ae1   :  { %v3770_v8 = vadd.f32 %v3769_v33, %v3768_v31  ;;  %v3841_v16 = vunpack.c.l.b16 %v3809_v7 }
0x1ae2   :  { %v3810_v62 = vpack.c.bf16 %v3763_v60, %v3763_v60 }
0x1ae3   :  { %v3811_v12 = vpack.c.bf16 %v3770_v8, %v3770_v8 }
0x1ae4   :  { %v3842_v14 = vunpack.c.l.b16 %v3810_v62 }
0x1ae5   :  { %v3843_v63 = vunpack.c.l.b16 %v3811_v12 }
0x1ae6   :  { %v3844_v20 = vsel %vm691_vm2, %v3842_v14, %v3840_v13 }
0x1ae7   :  { %v3845_v24 = vsel %vm691_vm2, %v3843_v63, %v3841_v16  ;;  %v3846_v0 = vpack.c.b16 %v3844_v20, %v3844_v20 }
0x1ae8   :  { %v3847_v25 = vpack.c.b16 %v3845_v24, %v3845_v24 }
0x1aea   :  { %6493 = vmatprep.mubr.msk.bf16.mxu0 %vm577_vm1, %v3847_v25 }
0x1aeb   :  { %3957 = vmatmul.mubr.bf16.vlgmr.msra.gmra.mrb[28].mxu0 %v3846_v0 }
0x1aec   :  { %6763 = vmatprep.mubr.msk.bf16.mxu0 %vm7759_vm4, %v7758_v46  ;;  %6760 = vmatpush3.bf16.msra.mxu0 %v7131_v29  ;;  %v7137_v29 = vld [vmem:[#allocation22] ss:$8 sps:$4 sm:$0xff]  }
0x1aed   :  { %6761 = vmatprep.subr.bf16.mxu0 %v7758_v46 }
0x1af0   :  { %6762 = vmatpush3.bf16.msra.mxu0 %v7132_v57  ;;  %v7139_v57 = vld [vmem:[#allocation22 + $0x4] ss:$8 sps:$4 sm:$0xff]  }
0x1af1   :  { %4613 = vmatprep.subr.bf16.mxu0 %v7139_v57  ;;  %v7164_v57 = vld [vmem:[#allocation22 + $0x80] ss:$8 sps:$4 sm:$0xff]  }
0x1b26   :  { %v4073_v26 = vpop.f32.mrb[56].mxu1 }
0x1b27   :  { %v4075_v28 = vpop.f32.mrb[57].mxu1 }
0x1b28   :  { %v4076_v4 = vpop.f32.mrb[58].mxu1 }
0x1b29   :  { %v4077_v34 = vpop.f32.mrb[59].mxu1 }
0x1bbe   :  { %v3958_v35 = vpop.f32.mrb[28].mxu0 }
0x1bbf   :  { %v4074_v36 = vadd.f32 %v4073_v26, %v3958_v35  ;;  %v3960_v37 = vpop.f32.mrb[29].mxu0 }
0x1bc0   :  { %v3961_v41 = vpop.f32.mrb[30].mxu0 }
0x1bc1   :  { %v4079_v44 = vadd.f32 %v4074_v36, %v8546_v10  ;;  %v3962_v45 = vpop.f32.mrb[31].mxu0 }
0x1bc3   :  { %v4087_v47 = vadd.f32 %v6507_v38, %v4079_v44 }
0x1bc5   :  { %7341 = vtanh.f32 %v4087_v47  ;;  %v6508_v49 = vmul.f32 -1.442695, %v4087_v47 }
0x1bc7   :  { %7343 = vpow2.f32 %v6508_v49  ;;  %v7133_v49 = vld [vmem:[%s9006_s15] sm:$0xff]  }
0x1bc8   :  { %6768 = vmatpush3.bf16.msra.mxu1 %v7133_v49  ;;  %v7157_v49 = vld [vmem:[#allocation22 + $0x64] ss:$8 sps:$4 sm:$0xff]  }
0x1bc9   :  { %6769 = vmatprep.subr.bf16.mxu1 %v7758_v46 }
0x1bcf   :  { %v7342_v48 = vpop.eup %7341 }
0x1bd0   :  { %4097 = vrot.lane.b32.xlu0 %v7342_v48, %s7744_s4 }
0x1bd1   :  { %v7344_v32 = vpop.eup %7343 }
0x1bd2   :  { %v4091_v50 = vadd.f32 1.0, %v7344_v32 }
0x1bd4   :  { %7345 = vrcp.f32 %v4091_v50 }
0x1bde   :  { %v7346_v22 = vpop.eup %7345 }
0x1bdf   :  { %v4095_v18 = vmul.f32 %v7346_v22, %v8438_v2 }
0x1c42   :  { %v4098_v52 = vpop.permute.xlu0 %4097 }
0x1c43   :  { %v4100_v53 = vmul.f32 %v7346_v22, %v4098_v52 }
0x1c45   :  { %4102 = vrot.lane.b32.xlu0 %v4100_v53, %s7760_s3 }
0x1cb7   :  { %v4103_v56 = vpop.permute.xlu0 %4102 }
0x1cb8   :  { %v8651_v10 = vadd.f32 %v4103_v56, %v4095_v18  ;;  %v7135_v18 = vld [vmem:[%s9006_s15 + $0x10] sm:$0xff]   ;;  %v7136_v56 = vld [vmem:[%s9006_s15 + $0x18] sm:$0xff]  }
0x1cba   :  { %7347 = vtanh.f32 %v8651_v10 }
0x1cc4   :  { %v7348_v59 = vpop.eup %7347 }
0x1cc5   :  { %4108 = vrot.lane.b32.xlu0 %v7348_v59, %s7744_s4  ;;  %v7142_v59 = vld [vmem:[#allocation22 + $0x14] ss:$8 sps:$4 sm:$0xff]  }
0x1d37   :  { %v4109_v58 = vpop.permute.xlu0 %4108 }
0x1d38   :  { %v4111_v31 = vmul.f32 %v7346_v22, %v4109_v58  ;;  %v7134_v22 = vld [vmem:[%s9006_s15 + $0x8] sm:$0xff]  }
0x1d39   :  { %6770 = vmatpush3.bf16.msra.mxu1 %v7134_v22  ;;  %v7140_v58 = vld [vmem:[#allocation22 + $0x10] ss:$8 sps:$4 sm:$0xff]  }
0x1d3a   :  { %v4112_v23 = vpack.c.bf16 %v4111_v31, %v4111_v31  ;;  %6771 = vmatprep.subr.bf16.mxu1 %v7758_v46  ;;  %v7145_v31 = vld [vmem:[#allocation22 + $0x24] ss:$8 sps:$4 sm:$0xff]   ;;  %v7158_v22 = vld [vmem:[#allocation22 + $0x70] ss:$8 sps:$4 sm:$0xff]  }
0x1d3c   :  { %4118 = vrot.lane.b32.xlu0 %v4112_v23, %s7760_s3  ;;  %v7143_v23 = vld [vmem:[#allocation22 + $0x20] ss:$8 sps:$4 sm:$0xff]  }
0x1d3d   :  { %6772 = vmatpush3.bf16.msra.mxu1 %v7135_v18  ;;  %v7163_v18 = vld [vmem:[#allocation19 + $0x4] ss:$8 sps:$4 sm:$0xff]  }
0x1d3e   :  { %6773 = vmatprep.subr.bf16.mxu1 %v7758_v46 }
0x1d41   :  { %6774 = vmatpush3.bf16.msra.mxu1 %v7136_v56  ;;  %v7166_v56 = vld [vmem:[#allocation22 + $0x84] ss:$8 sps:$4 sm:$0xff]  }
0x1d42   :  { %4397 = vmatprep.subr.bf16.mxu1 %v7163_v18  ;;  %v7199_v18 = vld [vmem:[#allocation11 + $0x40] ss:$8 sps:$4 sm:$0xff]  }
0x1dae   :  { %v4119_v33 = vpop.permute.xlu0 %4118 }
0x1daf   :  { %6764 = vmatmul.mubr.msk.bf16.vlgmr.msra.gmra.mrb[32].mxu0 %vm320_vm0, %v4119_v33  ;;  %v7148_v33 = vld [vmem:[#allocation22 + $0x34] ss:$8 sps:$4 sm:$0xff]  }
0x1db0   :  { %4614 = vmatpush1.bf16.msra.mxu0 %v7137_v29  ;;  %v7169_v29 = vld [vmem:[#allocation19 + $0x14] ss:$8 sps:$4 sm:$0xff]  }
0x1db1   :  { %4615 = vmatprep.subr.bf16.mxu0 %v7142_v59  ;;  %v7167_v59 = vld [vmem:[#allocation19 + $0x10] ss:$8 sps:$4 sm:$0xff]  }
0x1db4   :  { %4616 = vmatpush1.bf16.msra.mxu0 %v7140_v58  ;;  %v7172_v58 = vld [vmem:[#allocation22 + $0x94] ss:$8 sps:$4 sm:$0xff]  }
0x1db5   :  { %4617 = vmatprep.subr.bf16.mxu0 %v7145_v31  ;;  %v7175_v31 = vld [vmem:[#allocation8 + $0x4] ss:$12 sps:$4 sm:$0xff]  }
0x1db8   :  { %4618 = vmatpush1.bf16.msra.mxu0 %v7143_v23  ;;  %v7170_v23 = vld [vmem:[#allocation22 + $0x90] ss:$8 sps:$4 sm:$0xff]  }
0x1db9   :  { %4619 = vmatprep.subr.bf16.mxu0 %v7148_v33  ;;  %v7176_v33 = vld [vmem:[#allocation22 + $0xa0] ss:$8 sps:$4 sm:$0xff]  }
0x1e82   :  { %v4169_v6 = vpop.f32.mrb[32].mxu0 }
0x1e83   :  { %v4182_v60 = vrot.slane %v4169_v6, %v8106_v55  ;;  %v6765_v7 = vpop.f32.mrb[33].mxu0 }
0x1e84   :  { %v4172_v8 = vpop.f32.mrb[34].mxu0  ;;  %v7149_v7 = vld [vmem:[#allocation22 + $0x40] ss:$8 sps:$4 sm:$0xff]  }
0x1e85   :  { %v4183_v62 = vcombine.high %v4182_v60, %v4182_v60  ;;  %v4190_v12 = vrot.slane %v4182_v60, %v8106_v55  ;;  %v6766_v13 = vpop.f32.mrb[35].mxu0  ;;  %v7146_v60 = vld [vmem:[#allocation22 + $0x30] ss:$8 sps:$4 sm:$0xff]   ;;  %v7154_v8 = vld [vmem:[#allocation22 + $0x54] ss:$8 sps:$4 sm:$0xff]  }
0x1e86   :  { %4620 = vmatpush1.bf16.msra.mxu0 %v7146_v60  ;;  %v7178_v60 = vld [vmem:[#allocation22 + $0xa4] ss:$8 sps:$4 sm:$0xff]  }
0x1e87   :  { %v4197_v14 = vrot.slane %v4183_v62, %v8106_v55  ;;  %v4201_v16 = vrot.slane %v4190_v12, %v8098_v40  ;;  %v7152_v62 = vld [vmem:[#allocation22 + $0x50] ss:$8 sps:$4 sm:$0xff]  }
0x1e89   :  { %v4208_v63 = vmul.f32 %v8495_v5, %v4201_v16  ;;  %v4205_v20 = vrot.slane %v4197_v14, %v8098_v40 }
0x1e8b   :  { %v4210_v24 = vsel %vm577_vm1, %v4208_v63, 0.0  ;;  %v4209_v25 = vmul.f32 %v8489_v3, %v4205_v20 }
0x1e8c   :  { %4211 = vadd.xlane.f32.xlu0 %v4210_v24 }
0x1e8d   :  { %v4213_v0 = vsel %vm577_vm1, %v4209_v25, 0.0 }
0x1e8e   :  { %4214 = vadd.xlane.f32.xlu1 %v4213_v0 }
0x1f19   :  { %v4212_v26 = vpop.xlane.xlu0 %4211 }
0x1f1a   :  { %v4221_v4 = vrot.slane %v4212_v26, %v8121_v21 }
0x1f1b   :  { %v4215_v28 = vpop.xlane.xlu1 %4214 }
0x1f1c   :  { %v4225_v34 = vrot.slane %v4215_v28, %v8121_v21 }
0x1f1e   :  { %v4226_v35 = vsel %vm691_vm2, %v4225_v34, %v4221_v4 }
0x1f1f   :  { %v4228_v36 = vsel %vm1239_vm5, -1e+30, %v4226_v35 }
0x1f20   :  { %v4229_v37 = vsel %vm694_vm3, %v4228_v36, -inf }
0x1f21   :  { %4230 = vmax.xlane.f32.xlu1 %v4229_v37 }
0x1fae   :  { %v4231_v38 = vpop.xlane.xlu1 %4230 }
0x1faf   :  { %v4232_v41 = vsub.f32 %v4228_v36, %v4231_v38 }
0x1fb1   :  { %v4233_v44 = vmul.f32 1.442695, %v4232_v41 }
0x1fb3   :  { %7349 = vpow2.f32 %v4233_v44 }
0x1fbd   :  { %v7350_v45 = vpop.eup %7349 }
0x1fbe   :  { %v4235_v47 = vsel %vm694_vm3, %v7350_v45, 0.0 }
0x1fbf   :  { %4236 = vadd.xlane.f32.xlu1 %v4235_v47 }
0x204c   :  { %v4237_v48 = vpop.xlane.xlu1 %4236 }
0x204d   :  { %7351 = vrcp.f32 %v4237_v48 }
0x2057   :  { %v7352_v32 = vpop.eup %7351 }
0x2058   :  { %v8678_v50 = vmul.f32 %v7352_v32, %v7350_v45  ;;  %v7155_v32 = vld [vmem:[#allocation22 + $0x60] ss:$8 sps:$4 sm:$0xff]  }
0x205a   :  { %v4250_v52 = vrot.slane %v8678_v50, %v8101_v42  ;;  %v4243_v53 = vrot.slane %v8678_v50, %v8098_v40 }
0x205c   :  { %4252 = vbcast.lane.b32.xlu0 %v4250_v52, 256  ;;  %4245 = vbcast.lane.b32.xlu1 %v4243_v53, 256  ;;  %v7160_v52 = vld [vmem:[#allocation22 + $0x74] ss:$8 sps:$4 sm:$0xff]  }
0x205d   :  { %v7161_v53 = vld [vmem:[#allocation19] ss:$8 sps:$4 sm:$0xff]  }
0x2060   :  { %4310 = vrot.lane.b32.xlu1 %v4169_v6, %s7744_s4  ;;  %v7151_v6 = vld [vmem:[#allocation22 + $0x44] ss:$8 sps:$4 sm:$0xff]  }
0x2061   :  { %4621 = vmatprep.subr.bf16.mxu0 %v7151_v6  ;;  %v7182_v6 = vld [vmem:[#allocation22 + $0xb0] ss:$8 sps:$4 sm:$0xff]  }
0x2062   :  { %4622 = vmatpush1.bf16.msra.mxu0 %v7149_v7  ;;  %v7184_v7 = vld [vmem:[#allocation22 + $0xb4] ss:$8 sps:$4 sm:$0xff]  }
0x2063   :  { %4623 = vmatprep.subr.bf16.mxu0 %v7154_v8  ;;  %v3262_v8 = vld [vmem:[#allocation5 + $0x48] sm:$0xff] }
0x2066   :  { %4624 = vmatpush1.bf16.msra.mxu0 %v7152_v62  ;;  %v3264_v62 = vld [vmem:[#allocation5 + $0x58] sm:$0xff] }
0x2067   :  { %4625 = vmatprep.subr.bf16.mxu0 %v7157_v49  ;;  %v7195_v49 = vld [vmem:[#allocation11 + $0x24] ss:$8 sps:$4 sm:$0xff]  }
0x206a   :  { %4626 = vmatpush1.bf16.msra.mxu0 %v7155_v32  ;;  %v7193_v32 = vld [vmem:[#allocation11 + $0x20] ss:$8 sps:$4 sm:$0xff]  }
0x206b   :  { %4627 = vmatprep.subr.bf16.mxu0 %v7160_v52  ;;  %v7196_v52 = vld [vmem:[#allocation11 + $0x30] ss:$8 sps:$4 sm:$0xff]  }
0x206e   :  { %4628 = vmatpush1.bf16.msra.mxu0 %v7158_v22  ;;  %v7198_v22 = vld [vmem:[#allocation11 + $0x34] ss:$8 sps:$4 sm:$0xff]  }
0x206f   :  { %4629 = vmatprep.subr.bf16.mxu0 %v7166_v56  ;;  %v7204_v56 = vld [vmem:[#allocation11 + $0x54] ss:$8 sps:$4 sm:$0xff]  }
0x2072   :  { %4630 = vmatpush1.bf16.msra.mxu0 %v7164_v57  ;;  %v7207_v57 = vld [vmem:[#allocation11 + $0x64] ss:$8 sps:$4 sm:$0xff]  }
0x2073   :  { %4631 = vmatprep.subr.bf16.mxu0 %v7172_v58  ;;  %v7210_v58 = vld [vmem:[#allocation11 + $0x74] ss:$8 sps:$4 sm:$0xff]  }
0x2076   :  { %4632 = vmatpush1.bf16.msra.mxu0 %v7170_v23  ;;  %v7213_v23 = vld [vmem:[#allocation11 + $0x84] ss:$8 sps:$4 sm:$0xff]  }
0x2077   :  { %4633 = vmatprep.subr.bf16.mxu0 %v7178_v60  ;;  %v7216_v60 = vld [vmem:[#allocation11 + $0x94] ss:$8 sps:$4 sm:$0xff]  }
0x207a   :  { %4634 = vmatpush1.bf16.msra.mxu0 %v7176_v33  ;;  %v7211_v33 = vld [vmem:[#allocation11 + $0x80] ss:$8 sps:$4 sm:$0xff]  }
0x207b   :  { %4635 = vmatprep.subr.bf16.mxu0 %v7184_v7  ;;  %v7219_v7 = vld [vmem:[#allocation11 + $0xa4] ss:$8 sps:$4 sm:$0xff]  }
0x207e   :  { %4636 = vmatpush1.bf16.msra.mxu0 %v7182_v6  ;;  %v7214_v6 = vld [vmem:[#allocation11 + $0x90] ss:$8 sps:$4 sm:$0xff]  }
0x207f   :  { %5411 = vmatprep.subr.bf16.mxu0 %v7756_v1 }
0x20ce   :  { %v4253_v12 = vpop.permute.xlu0 %4252  ;;  %v4246_v13 = vpop.permute.xlu1 %4245 }
0x20cf   :  { %v4255_v14 = vmul.f32 %v8489_v3, %v4253_v12  ;;  %v4254_v16 = vmul.f32 %v8495_v5, %v4246_v13  ;;  %v4453_v12 = vpack.c.bf16 %v3264_v62, %v3262_v8  ;;  %v3261_v13 = vld [vmem:[#allocation5 + $0x40] sm:$0xff]  ;;  %v7217_v8 = vld [vmem:[#allocation11 + $0xa0] ss:$8 sps:$4 sm:$0xff]  }
0x20d0   :  { %v7222_v62 = vld [vmem:[#allocation11 + $0xb4] ss:$8 sps:$4 sm:$0xff]  }
0x20d1   :  { %v4263_v63 = vsel %vm577_vm1, %v4255_v14, 0.0  ;;  %v4256_v20 = vsel %vm577_vm1, %v4254_v16, 0.0  ;;  %v3263_v14 = vld [vmem:[#allocation5 + $0x50] sm:$0xff]  ;;  %6546 = vmatprep.mubr.msk.bf16.mxu0 %vm577_vm1, %v4453_v12  ;;  %v7220_v12 = vld [vmem:[#allocation11 + $0xb0] ss:$8 sps:$4 sm:$0xff]  }
0x20d2   :  { %v4264_v24 = vrot.slane %v4263_v63, 4  ;;  %v4257_v25 = vrot.slane %v4256_v20, 4  ;;  %v4452_v16 = vpack.c.bf16 %v3263_v14, %v3261_v13  ;;  %v8724_v13 = vld [vmem:[#allocation7 + $0x60] sm:$0xff]  ;;  %v8726_v14 = vld [vmem:[#allocation7 + $0x70] sm:$0xff] }
0x20d4   :  { %v4265_v0 = vadd.f32 %v4264_v24, %v4263_v63  ;;  %v4258_v26 = vadd.f32 %v4257_v25, %v4256_v20  ;;  %4646 = vmatmul.mubr.bf16.vlgmr.msra.gmra.mrb[36].mxu0 %v4452_v16  ;;  %v4311_v63 = vpop.permute.xlu1 %4310  ;;  %v4892_v16 = vpack.c.bf16 %v8726_v14, %v8724_v13 }
0x20d6   :  { %v4266_v28 = vrot.slane %v4265_v0, 2  ;;  %v4259_v4 = vrot.slane %v4258_v26, 2 }
0x20d8   :  { %v4267_v34 = vadd.f32 %v4266_v28, %v4265_v0  ;;  %v4260_v35 = vadd.f32 %v4259_v4, %v4258_v26  ;;  %v7173_v4 = vld [vmem:[#allocation8] ss:$12 sps:$4 sm:$0xff]  }
0x20da   :  { %v4268_v36 = vrot.slane %v4267_v34, 1  ;;  %v4261_v37 = vrot.slane %v4260_v35, 1 }
0x20dc   :  { %v4269_v38 = vadd.f32 %v4268_v36, %v4267_v34  ;;  %v4262_v41 = vadd.f32 %v4261_v37, %v4260_v35  ;;  %v7181_v35 = vld [vmem:[#allocation8 + $0x1c] ss:$12 sps:$4 sm:$0xff]   ;;  %v7179_v36 = vld [vmem:[#allocation8 + $0x18] ss:$12 sps:$4 sm:$0xff]  }
0x20dd   :  { %v7185_v37 = vld [vmem:[#allocation8 + $0x8] ss:$12 sps:$4 sm:$0xff]  }
0x20de   :  { %v4271_v44 = vpack.c.bf16 %v4269_v38, %v4269_v38  ;;  %v4270_v3 = vpack.c.bf16 %v4262_v41, %v4262_v41  ;;  %v7186_v38 = vld [vmem:[#allocation8 + $0x20] ss:$12 sps:$4 sm:$0xff]  }
0x20df   :  { %v7189_v41 = vld [vmem:[#allocation11 + $0x4] ss:$8 sps:$4 sm:$0xff]  }
0x20e0   :  { %v4283_v45 = vunpack.c.l.b16 %v4271_v44  ;;  %v4282_v5 = vunpack.c.l.b16 %v4270_v3  ;;  %v8716_v44 = vld [vmem:[#allocation7 + $0x68] sm:$0xff]  ;;  %v8718_v3 = vld [vmem:[#allocation7 + $0x78] sm:$0xff] }
0x20e2   :  { %v4284_v47 = vsel %vm691_vm2, %v4283_v45, %v4282_v5  ;;  %v7187_v45 = vld [vmem:[#allocation11] ss:$8 sps:$4 sm:$0xff]   ;;  %v4893_v5 = vpack.c.bf16 %v8718_v3, %v8716_v44 }
0x20e3   :  { %v4285_v48 = vpack.c.b16 %v4284_v47, %v4284_v47  ;;  %v7192_v47 = vld [vmem:[#allocation11 + $0x14] ss:$8 sps:$4 sm:$0xff]  }
0x20e5   :  { %6776 = vmatmul.mubr.msk.bf16.vlgmr.msra.gmra.mrb[60].mxu1 %vm577_vm1, %v4285_v48  ;;  %v7190_v48 = vld [vmem:[#allocation11 + $0x10] ss:$8 sps:$4 sm:$0xff]  }
0x20e6   :  { %4429 = vmatprep.mubr.bf16.mxu1 %v7756_v1  ;;  %4398 = vmatpush1.bf16.msra.mxu1 %v7161_v53  ;;  %v7201_v53 = vld [vmem:[#allocation11 + $0x44] ss:$8 sps:$4 sm:$0xff]  }
0x20e7   :  { %4399 = vmatprep.subr.bf16.mxu1 %v7169_v29  ;;  %v7202_v29 = vld [vmem:[#allocation11 + $0x50] ss:$8 sps:$4 sm:$0xff]  }
0x20ea   :  { %4400 = vmatpush1.bf16.msra.mxu1 %v7167_v59  ;;  %v7205_v59 = vld [vmem:[#allocation11 + $0x60] ss:$8 sps:$4 sm:$0xff]  }
0x20eb   :  { %4797 = vmatprep.subr.bf16.mxu1 %v7175_v31  ;;  %v7208_v31 = vld [vmem:[#allocation11 + $0x70] ss:$8 sps:$4 sm:$0xff]  }
0x21b8   :  { %v4350_v20 = vpop.f32.mrb[60].mxu1 }
0x21b9   :  { %v4351_v24 = vadd.f32 %v4350_v20, %v4311_v63  ;;  %v6777_v25 = vpop.f32.mrb[61].mxu1  ;;  %v4478_v63 = vld [vmem:[#allocation23] sm:$0x3]  ;;  %v4647_v20 = vpop.f32.mrb[36].mxu0 }
0x21ba   :  { %v4353_v0 = vpop.f32.mrb[62].mxu1  ;;  %v4483_v25 = vrot.slane %v4478_v63, %v8098_v40 }
0x21bb   :  { %7353 = vtanh.f32 %v4351_v24  ;;  %v6778_v26 = vpop.f32.mrb[63].mxu1  ;;  %v4649_v24 = vpop.f32.mrb[37].mxu0  ;;  %v4487_v0 = vrot.slane %v4478_v63, %v8101_v42 }
0x21bc   :  { %v4651_v26 = vpop.f32.mrb[38].mxu0 }
0x21c5   :  { %v8705_v28 = vpop.eup %7353 }
0x21c6   :  { %v4357_v34 = vpack.c.bf16 %v8705_v28, %v8705_v28 }
0x21c8   :  { %6521 = vmatmul.mubr.msk.bf16.vlgmr.msra.gmra.mrb[64].mxu1 %vm320_vm0, %v4357_v34 }
0x21c9   :  { %4798 = vmatpush1.bf16.msra.mxu1 %v7173_v4  ;;  %4829 = vmatprep.mubr.bf16.mxu1 %v7756_v1  ;;  %v4653_v4 = vpop.f32.mrb[39].mxu0 }
0x21ca   :  { %4799 = vmatprep.subr.bf16.mxu1 %v7181_v35  ;;  %v4654_v35 = vadd.f32 %v4653_v4, %v4487_v0 }
0x21cd   :  { %4800 = vmatpush1.bf16.msra.mxu1 %v7179_v36  ;;  %v4362_v36 = vld [vmem:[#allocation20] sm:$0x3] }
0x21ce   :  { %6779 = vmatprep.subr.bf16.mxu1 %v7758_v46 }
0x21d0   :  { %6555 = vmatmul.mubr.msk.bf16.vlgmr.msra.gmra.mrb[68].mxu1 %vm320_vm0, %v4357_v34 }
0x21d1   :  { %6780 = vmatpush3.bf16.msra.mxu1 %v7185_v37  ;;  %6783 = vmatprep.mubr.msk.bf16.mxu1 %vm7759_vm4, %v7758_v46  ;;  %v4438_v37 = vld [vmem:[#allocation25] sm:$0x3] }
0x21d2   :  { %6781 = vmatprep.subr.bf16.mxu1 %v7758_v46 }
0x21d5   :  { %6782 = vmatpush3.bf16.msra.mxu1 %v7186_v38  ;;  %v4367_v38 = vrot.slane %v4362_v36, %v8098_v40 }
0x21d6   :  { %5053 = vmatprep.subr.bf16.mxu1 %v7189_v41  ;;  %v4371_v41 = vrot.slane %v4362_v36, %v8101_v42 }
0x21d8   :  { %6784 = vmatmul.mubr.msk.bf16.vlgmr.msra.gmra.mrb[72].mxu1 %vm320_vm0, %v4357_v34  ;;  %v4652_v34 = vadd.f32 %v4651_v26, %v4483_v25 }
0x21d9   :  { %5054 = vmatpush1.bf16.msra.mxu1 %v7187_v45  ;;  %6581 = vmatprep.mubr.msk.bf16.mxu1 %vm577_vm1, %v4893_v5  ;;  %v4443_v45 = vrot.slane %v4438_v37, %v8098_v40 }
0x21da   :  { %5055 = vmatprep.subr.bf16.mxu1 %v7192_v47  ;;  %v4447_v47 = vrot.slane %v4438_v37, %v8101_v42 }
0x21dd   :  { %5056 = vmatpush1.bf16.msra.mxu1 %v7190_v48 }
0x21de   :  { %5057 = vmatprep.subr.bf16.mxu1 %v7195_v49 }
0x21e1   :  { %5058 = vmatpush1.bf16.msra.mxu1 %v7193_v32 }
0x21e2   :  { %5059 = vmatprep.subr.bf16.mxu1 %v7198_v22 }
0x21e5   :  { %5060 = vmatpush1.bf16.msra.mxu1 %v7196_v52  ;;  %v4878_v52 = vld [vmem:[#allocation10] sm:$0x3] }
0x21e6   :  { %5061 = vmatprep.subr.bf16.mxu1 %v7201_v53 }
0x21e9   :  { %5062 = vmatpush1.bf16.msra.mxu1 %v7199_v18 }
0x21ea   :  { %5063 = vmatprep.subr.bf16.mxu1 %v7204_v56 }
0x21ed   :  { %5064 = vmatpush1.bf16.msra.mxu1 %v7202_v29  ;;  %v4883_v29 = vrot.slane %v4878_v52, %v8098_v40 }
0x21ee   :  { %5065 = vmatprep.subr.bf16.mxu1 %v7207_v57 }
0x21f1   :  { %5066 = vmatpush1.bf16.msra.mxu1 %v7205_v59  ;;  %v4887_v59 = vrot.slane %v4878_v52, %v8101_v42 }
0x21f2   :  { %5067 = vmatprep.subr.bf16.mxu1 %v7210_v58 }
0x21f5   :  { %5068 = vmatpush1.bf16.msra.mxu1 %v7208_v31 }
0x21f6   :  { %5069 = vmatprep.subr.bf16.mxu1 %v7213_v23 }
0x21f9   :  { %5070 = vmatpush1.bf16.msra.mxu1 %v7211_v33 }
0x21fa   :  { %5071 = vmatprep.subr.bf16.mxu1 %v7216_v60  ;;  %v4648_v60 = vadd.f32 %v4647_v20, %v4483_v25 }
0x21fd   :  { %5072 = vmatpush1.bf16.msra.mxu1 %v7214_v6 }
0x21fe   :  { %5073 = vmatprep.subr.bf16.mxu1 %v7219_v7 }
0x2201   :  { %5074 = vmatpush1.bf16.msra.mxu1 %v7217_v8 }
0x2202   :  { %5075 = vmatprep.subr.bf16.mxu1 %v7222_v62  ;;  %v4650_v62 = vadd.f32 %v4649_v24, %v4487_v0 }
0x2205   :  { %5076 = vmatpush1.bf16.msra.mxu1 %v7220_v12 }
0x2206   :  { %5526 = vmatprep.subr.bf16.mxu1 %v7756_v1 }
0x2208   :  { %5086 = vmatmul.mubr.bf16.vlgmr.msra.gmra.mrb[76].mxu1 %v4892_v16 }
0x229b   :  { %v4431_v5 = vpop.f32.mrb[64].mxu1 }
0x229c   :  { %v4432_v48 = vadd.f32 %v4431_v5, %v4367_v38  ;;  %v4433_v49 = vpop.f32.mrb[65].mxu1 }
0x229d   :  { %v4434_v32 = vadd.f32 %v4433_v49, %v4371_v41  ;;  %v4435_v22 = vpop.f32.mrb[66].mxu1 }
0x229e   :  { %v4450_v53 = vmul.f32 %v4443_v45, %v4432_v48  ;;  %v4436_v18 = vpop.f32.mrb[67].mxu1  ;;  %v4918_v22 = vld [vmem:[#allocation13] sm:$0x3] }
0x229f   :  { %v4451_v56 = vmul.f32 %v4447_v47, %v4434_v32 }
0x22a1   :  { %v4658_v57 = vcombine.low %v4450_v53, %v4451_v56  ;;  %v4923_v53 = vrot.slane %v4918_v22, %v8098_v40 }
0x22a3   :  { %v4665_v58 = vrot.slane %v4658_v57, %v8106_v55  ;;  %v4831_v31 = vpop.f32.mrb[68].mxu1 }
0x22a4   :  { %v4890_v23 = vadd.f32 %v4883_v29, %v4831_v31  ;;  %v4833_v33 = vpop.f32.mrb[69].mxu1 }
0x22a5   :  { %v4891_v6 = vadd.f32 %v4887_v59, %v4833_v33  ;;  %v4673_v7 = vrot.slane %v4665_v58, %v8106_v55  ;;  %v4835_v8 = vpop.f32.mrb[70].mxu1  ;;  %v4666_v12 = vcombine.high %v4665_v58, %v4665_v58 }
0x22a6   :  { %v4836_v16 = vpop.f32.mrb[71].mxu1 }
0x22a7   :  { %v5098_v63 = vcombine.low %v4890_v23, %v4891_v6  ;;  %v4684_v26 = vrot.slane %v4673_v7, %v8098_v40  ;;  %v4688_v4 = vrot.slane %v4673_v7, %v8101_v42  ;;  %v4680_v36 = vrot.slane %v4666_v12, %v8106_v55 }
0x22a9   :  { %v4701_v37 = vmul.f32 %v4684_v26, %v4648_v60  ;;  %v4702_v38 = vmul.f32 %v4688_v4, %v4650_v62  ;;  %v4692_v41 = vrot.slane %v4680_v36, %v8098_v40  ;;  %v4696_v20 = vrot.slane %v4680_v36, %v8101_v42 }
0x22aa   :  { %v5105_v32 = vrot.slane %v5098_v63, %v8106_v55 }
0x22ab   :  { %v4703_v25 = vmul.f32 %v4692_v41, %v4652_v34  ;;  %v8746_v45 = vpop.f32.mrb[72].mxu1  ;;  %v8748_v5 = vadd.f32 %v4702_v38, %v4701_v37  ;;  %v4704_v24 = vmul.f32 %v4696_v20, %v4654_v35  ;;  %v4927_v34 = vrot.slane %v4918_v22, %v8101_v42 }
0x22ac   :  { %v6785_v0 = vpop.f32.mrb[73].mxu1  ;;  %v5106_v52 = vcombine.high %v5105_v32, %v5105_v32  ;;  %v5113_v18 = vrot.slane %v5105_v32, %v8106_v55 }
0x22ad   :  { %v4875_v47 = vpop.f32.mrb[74].mxu1  ;;  %v8750_v49 = vadd.f32 %v4704_v24, %v4703_v25 }
0x22ae   :  { %v6786_v48 = vpop.f32.mrb[75].mxu1  ;;  %v5120_v56 = vrot.slane %v5106_v52, %v8106_v55  ;;  %v5124_v35 = vrot.slane %v5113_v18, %v8098_v40  ;;  %v5128_v31 = vrot.slane %v5113_v18, %v8101_v42 }
0x22b0   :  { %v5132_v6 = vrot.slane %v5120_v56, %v8098_v40  ;;  %v5136_v12 = vrot.slane %v5120_v56, %v8101_v42 }
0x22db   :  { %v5087_v29 = vpop.f32.mrb[76].mxu1 }
0x22dc   :  { %v5088_v57 = vadd.f32 %v5087_v29, %v4923_v53  ;;  %v5089_v59 = vpop.f32.mrb[77].mxu1 }
0x22dd   :  { %v5090_v58 = vadd.f32 %v5089_v59, %v4927_v34  ;;  %v5091_v23 = vpop.f32.mrb[78].mxu1 }
0x22de   :  { %v5141_v33 = vmul.f32 %v5124_v35, %v5088_v57  ;;  %v5092_v60 = vadd.f32 %v5091_v23, %v4923_v53  ;;  %v5093_v7 = vpop.f32.mrb[79].mxu1  ;;  %v7225_v23 = vld [vmem:[%s9002_s11 + $0x8] sm:$0xff]  }
0x22df   :  { %v5142_v8 = vmul.f32 %v5128_v31, %v5090_v58  ;;  %v5094_v62 = vadd.f32 %v5093_v7, %v4927_v34  ;;  %v7223_v58 = vld [vmem:[%s9002_s11] sm:$0xff]   ;;  %v7229_v7 = vld [vmem:[%s9002_s11 + $0x18] sm:$0xff]  }
0x22e0   :  { %v5143_v16 = vmul.f32 %v5132_v6, %v5092_v60  ;;  %v7224_v31 = vld [vmem:[#allocation14] sm:$0xff]   ;;  %5527 = vmatpush1.bf16.msra.mxu1 %v7223_v58  ;;  %v7227_v60 = vld [vmem:[%s9002_s11 + $0x10] sm:$0xff]  }
0x22e1   :  { %v5144_v63 = vmul.f32 %v5136_v12, %v5094_v62  ;;  %v5145_v26 = vadd.f32 %v5142_v8, %v5141_v33  ;;  %5412 = vmatpush1.bf16.msra.mxu0 %v7224_v31  ;;  %v7226_v33 = vld [vmem:[#allocation14 + $0x8] sm:$0xff]   ;;  %5528 = vmatprep.subr.bf16.mxu1 %v7756_v1  ;;  %v7228_v6 = vld [vmem:[#allocation14 + $0x10] sm:$0xff]   ;;  %v7230_v8 = vld [vmem:[#allocation14 + $0x18] sm:$0xff]  }
0x22e2   :  { %5413 = vmatprep.subr.bf16.mxu0 %v7756_v1  ;;  %v7231_v62 = vld [vmem:[%s9002_s11 + $0x20] sm:$0xff]  }
0x22e3   :  { %5146 = vadd.xlane.f32.xlu1 %v5145_v26  ;;  %v5148_v4 = vadd.f32 %v5144_v63, %v5143_v16  ;;  %v7232_v12 = vld [vmem:[#allocation14 + $0x20] sm:$0xff]  }
0x22e4   :  { %5529 = vmatpush1.bf16.msra.mxu1 %v7225_v23  ;;  %v7233_v16 = vld [vmem:[%s9002_s11 + $0x28] sm:$0xff]  }
0x22e5   :  { %5149 = vadd.xlane.f32.xlu0 %v5148_v4  ;;  %5414 = vmatpush1.bf16.msra.mxu0 %v7226_v33 }
0x22e6   :  { %5530 = vmatprep.subr.bf16.mxu1 %v7756_v1  ;;  %5415 = vmatprep.subr.bf16.mxu0 %v7756_v1 }
0x22e8   :  { %5531 = vmatpush1.bf16.msra.mxu1 %v7227_v60 }
0x22e9   :  { %5416 = vmatpush1.bf16.msra.mxu0 %v7228_v6  ;;  %5532 = vmatprep.subr.bf16.mxu1 %v7756_v1 }
0x22ea   :  { %5417 = vmatprep.subr.bf16.mxu0 %v7756_v1 }
0x22ec   :  { %5533 = vmatpush1.bf16.msra.mxu1 %v7229_v7 }
0x22ed   :  { %5418 = vmatpush1.bf16.msra.mxu0 %v7230_v8  ;;  %5534 = vmatprep.subr.bf16.mxu1 %v7756_v1 }
0x22ee   :  { %5419 = vmatprep.subr.bf16.mxu0 %v7756_v1 }
0x22f0   :  { %5535 = vmatpush1.bf16.msra.mxu1 %v7231_v62 }
0x22f1   :  { %5420 = vmatpush1.bf16.msra.mxu0 %v7232_v12  ;;  %5536 = vmatprep.subr.bf16.mxu1 %v7756_v1 }
0x22f2   :  { %5421 = vmatprep.subr.bf16.mxu0 %v7756_v1 }
0x22f4   :  { %5537 = vmatpush1.bf16.msra.mxu1 %v7233_v16 }
0x22f5   :  { %5538 = vmatprep.subr.bf16.mxu1 %v7756_v1 }
0x2370   :  { %v5147_v36 = vpop.xlane.xlu1 %5146 }
0x2371   :  { %v5156_v38 = vrot.slane %v5147_v36, %v8121_v21 }
0x2372   :  { %v5150_v37 = vpop.xlane.xlu0 %5149 }
0x2373   :  { %v5160_v41 = vrot.slane %v5150_v37, %v8121_v21 }
0x2375   :  { %v5161_v20 = vsel %vm691_vm2, %v5160_v41, %v5156_v38  ;;  %v7234_v38 = vld [vmem:[#allocation14 + $0x28] sm:$0xff]  }
0x2376   :  { %v5163_v25 = vsel %vm694_vm3, %v5161_v20, -inf  ;;  %v7235_v41 = vld [vmem:[%s9002_s11 + $0x30] sm:$0xff]   ;;  %5422 = vmatpush1.bf16.msra.mxu0 %v7234_v38 }
0x2377   :  { %5164 = vmax.xlane.f32.xlu1 %v5163_v25  ;;  %5539 = vmatpush1.bf16.msra.mxu1 %v7235_v41  ;;  %v7236_v25 = vld [vmem:[#allocation14 + $0x30] sm:$0xff]  }
0x2378   :  { %5423 = vmatprep.subr.bf16.mxu0 %v7756_v1  ;;  %5540 = vmatprep.subr.bf16.mxu1 %v7756_v1 }
0x237a   :  { %5424 = vmatpush1.bf16.msra.mxu0 %v7236_v25 }
0x237b   :  { %5425 = vmatprep.subr.bf16.mxu0 %v7756_v1 }
0x2404   :  { %v5165_v24 = vpop.xlane.xlu1 %5164 }
0x2405   :  { %v5170_v0 = vrot.slane %v5165_v24, %v8098_v40  ;;  %v5174_v47 = vrot.slane %v5165_v24, %v8101_v42  ;;  %v7237_v24 = vld [vmem:[%s9002_s11 + $0x38] sm:$0xff]  }
0x2406   :  { %5541 = vmatpush1.bf16.msra.mxu1 %v7237_v24 }
0x2407   :  { %v5177_v48 = vsub.f32 %v5147_v36, %v5170_v0  ;;  %v5178_v32 = vsub.f32 %v5150_v37, %v5174_v47  ;;  %v7238_v0 = vld [vmem:[#allocation14 + $0x38] sm:$0xff]   ;;  %5542 = vmatprep.subr.bf16.mxu1 %v7756_v1 }
0x2408   :  { %v7239_v47 = vld [vmem:[%s9002_s11 + $0x40] sm:$0xff]   ;;  %5426 = vmatpush1.bf16.msra.mxu0 %v7238_v0 }
0x2409   :  { %v5179_v22 = vmul.f32 1.442695, %v5177_v48  ;;  %v5181_v52 = vmul.f32 1.442695, %v5178_v32  ;;  %5427 = vmatprep.subr.bf16.mxu0 %v7756_v1  ;;  %v7240_v48 = vld [vmem:[#allocation14 + $0x40] sm:$0xff]  }
0x240a   :  { %5543 = vmatpush1.bf16.msra.mxu1 %v7239_v47  ;;  %v7241_v32 = vld [vmem:[%s9002_s11 + $0x48] sm:$0xff]  }
0x240b   :  { %7355 = vpow2.f32 %v5179_v22  ;;  %5544 = vmatprep.subr.bf16.mxu1 %v7756_v1  ;;  %v7242_v22 = vld [vmem:[#allocation14 + $0x48] sm:$0xff]  }
0x240c   :  { %7357 = vpow2.f32 %v5181_v52  ;;  %5428 = vmatpush1.bf16.msra.mxu0 %v7240_v48  ;;  %v7243_v52 = vld [vmem:[%s9002_s11 + $0x50] sm:$0xff]  }
0x240d   :  { %5429 = vmatprep.subr.bf16.mxu0 %v7756_v1 }
0x240e   :  { %5545 = vmatpush1.bf16.msra.mxu1 %v7241_v32 }
0x240f   :  { %5546 = vmatprep.subr.bf16.mxu1 %v7756_v1 }
0x2410   :  { %5430 = vmatpush1.bf16.msra.mxu0 %v7242_v22 }
0x2411   :  { %5431 = vmatprep.subr.bf16.mxu0 %v7756_v1 }
0x2412   :  { %5547 = vmatpush1.bf16.msra.mxu1 %v7243_v52 }
0x2413   :  { %5548 = vmatprep.subr.bf16.mxu1 %v7756_v1 }
0x2415   :  { %v7356_v53 = vpop.eup %7355 }
0x2416   :  { %v7358_v18 = vpop.eup %7357  ;;  %5186 = vperm.xlu1 %6835, %v7356_v53  }
0x2417   :  { %5189 = vperm.xlu0 %6836, %v7358_v18  }
0x2495   :  { %v5187_v34 = vpop.permute.xlu1 %5186 }
0x2496   :  { %v5190_v56 = vpop.permute.xlu0 %5189  ;;  %v5194_v29 = vrot.slane %v5187_v34, %v8121_v21  ;;  %v7245_v34 = vld [vmem:[%s9002_s11 + $0x58] sm:$0xff]  }
0x2497   :  { %v5198_v57 = vrot.slane %v5190_v56, %v8121_v21  ;;  %5549 = vmatpush1.bf16.msra.mxu1 %v7245_v34 }
0x2499   :  { %v5199_v35 = vsel %vm691_vm2, %v5198_v57, %v5194_v29  ;;  %v7246_v57 = vld [vmem:[#allocation14 + $0x58] sm:$0xff]  }
0x249a   :  { %v5201_v59 = vsel %vm694_vm3, %v5199_v35, 0.0 }
0x249b   :  { %5202 = vadd.xlane.f32.xlu1 %v5201_v59 }
0x2528   :  { %v5203_v63 = vpop.xlane.xlu1 %5202 }
0x2529   :  { %7359 = vrcp.f32 %v5203_v63 }
0x2533   :  { %v7360_v26 = vpop.eup %7359 }
0x2534   :  { %v5209_v4 = vrot.slane %v7360_v26, %v8098_v40  ;;  %v5213_v37 = vrot.slane %v7360_v26, %v8101_v42 }
0x2536   :  { %v5216_v36 = vmul.f32 %v7356_v53, %v5209_v4  ;;  %v5217_v20 = vmul.f32 %v7358_v18, %v5213_v37  ;;  %v7244_v53 = vld [vmem:[#allocation14 + $0x50] sm:$0xff]   ;;  %v6582_v18 = vld.sshfl [vmem:[#allocation3 + $0xc] sm:$0x33 pattern:$0x76325410] }
0x2537   :  { %v5266_v56 = vcombine.high %v6582_v18, %v6582_v18  ;;  %5432 = vmatpush1.bf16.msra.mxu0 %v7244_v53  ;;  %v5269_v35 = vpack.c.bf16 %v6582_v18, %v6582_v18 }
0x2538   :  { %5220 = vperm.xlu0 %6836, %v5216_v36   ;;  %5433 = vmatprep.subr.bf16.mxu0 %v7756_v1 }
0x2539   :  { %v5270_v29 = vpack.c.bf16 %v5266_v56, %v5266_v56 }
0x253b   :  { %6608 = vmatprep.mubr.msk.bf16.mxu1 %vm577_vm1, %v5270_v29  ;;  %5434 = vmatpush1.bf16.msra.mxu0 %v7246_v57 }
0x253c   :  { %5225 = vperm.xlu0 %6836, %v5217_v20   ;;  %5559 = vmatmul.mubr.bf16.vlgmr.msra.gmra.mrb[80].mxu1 %v5269_v35 }
0x253d   :  { %6787 = vmatprep.subr.bf16.mxu0 %v7758_v46  ;;  %5916 = vmatprep.mubr.bf16.mxu1 %v7756_v1 }
0x25b7   :  { %v5221_v59 = vpop.permute.xlu0 %5220 }
0x25b8   :  { %v5228_v58 = vmul.f32 %v5221_v59, %v8724_v13  ;;  %v5229_v31 = vmul.f32 %v5221_v59, %v8716_v44 }
0x25ba   :  { %v5232_v23 = vrot.slane %v5228_v58, 4  ;;  %v5238_v33 = vsel %vm577_vm1, %v5229_v31, 0.0 }
0x25bb   :  { %v5239_v60 = vrot.slane %v5238_v33, 4  ;;  %v5226_v6 = vpop.permute.xlu0 %5225 }
0x25bc   :  { %v5233_v7 = vadd.f32 %v5232_v23, %v5228_v58  ;;  %v5230_v8 = vmul.f32 %v5226_v6, %v8726_v14  ;;  %v5231_v62 = vmul.f32 %v5226_v6, %v8718_v3 }
0x25bd   :  { %v5240_v12 = vadd.f32 %v5239_v60, %v5238_v33 }
0x25be   :  { %v5234_v16 = vrot.slane %v5233_v7, 2  ;;  %v5245_v63 = vrot.slane %v5230_v8, 4  ;;  %v5251_v1 = vsel %vm577_vm1, %v5231_v62, 0.0 }
0x25bf   :  { %v5241_v26 = vrot.slane %v5240_v12, 2  ;;  %v5252_v4 = vrot.slane %v5251_v1, 4 }
0x25c0   :  { %v5235_v13 = vadd.f32 %v5234_v16, %v5233_v7  ;;  %v5246_v36 = vadd.f32 %v5245_v63, %v5230_v8  ;;  %v6609_v16 = vld [vmem:[#allocation16] ss:$0 sm:$0xff] }
0x25c1   :  { %v5242_v44 = vadd.f32 %v5241_v26, %v5240_v12  ;;  %v5253_v37 = vadd.f32 %v5252_v4, %v5251_v1 }
0x25c2   :  { %v5236_v38 = vrot.slane %v5235_v13, 1  ;;  %v5247_v41 = vrot.slane %v5246_v36, 2 }
0x25c3   :  { %v5243_v20 = vrot.slane %v5242_v44, 1  ;;  %v5254_v25 = vrot.slane %v5253_v37, 2 }
0x25c4   :  { %v5237_v24 = vadd.f32 %v5236_v38, %v5235_v13  ;;  %v5248_v0 = vadd.f32 %v5247_v41, %v5246_v36 }
0x25c5   :  { %v5244_v14 = vadd.f32 %v5243_v20, %v5242_v44  ;;  %v5255_v47 = vadd.f32 %v5254_v25, %v5253_v37 }
0x25c6   :  { %v5249_v3 = vrot.slane %v5248_v0, 1  ;;  %v5295_v32 = vpack.c.bf16 %v5237_v24, %v5237_v24 }
0x25c7   :  { %v5256_v48 = vrot.slane %v5255_v47, 1  ;;  %v5296_v52 = vpack.c.bf16 %v5244_v14, %v5244_v14  ;;  %v7248_v14 = vld [vmem:[#allocation17 + $0x8] sm:$0xff]  }
0x25c8   :  { %v5250_v22 = vadd.f32 %v5249_v3, %v5248_v0  ;;  %v5327_v56 = vunpack.c.l.b16 %v5295_v32  ;;  %v7247_v0 = vld [vmem:[#allocation17] sm:$0xff]  }
0x25c9   :  { %v5257_v53 = vadd.f32 %v5256_v48, %v5255_v47  ;;  %v5328_v57 = vunpack.c.l.b16 %v5296_v52 }
0x25ca   :  { %v5297_v18 = vpack.c.bf16 %v5250_v22, %v5250_v22 }
0x25cb   :  { %v5298_v34 = vpack.c.bf16 %v5257_v53, %v5257_v53 }
0x25cc   :  { %v5329_v29 = vunpack.c.l.b16 %v5297_v18 }
0x25cd   :  { %v5330_v35 = vunpack.c.l.b16 %v5298_v34 }
0x25ce   :  { %v5331_v59 = vsel %vm691_vm2, %v5329_v29, %v5327_v56 }
0x25cf   :  { %v5332_v58 = vsel %vm691_vm2, %v5330_v35, %v5328_v57  ;;  %v5333_v23 = vpack.c.b16 %v5331_v59, %v5331_v59 }
0x25d0   :  { %v5334_v31 = vpack.c.b16 %v5332_v58, %v5332_v58  ;;  %v7385_v58 = vld [vmem:[%s9032_s0] sm:$0xff] }
0x25d2   :  { %6595 = vmatprep.mubr.msk.bf16.mxu0 %vm577_vm1, %v5334_v31 }
0x25d3   :  { %5444 = vmatmul.mubr.bf16.vlgmr.msra.gmra.mrb[40].mxu0 %v5333_v23 }
0x25d4   :  { %6791 = vmatprep.mubr.msk.bf16.mxu0 %vm7759_vm4, %v7758_v46  ;;  %6788 = vmatpush3.bf16.msra.mxu0 %v7247_v0  ;;  %v7251_v0 = vld [vmem:[%s9006_s15 + $0x10] sm:$0xff]  }
0x25d5   :  { %6789 = vmatprep.subr.bf16.mxu0 %v7758_v46 }
0x25d8   :  { %6790 = vmatpush3.bf16.msra.mxu0 %v7248_v14  ;;  %v7252_v14 = vld [vmem:[%s9006_s15 + $0x18] sm:$0xff]  }
0x25d9   :  { %6795 = vmatprep.subr.bf16.mxu0 %v7758_v46 }
0x260f   :  { %v5560_v33 = vpop.f32.mrb[80].mxu1 }
0x2610   :  { %v5562_v60 = vpop.f32.mrb[81].mxu1 }
0x2611   :  { %v5563_v6 = vpop.f32.mrb[82].mxu1  ;;  %v7386_v60 = vld [vmem:[%s9032_s0 + $0x8] sm:$0xff] }
0x2612   :  { %v5564_v7 = vpop.f32.mrb[83].mxu1 }
0x26a6   :  { %v5445_v8 = vpop.f32.mrb[40].mxu0 }
0x26a7   :  { %v5561_v62 = vadd.f32 %v5560_v33, %v5445_v8  ;;  %v5447_v12 = vpop.f32.mrb[41].mxu0 }
0x26a8   :  { %v5448_v63 = vpop.f32.mrb[42].mxu0 }
0x26a9   :  { %v5566_v1 = vadd.f32 %v5561_v62, %v8746_v45  ;;  %v5449_v26 = vpop.f32.mrb[43].mxu0 }
0x26ab   :  { %v5574_v4 = vadd.f32 %v6609_v16, %v5566_v1 }
0x26ad   :  { %7361 = vtanh.f32 %v5574_v4  ;;  %v6610_v36 = vmul.f32 -1.442695, %v5574_v4 }
0x26af   :  { %7363 = vpow2.f32 %v6610_v36 }
0x26b7   :  { %v7362_v13 = vpop.eup %7361 }
0x26b8   :  { %5584 = vrot.lane.b32.xlu0 %v7362_v13, %s7744_s4 }
0x26b9   :  { %v7364_v44 = vpop.eup %7363 }
0x26ba   :  { %v5578_v37 = vadd.f32 1.0, %v7364_v44 }
0x26bc   :  { %7365 = vrcp.f32 %v5578_v37 }
0x26c6   :  { %v7366_v38 = vpop.eup %7365 }
0x26c7   :  { %v5582_v25 = vmul.f32 %v7366_v38, %v8651_v10 }
0x272a   :  { %v5585_v41 = vpop.permute.xlu0 %5584 }
0x272b   :  { %v5587_v20 = vmul.f32 %v7366_v38, %v5585_v41 }
0x272d   :  { %5589 = vrot.lane.b32.xlu0 %v5587_v20, %s7760_s3  ;;  %v7250_v20 = vld [vmem:[%s9006_s15 + $0x8] sm:$0xff]  }
0x279f   :  { %v5590_v24 = vpop.permute.xlu0 %5589 }
0x27a0   :  { %v8849_v45 = vadd.f32 %v5590_v24, %v5582_v25 }
0x27a2   :  { %7367 = vtanh.f32 %v8849_v45 }
0x27ac   :  { %v7368_v47 = vpop.eup %7367 }
0x27ad   :  { %5595 = vrot.lane.b32.xlu0 %v7368_v47, %s7744_s4  ;;  %v6344_v47 = vld [vmem:[#allocation2] ss:$0 sm:$0xff] }
0x281f   :  { %v5596_v3 = vpop.permute.xlu0 %5595 }
0x2820   :  { %v5598_v48 = vmul.f32 %v7366_v38, %v5596_v3 }
0x2822   :  { %v5599_v32 = vpack.c.bf16 %v5598_v48, %v5598_v48 }
0x2824   :  { %5605 = vrot.lane.b32.xlu0 %v5599_v32, %s7760_s3 }
0x2896   :  { %v5606_v22 = vpop.permute.xlu0 %5605 }
0x2897   :  { %6792 = vmatmul.mubr.msk.bf16.vlgmr.msra.gmra.mrb[44].mxu0 %vm320_vm0, %v5606_v22 }
0x2898   :  { %6803 = vmatprep.mubr.msk.bf16.mxu0 %vm7759_vm4, %v7758_v46 }
0x296a   :  { %v5656_v52 = vpop.f32.mrb[44].mxu0 }
0x296b   :  { %v5669_v53 = vrot.slane %v5656_v52, %v8106_v55  ;;  %v6793_v18 = vpop.f32.mrb[45].mxu0 }
0x296c   :  { %v5659_v34 = vpop.f32.mrb[46].mxu0 }
0x296d   :  { %v5670_v56 = vcombine.high %v5669_v53, %v5669_v53  ;;  %v5677_v29 = vrot.slane %v5669_v53, %v8106_v55  ;;  %v6794_v57 = vpop.f32.mrb[47].mxu0 }
0x296f   :  { %v5684_v35 = vrot.slane %v5670_v56, %v8106_v55  ;;  %v5688_v59 = vrot.slane %v5677_v29, %v8098_v40 }
0x2971   :  { %v5695_v31 = vmul.f32 %v7385_v58, %v5688_v59  ;;  %v5692_v23 = vrot.slane %v5684_v35, %v8098_v40 }
0x2973   :  { %v5697_v33 = vsel %vm577_vm1, %v5695_v31, 0.0  ;;  %v5696_v6 = vmul.f32 %v7386_v60, %v5692_v23  ;;  %v7253_v23 = vld [vmem:[#allocation22] ss:$8 sps:$4 sm:$0xff]  }
0x2974   :  { %5698 = vadd.xlane.f32.xlu0 %v5697_v33  ;;  %v7255_v33 = vld [vmem:[#allocation22 + $0x4] ss:$8 sps:$4 sm:$0xff]  }
0x2975   :  { %v5700_v7 = vsel %vm577_vm1, %v5696_v6, 0.0  ;;  %v7256_v6 = vld [vmem:[#allocation22 + $0x10] ss:$8 sps:$4 sm:$0xff]  }
0x2976   :  { %5701 = vadd.xlane.f32.xlu1 %v5700_v7  ;;  %v7261_v7 = vld [vmem:[#allocation22 + $0x24] ss:$8 sps:$4 sm:$0xff]  }
0x2a01   :  { %v5699_v8 = vpop.xlane.xlu0 %5698 }
0x2a02   :  { %v5708_v12 = vrot.slane %v5699_v8, %v8121_v21  ;;  %v7259_v8 = vld [vmem:[#allocation22 + $0x20] ss:$8 sps:$4 sm:$0xff]  }
0x2a03   :  { %v5702_v62 = vpop.xlane.xlu1 %5701 }
0x2a04   :  { %v5712_v16 = vrot.slane %v5702_v62, %v8121_v21  ;;  %v7249_v21 = vld [vmem:[%s9006_s15] sm:$0xff]   ;;  %v7264_v62 = vld [vmem:[#allocation22 + $0x34] ss:$8 sps:$4 sm:$0xff]  }
0x2a05   :  { %6796 = vmatpush3.bf16.msra.mxu0 %v7249_v21 }
0x2a06   :  { %v5713_v63 = vsel %vm691_vm2, %v5712_v16, %v5708_v12  ;;  %6797 = vmatprep.subr.bf16.mxu0 %v7758_v46  ;;  %v7262_v12 = vld [vmem:[#allocation22 + $0x30] ss:$8 sps:$4 sm:$0xff]   ;;  %v7267_v16 = vld [vmem:[#allocation22 + $0x44] ss:$8 sps:$4 sm:$0xff]  }
0x2a07   :  { %v5715_v1 = vsel %vm1239_vm5, -1e+30, %v5713_v63  ;;  %v7265_v63 = vld [vmem:[#allocation22 + $0x40] ss:$8 sps:$4 sm:$0xff]  }
0x2a08   :  { %v5716_v26 = vsel %vm694_vm3, %v5715_v1, -inf }
0x2a09   :  { %5717 = vmax.xlane.f32.xlu1 %v5716_v26  ;;  %6798 = vmatpush3.bf16.msra.mxu0 %v7250_v20  ;;  %v7268_v26 = vld [vmem:[#allocation22 + $0x50] ss:$8 sps:$4 sm:$0xff]  }
0x2a0a   :  { %6799 = vmatprep.subr.bf16.mxu0 %v7758_v46 }
0x2a0d   :  { %6800 = vmatpush3.bf16.msra.mxu0 %v7251_v0 }
0x2a0e   :  { %6801 = vmatprep.subr.bf16.mxu0 %v7758_v46 }
0x2a11   :  { %6802 = vmatpush3.bf16.msra.mxu0 %v7252_v14 }
0x2a12   :  { %6100 = vmatprep.subr.bf16.mxu0 %v7255_v33  ;;  %v4749_v33 = vld [vmem:[#allocation5 + $0x68] sm:$0xff] }
0x2a96   :  { %v5718_v4 = vpop.xlane.xlu1 %5717 }
0x2a97   :  { %v5719_v13 = vsub.f32 %v5715_v1, %v5718_v4  ;;  %v7273_v4 = vld [vmem:[#allocation22 + $0x64] ss:$8 sps:$4 sm:$0xff]  }
0x2a99   :  { %v5720_v36 = vmul.f32 1.442695, %v5719_v13 }
0x2a9b   :  { %7369 = vpow2.f32 %v5720_v36  ;;  %v7271_v36 = vld [vmem:[#allocation22 + $0x60] ss:$8 sps:$4 sm:$0xff]  }
0x2aa5   :  { %v7370_v44 = vpop.eup %7369 }
0x2aa6   :  { %v5722_v37 = vsel %vm694_vm3, %v7370_v44, 0.0 }
0x2aa7   :  { %5723 = vadd.xlane.f32.xlu1 %v5722_v37  ;;  %v1753_v37 = vadd.s32 4294967224, %v8117_v19 }
0x2b34   :  { %v5724_v38 = vpop.xlane.xlu1 %5723 }
0x2b35   :  { %7371 = vrcp.f32 %v5724_v38 }
0x2b3f   :  { %v7372_v11 = vpop.eup %7371 }
0x2b40   :  { %v8883_v41 = vmul.f32 %v7372_v11, %v7370_v44  ;;  %v8923_v11 = vsub.s32 %v1753_v37, %v8095_v39 }
0x2b42   :  { %v5737_v25 = vrot.slane %v8883_v41, %v8101_v42  ;;  %v5730_v24 = vrot.slane %v8883_v41, %v8098_v40 }
0x2b44   :  { %5739 = vbcast.lane.b32.xlu0 %v5737_v25, 256  ;;  %5732 = vbcast.lane.b32.xlu1 %v5730_v24, 256 }
0x2b48   :  { %5797 = vrot.lane.b32.xlu1 %v5656_v52, %s7744_s4 }
0x2b63   :  { %1733 = vadd.xlane.f32.xlu0 %v8345_v54 }
0x2b6c   :  { %1730 = vadd.xlane.f32.xlu1 %v8342_v51 }
0x2b70   :  { %3219 = vadd.xlane.f32.xlu1 %v8548_v61 }
0x2b74   :  { %4706 = vadd.xlane.f32.xlu1 %v8748_v5 }
0x2b79   :  { %1748 = vrot.lane.b32.xlu0 %v8270_v30, %s7744_s4 }
0x2b85   :  { %1742 = vperm.xlu1 %6835, %v6344_v47  }
0x2b89   :  { %3231 = vperm.xlu1 %6835, %v6344_v47  }
0x2b8d   :  { %4718 = vperm.xlu1 %6835, %v6344_v47  }
0x2b91   :  { %4724 = vrot.lane.b32.xlu1 %v8678_v50, %s7744_s4 }
0x2b98   :  { %3222 = vadd.xlane.f32.xlu0 %v8550_v15 }
0x2bae   :  { %3237 = vrot.lane.b32.xlu0 %v8468_v43, %s7744_s4 }
0x2bb6   :  { %v5740_v46 = vpop.permute.xlu0 %5739  ;;  %v5733_v51 = vpop.permute.xlu1 %5732 }
0x2bb7   :  { %v5742_v54 = vmul.f32 %v7386_v60, %v5740_v46  ;;  %v5741_v61 = vmul.f32 %v7385_v58, %v5733_v51  ;;  %v7258_v60 = vld [vmem:[#allocation22 + $0x14] ss:$8 sps:$4 sm:$0xff]   ;;  %v1764_v46 = vsel %vm320_vm0, %v8295_v17, %v8224_v27  ;;  %v7280_v17 = vld [vmem:[#allocation22 + $0x80] ss:$8 sps:$4 sm:$0xff]  }
0x2bb9   :  { %v5750_v5 = vsel %vm577_vm1, %v5742_v54, 0.0  ;;  %v5743_v30 = vsel %vm577_vm1, %v5741_v61, 0.0 }
0x2bba   :  { %v5751_v3 = vrot.slane %v5750_v5, 4  ;;  %v5744_v48 = vrot.slane %v5743_v30, 4  ;;  %v8917_v1 = vpop.permute.xlu1 %5797 }
0x2bbc   :  { %v5752_v32 = vadd.f32 %v5751_v3, %v5750_v5  ;;  %v5745_v22 = vadd.f32 %v5744_v48, %v5743_v30  ;;  %v7276_v5 = vld [vmem:[#allocation22 + $0x74] ss:$8 sps:$4 sm:$0xff]   ;;  %v7274_v30 = vld [vmem:[#allocation22 + $0x70] ss:$8 sps:$4 sm:$0xff]   ;;  %v7279_v48 = vld [vmem:[#allocation19 + $0x4] ss:$8 sps:$4 sm:$0xff]  }
0x2bbd   :  { %v7277_v3 = vld [vmem:[#allocation19] ss:$8 sps:$4 sm:$0xff]   ;;  %5884 = vmatprep.subr.bf16.mxu1 %v7279_v48 }
0x2bbe   :  { %v5753_v52 = vrot.slane %v5752_v32, 2  ;;  %v5746_v53 = vrot.slane %v5745_v22, 2  ;;  %5885 = vmatpush1.bf16.msra.mxu1 %v7277_v3 }
0x2bc0   :  { %v5754_v50 = vadd.f32 %v5753_v52, %v5752_v32  ;;  %v5747_v18 = vadd.f32 %v5746_v53, %v5745_v22  ;;  %v7282_v32 = vld [vmem:[#allocation22 + $0x84] ss:$8 sps:$4 sm:$0xff]   ;;  %v7285_v22 = vld [vmem:[#allocation19 + $0x14] ss:$8 sps:$4 sm:$0xff]  }
0x2bc1   :  { %v7288_v53 = vld [vmem:[#allocation22 + $0x94] ss:$8 sps:$4 sm:$0xff]   ;;  %5886 = vmatprep.subr.bf16.mxu1 %v7285_v22 }
0x2bc2   :  { %v5755_v15 = vrot.slane %v5754_v50, 1  ;;  %v5748_v34 = vrot.slane %v5747_v18, 1 }
0x2bc4   :  { %v5756_v56 = vadd.f32 %v5755_v15, %v5754_v50  ;;  %v5749_v43 = vadd.f32 %v5748_v34, %v5747_v18  ;;  %v7283_v18 = vld [vmem:[#allocation19 + $0x10] ss:$8 sps:$4 sm:$0xff]  }
0x2bc5   :  { %5887 = vmatpush1.bf16.msra.mxu1 %v7283_v18 }
0x2bc6   :  { %v5758_v29 = vpack.c.bf16 %v5756_v56, %v5756_v56  ;;  %v5757_v57 = vpack.c.bf16 %v5749_v43, %v5749_v43  ;;  %v7286_v56 = vld [vmem:[#allocation22 + $0x90] ss:$8 sps:$4 sm:$0xff]   ;;  %v3252_v43 = vsel %vm320_vm0, %v8505_v9, %v8438_v2  ;;  %v7294_v9 = vld [vmem:[#allocation22 + $0xb4] ss:$8 sps:$4 sm:$0xff]  }
0x2bc7   :  { %v7292_v2 = vld [vmem:[#allocation22 + $0xb0] ss:$8 sps:$4 sm:$0xff]  }
0x2bc8   :  { %v5770_v35 = vunpack.c.l.b16 %v5758_v29  ;;  %v5769_v59 = vunpack.c.l.b16 %v5757_v57  ;;  %v7291_v57 = vld [vmem:[#allocation22 + $0xa4] ss:$8 sps:$4 sm:$0xff]  }
0x2bca   :  { %v5771_v58 = vsel %vm691_vm2, %v5770_v35, %v5769_v59 }
0x2bcb   :  { %v5772_v31 = vpack.c.b16 %v5771_v58, %v5771_v58 }
0x2bcd   :  { %6804 = vmatmul.mubr.msk.bf16.vlgmr.msra.gmra.mrb[48].mxu0 %vm577_vm1, %v5772_v31  ;;  %4709 = vadd.xlane.f32.xlu0 %v8750_v49  ;;  %v7270_v49 = vld [vmem:[#allocation22 + $0x54] ss:$8 sps:$4 sm:$0xff]  }
0x2bce   :  { %6101 = vmatpush1.bf16.msra.mxu0 %v7253_v23  ;;  %v7289_v23 = vld [vmem:[#allocation22 + $0xa0] ss:$8 sps:$4 sm:$0xff]  }
0x2bcf   :  { %6102 = vmatprep.subr.bf16.mxu0 %v7258_v60  ;;  %v4751_v60 = vld [vmem:[#allocation5 + $0x78] sm:$0xff] }
0x2bd2   :  { %6103 = vmatpush1.bf16.msra.mxu0 %v7256_v6  ;;  %v4748_v6 = vld [vmem:[#allocation5 + $0x60] sm:$0xff] }
0x2bd3   :  { %6104 = vmatprep.subr.bf16.mxu0 %v7261_v7  ;;  %v4750_v7 = vld [vmem:[#allocation5 + $0x70] sm:$0xff] }
0x2bd6   :  { %6105 = vmatpush1.bf16.msra.mxu0 %v7259_v8  ;;  %v5940_v8 = vpack.c.bf16 %v4751_v60, %v4749_v33 }
0x2bd7   :  { %6106 = vmatprep.subr.bf16.mxu0 %v7264_v62  ;;  %v5939_v62 = vpack.c.bf16 %v4750_v7, %v4748_v6 }
0x2bd8   :  { %6648 = vmatprep.mubr.msk.bf16.mxu0 %vm577_vm1, %v5940_v8 }
0x2bda   :  { %6107 = vmatpush1.bf16.msra.mxu0 %v7262_v12 }
0x2bdb   :  { %6108 = vmatprep.subr.bf16.mxu0 %v7267_v16 }
0x2bde   :  { %6109 = vmatpush1.bf16.msra.mxu0 %v7265_v63 }
0x2bdf   :  { %6110 = vmatprep.subr.bf16.mxu0 %v7270_v49 }
0x2be2   :  { %6111 = vmatpush1.bf16.msra.mxu0 %v7268_v26 }
0x2be3   :  { %6205 = vperm.xlu0 %6836, %v6344_v47   ;;  %6112 = vmatprep.subr.bf16.mxu0 %v7273_v4 }
0x2be6   :  { %6113 = vmatpush1.bf16.msra.mxu0 %v7271_v36  ;;  %v4739_v36 = vsel %vm320_vm0, %v8705_v28, %v8651_v10 }
0x2be7   :  { %6114 = vmatprep.subr.bf16.mxu0 %v7276_v5 }
0x2bea   :  { %6115 = vmatpush1.bf16.msra.mxu0 %v7274_v30 }
0x2beb   :  { %6116 = vmatprep.subr.bf16.mxu0 %v7282_v32 }
0x2bee   :  { %6117 = vmatpush1.bf16.msra.mxu0 %v7280_v17 }
0x2bef   :  { %6118 = vmatprep.subr.bf16.mxu0 %v7288_v53  ;;  %v5965_v53 = vld [vmem:[#allocation23] sm:$0x3] }
0x2bf0   :  { %v1734_v38 = vpop.xlane.xlu0 %1733 }
0x2bf2   :  { %6119 = vmatpush1.bf16.msra.mxu0 %v7286_v56 }
0x2bf3   :  { %6120 = vmatprep.subr.bf16.mxu0 %v7291_v57 }
0x2bf4   :  { %v1749_v0 = vpop.permute.xlu0 %1748 }
0x2bf5   :  { %v1765_v19 = vsel %vm577_vm1, %v1764_v46, %v1749_v0 }
0x2bf6   :  { %6121 = vmatpush1.bf16.msra.mxu0 %v7289_v23 }
0x2bf7   :  { %6122 = vmatprep.subr.bf16.mxu0 %v7294_v9 }
0x2bf9   :  { %v1731_v13 = vpop.xlane.xlu1 %1730 }
0x2bfa   :  { %6123 = vmatpush1.bf16.msra.mxu0 %v7292_v2 }
0x2bfd   :  { %v3220_v44 = vpop.xlane.xlu1 %3219  ;;  %6133 = vmatmul.mubr.bf16.vlgmr.msra.gmra.mrb[52].mxu0 %v5939_v62 }
0x2c01   :  { %v8920_v21 = vpop.xlane.xlu1 %4706 }
0x2c05   :  { %v1743_v20 = vpop.permute.xlu1 %1742 }
0x2c06   :  { %v1745_v25 = vadd.f32 %v1743_v20, %v1731_v13  ;;  %v1746_v24 = vadd.f32 %v1743_v20, %v1734_v38 }
0x2c08   :  { %v1757_v14 = vrot.slane %v1745_v25, %v8923_v11  ;;  %v1761_v47 = vrot.slane %v1746_v24, %v8923_v11 }
0x2c09   :  { %v3232_v61 = vpop.permute.xlu1 %3231 }
0x2c0a   :  { %v1762_v51 = vsel %vm691_vm2, %v1761_v47, %v1757_v14  ;;  %v3234_v27 = vadd.f32 %v3232_v61, %v3220_v44 }
0x2c0b   :  { %v1767_v39 = vsel %vm1766_vm6, %v1765_v19, %v1762_v51 }
0x2c0c   :  { %v1769_v54 = vsel %vm1768_vm7, %v1767_v39, 0.0  ;;  %v3245_v15 = vrot.slane %v3234_v27, %v8923_v11  ;;  %v5849_v39 = vld [vmem:[#allocation20] sm:$0x3] }
0x2c0d   :  { %1770 = vst [vmem:[%s9013_s22] sm:$0x3] %v1769_v54  ;;  %v4719_v12 = vpop.permute.xlu1 %4718  ;;  %v5925_v54 = vld [vmem:[#allocation25] sm:$0x3]  ;;  %v5858_v5 = vrot.slane %v5849_v39, %v8101_v42 }
0x2c0e   :  { %v4721_v16 = vadd.f32 %v4719_v12, %v8920_v21  ;;  %v5934_v3 = vrot.slane %v5925_v54, %v8101_v42 }
0x2c10   :  { %v4732_v4 = vrot.slane %v4721_v16, %v8923_v11 }
0x2c11   :  { %v4725_v26 = vpop.permute.xlu1 %4724 }
0x2c12   :  { %v4740_v44 = vsel %vm577_vm1, %v4739_v36, %v4725_v26 }
0x2c25   :  { %v3223_v52 = vpop.xlane.xlu0 %3222 }
0x2c26   :  { %v3235_v50 = vadd.f32 %v3232_v61, %v3223_v52  ;;  %v5854_v61 = vrot.slane %v5849_v39, %v8098_v40 }
0x2c28   :  { %v3249_v34 = vrot.slane %v3235_v50, %v8923_v11 }
0x2c29   :  { %v3238_v29 = vpop.permute.xlu0 %3237 }
0x2c2a   :  { %v3250_v35 = vsel %vm691_vm2, %v3249_v34, %v3245_v15  ;;  %v3253_v59 = vsel %vm577_vm1, %v3252_v43, %v3238_v29  ;;  %v5970_v15 = vrot.slane %v5965_v53, %v8098_v40  ;;  %v5974_v34 = vrot.slane %v5965_v53, %v8101_v42 }
0x2c2b   :  { %v3254_v58 = vsel %vm1766_vm6, %v3253_v59, %v3250_v35 }
0x2c2c   :  { %v3255_v31 = vsel %vm1768_vm7, %v3254_v58, 0.0 }
0x2c2d   :  { %6446 = vst [vmem:[%s9013_s22 + $0x2] sm:$0x3] %v3255_v31 }
0x2c5a   :  { %v4710_v63 = vpop.xlane.xlu0 %4709 }
0x2c5b   :  { %v4722_v49 = vadd.f32 %v4719_v12, %v4710_v63 }
0x2c5d   :  { %v4736_v13 = vrot.slane %v4722_v49, %v8923_v11 }
0x2c5f   :  { %v4737_v37 = vsel %vm691_vm2, %v4736_v13, %v4732_v4 }
0x2c60   :  { %v4741_v38 = vsel %vm1766_vm6, %v4740_v44, %v4737_v37 }
0x2c61   :  { %v4742_v20 = vsel %vm1768_vm7, %v4741_v38, 0.0 }
0x2c62   :  { %6548 = vst [vmem:[%s9013_s22 + $0x4] sm:$0x3] %v4742_v20  ;;  %v6206_v63 = vpop.permute.xlu0 %6205 }
0x2ca0   :  { %v5837_v21 = vpop.f32.mrb[48].mxu0 }
0x2ca1   :  { %v5838_v25 = vadd.f32 %v5837_v21, %v8917_v1  ;;  %v6805_v24 = vpop.f32.mrb[49].mxu0  ;;  %v5930_v1 = vrot.slane %v5925_v54, %v8098_v40 }
0x2ca2   :  { %v5840_v0 = vpop.f32.mrb[50].mxu0 }
0x2ca3   :  { %7373 = vtanh.f32 %v5838_v25  ;;  %v6806_v14 = vpop.f32.mrb[51].mxu0 }
0x2cad   :  { %v7374_v10 = vpop.eup %7373 }
0x2cae   :  { %v5844_v28 = vpack.c.bf16 %v7374_v10, %v7374_v10 }
0x2cb0   :  { %6623 = vmatmul.mubr.msk.bf16.vlgmr.msra.gmra.mrb[84].mxu1 %vm320_vm0, %v5844_v28 }
0x2cd0   :  { %v6134_v47 = vpop.f32.mrb[52].mxu0 }
0x2cd1   :  { %v6136_v46 = vpop.f32.mrb[53].mxu0  ;;  %v6135_v43 = vadd.f32 %v6134_v47, %v5970_v15 }
0x2cd2   :  { %v6138_v19 = vpop.f32.mrb[54].mxu0  ;;  %v6137_v57 = vadd.f32 %v6136_v46, %v5974_v34 }
0x2cd3   :  { %v6140_v51 = vpop.f32.mrb[55].mxu0  ;;  %v6139_v23 = vadd.f32 %v6138_v19, %v5970_v15 }
0x2cd4   :  { %v6141_v2 = vadd.f32 %v6140_v51, %v5974_v34 }
0x2d83   :  { %v5918_v30 = vpop.f32.mrb[84].mxu1 }
0x2d84   :  { %v5919_v48 = vadd.f32 %v5918_v30, %v5854_v61  ;;  %v5920_v27 = vpop.f32.mrb[85].mxu1 }
0x2d85   :  { %v5921_v17 = vadd.f32 %v5920_v27, %v5858_v5  ;;  %v5922_v32 = vpop.f32.mrb[86].mxu1 }
0x2d86   :  { %v5937_v22 = vmul.f32 %v5930_v1, %v5919_v48  ;;  %v5923_v52 = vpop.f32.mrb[87].mxu1 }
0x2d87   :  { %v5938_v50 = vmul.f32 %v5934_v3, %v5921_v17 }
0x2d89   :  { %v6145_v18 = vcombine.low %v5937_v22, %v5938_v50 }
0x2d8b   :  { %v6152_v56 = vrot.slane %v6145_v18, %v8106_v55 }
0x2d8d   :  { %v6160_v29 = vrot.slane %v6152_v56, %v8106_v55  ;;  %v6153_v35 = vcombine.high %v6152_v56, %v6152_v56 }
0x2d8f   :  { %v6171_v59 = vrot.slane %v6160_v29, %v8098_v40  ;;  %v6175_v58 = vrot.slane %v6160_v29, %v8101_v42  ;;  %v6167_v31 = vrot.slane %v6153_v35, %v8106_v55 }
0x2d91   :  { %v6188_v9 = vmul.f32 %v6171_v59, %v6135_v43  ;;  %v6189_v33 = vmul.f32 %v6175_v58, %v6137_v57  ;;  %v6179_v60 = vrot.slane %v6167_v31, %v8098_v40  ;;  %v6183_v6 = vrot.slane %v6167_v31, %v8101_v42 }
0x2d92   :  { %v6226_v42 = vsel %vm320_vm0, %v7374_v10, %v8849_v45 }
0x2d93   :  { %v6190_v7 = vmul.f32 %v6179_v60, %v6139_v23  ;;  %v6191_v8 = vmul.f32 %v6183_v6, %v6141_v2  ;;  %v6192_v62 = vadd.f32 %v6189_v33, %v6188_v9 }
0x2d95   :  { %6193 = vadd.xlane.f32.xlu1 %v6192_v62  ;;  %v6195_v12 = vadd.f32 %v6191_v8, %v6190_v7 }
0x2d99   :  { %6196 = vadd.xlane.f32.xlu1 %v6195_v12 }
0x2daa   :  { %6211 = vrot.lane.b32.xlu1 %v8883_v41, %s7744_s4 }
0x2e22   :  { %v6194_v16 = vpop.xlane.xlu1 %6193 }
0x2e23   :  { %v6208_v55 = vadd.f32 %v6206_v63, %v6194_v16 }
0x2e25   :  { %v6219_v4 = vrot.slane %v6208_v55, %v8923_v11 }
0x2e26   :  { %v6197_v49 = vpop.xlane.xlu1 %6196 }
0x2e27   :  { %v6209_v26 = vadd.f32 %v6206_v63, %v6197_v49 }
0x2e29   :  { %v6223_v40 = vrot.slane %v6209_v26, %v8923_v11 }
0x2e2a   :  { %v6212_v13 = vpop.permute.xlu1 %6211 }
0x2e2b   :  { %v6224_v36 = vsel %vm691_vm2, %v6223_v40, %v6219_v4  ;;  %v6227_v44 = vsel %vm577_vm1, %v6226_v42, %v6212_v13 }
0x2e2c   :  { %v6228_v37 = vsel %vm1766_vm6, %v6227_v44, %v6224_v36 }
0x2e2d   :  { %v6229_v41 = vsel %vm1768_vm7, %v6228_v37, 0.0 }
0x2e2e   :  { %6650 = vst [vmem:[%s9013_s22 + $0x6] sm:$0x3] %v6229_v41 }
0x2e2f   :  { %6236 = vsyncpa [#allocation4], 1 }
0x2e30   :  { %6237 = vsyncpa [#allocation6], 1 }
0x2e31   :  { %6238 = vsyncpa [#allocation9], 1 }
0x2e32   :  { %6239 = vsyncpa [#allocation12], 1 }
0x2e33   :  { %6240 = vsyncpa [#allocation15], 1 }
0x2e34   :  { %6241 = vsyncpa [#allocation18], 1 }
0x2e35   :  { %6242 = vsyncpa [#allocation21], 1 }
0x2e36   :  { %6243 = vsyncpa [#allocation24], 1 }

</bundles_post_ra>
